<compile_context>
chip_gen: v7x
topology: tpu7x:2x2x1
jax: 0.10.0
libtpu: 0.0.40
codegen_flags: <defaults>
</compile_context>

<pallas_src>
import math
import functools

import jax
import jax.numpy as jnp
from jax.experimental import pallas as pl
from jax.experimental.pallas import tpu as pltpu

EPS = 1e-5          # nn.LayerNorm default
NEG_INF = -1e30     # numerically identical to -inf after softmax in f32


# ----------------------------- in-kernel helpers -----------------------------

def _layernorm(x, g, b):
    mean = jnp.mean(x, axis=-1, keepdims=True)
    var = jnp.mean((x - mean) ** 2, axis=-1, keepdims=True)
    return (x - mean) * jax.lax.rsqrt(var + EPS) * g + b


def _gelu_new(x):
    # 0.5 * x * (1 + tanh(sqrt(2/pi) * (x + 0.044715 x^3)))
    return 0.5 * x * (1.0 + jnp.tanh(math.sqrt(2.0 / math.pi) * (x + 0.044715 * x * x * x)))


# ----------------------------- Pallas kernel ----------------------------------

def decoder_block_kernel(x_ref, rel_ref,
                         g1_ref, b1_ref,
                         wqkv_ref, bqkv_ref,
                         wo_ref, bo_ref,
                         g2_ref, b2_ref,
                         w1_ref, bf1_ref, w2_ref, bf2_ref,
                         gf_ref, bfin_ref,
                         o_ref, *, num_heads, pos_buckets, apply_final_ln,
                         compute_dtype):
    """One full DecoderBlock for a single batch element (grid axis = batch)."""
    x = x_ref[0]                       # (L, E) float32
    L, E = x.shape
    H = num_heads
    Hd = E // H
    scale = 1.0 / math.sqrt(Hd)        # torch divides by sqrt(head_dim)

    def mm(a, w_ref, b_ref):
        # MXU matmul with f32 accumulation; operands optionally cast (bf16 on v6e/v7x).
        return jnp.dot(a.astype(compute_dtype), w_ref[...].astype(compute_dtype),
                       preferred_element_type=jnp.float32) + b_ref[...]

    # --- attention bias (relative-position buckets + causal -inf), built in-kernel ---
    row = jax.lax.broadcasted_iota(jnp.int32, (L, L), 0)      # context position i
    col = jax.lax.broadcasted_iota(jnp.int32, (L, L), 1)      # memory  position j
    bucket = jnp.minimum(jnp.abs(col - row), pos_buckets - 1)  # (L, L) int32
    future = col > row                                         # (L, L) bool
    emb = rel_ref[...]                                         # (pos_buckets, H) f32

    head_biases = []
    for hh in range(H):                                        # static unroll, small
        bh = jnp.zeros((L, L), jnp.float32)
        for bkt in range(pos_buckets):                         # static unroll, small
            bh = bh + jnp.where(bucket == bkt, emb[bkt, hh], 0.0)
        head_biases.append(jnp.where(future, NEG_INF, bh))
    bias = jnp.stack(head_biases, axis=0)                      # (H, L, L)

    # --- x = x + Attention(LayerNorm1(x), mask) ---
    h = _layernorm(x, g1_ref[...], b1_ref[...])
    qkv = mm(h, wqkv_ref, bqkv_ref)                            # (L, 3E), fused QKV
    q = qkv[:, 0:E]
    k = qkv[:, E:2 * E]
    v = qkv[:, 2 * E:3 * E]

    # head-batched attention: (H, L, Hd)
    q3 = jnp.stack([q[:, i * Hd:(i + 1) * Hd] for i in range(H)], axis=0)
    k3 = jnp.stack([k[:, i * Hd:(i + 1) * Hd] for i in range(H)], axis=0)
    v3 = jnp.stack([v[:, i * Hd:(i + 1) * Hd] for i in range(H)], axis=0)

    s = jnp.einsum('hld,hmd->hlm', q3.astype(compute_dtype), k3.astype(compute_dtype),
                   preferred_element_type=jnp.float32)          # (H, L, L)
    s = (s + bias) * scale                                      # mask added BEFORE scaling (as in torch)
    s = s - jnp.max(s, axis=-1, keepdims=True)
    p = jnp.exp(s)
    inv_den = pl.reciprocal(jnp.sum(p, axis=-1, keepdims=True), approx=True)
    att = p * inv_den

    ctx3 = jnp.einsum('hlm,hmd->hld', att.astype(compute_dtype), v3.astype(compute_dtype),
                      preferred_element_type=jnp.float32)       # (H, L, Hd)
    # one lane-dense (L, E) value instead of narrow per-head scratch stores
    ctx = jnp.concatenate([ctx3[i] for i in range(H)], axis=-1)  # (L, E)

    x1 = x + mm(ctx, wo_ref, bo_ref)

    # --- x = x + FeedForward(LayerNorm2(x)) ---
    h2 = _layernorm(x1, g2_ref[...], b2_ref[...])
    f = _gelu_new(mm(h2, w1_ref, bf1_ref))
    y = x1 + mm(f, w2_ref, bf2_ref)

    # final LayerNorm fused into the last block
    if apply_final_ln:
        y = _layernorm(y, gf_ref[...], bfin_ref[...])

    o_ref[0] = y.astype(o_ref.dtype)


# ----------------------------- wrapper -----------------------------------------

_BLOCK_PARAM_NAMES = ['g1', 'b1', 'wqkv', 'bqkv', 'wo', 'bo',
                      'g2', 'b2', 'w1', 'bf1', 'w2', 'bf2']


def decoder_block_pallas(x, rel_emb, blk, gf, bf, *, num_heads, pos_buckets,
                         apply_final_ln, compute_dtype=jnp.float32):
    B, L, E = x.shape
    PB, H = rel_emb.shape

    params = [blk[n] for n in _BLOCK_PARAM_NAMES] + [gf, bf]

    in_specs = (
        [pl.BlockSpec((1, L, E), lambda b: (b, 0, 0)),
         pl.BlockSpec((PB, H), lambda b: (0, 0))]
        # grid-invariant weights: full-array blocks, constant index maps
        + [pl.BlockSpec(p.shape, lambda b, nd=p.ndim: (0,) * nd) for p in params]
    )

    kernel = functools.partial(decoder_block_kernel,
                               num_heads=num_heads,
                               pos_buckets=pos_buckets,
                               apply_final_ln=apply_final_ln,
                               compute_dtype=compute_dtype)

    return pl.pallas_call(
        kernel,
        out_shape=jax.ShapeDtypeStruct((B, L, E), x.dtype),
        grid=(B,),
        in_specs=in_specs,
        out_specs=pl.BlockSpec((1, L, E), lambda b: (b, 0, 0)),
        compiler_params=pltpu.CompilerParams(
            # batch elements independent -> shard across v7x's 2 TCs; no-op on 1-TC chips
            dimension_semantics=("parallel",),
            # raise v5e's 16 MiB scoped default; size from working set at real shapes
            vmem_limit_bytes=32 * 1024 * 1024,
        ),
    )(x, rel_emb, *params)


def t5_decoder_forward(tokens, params, num_heads, pos_buckets,
                       compute_dtype=jnp.float32):
    x = params['tok_emb'][tokens]                   # embedding lookup (JAX glue)
    n = len(params['blocks'])
    assert n >= 1
    for i, blk in enumerate(params['blocks']):
        x = decoder_block_pallas(
            x, params['rel_emb'], blk, params['gf'], params['bf'],
            num_heads=num_heads, pos_buckets=pos_buckets,
            apply_final_ln=(i == n - 1),            # fuse last LayerNorm
            compute_dtype=compute_dtype)
    return x


# ----------------------------- deterministic init ------------------------------

def init_params(key, vocab_size, embed_dim, num_layers, num_heads, hidden_size,
                pos_buckets):
    keys = jax.random.split(key, 2 + num_layers)
    params = {
        'tok_emb': jax.random.normal(keys[0], (vocab_size, embed_dim), jnp.float32) * 0.02,
        'rel_emb': jax.random.normal(keys[1], (pos_buckets, num_heads), jnp.float32) * 0.02,
        'blocks': [],
        'gf': jnp.ones((1, embed_dim), jnp.float32),
        'bf': jnp.zeros((1, embed_dim), jnp.float32),
    }

    def lin(kk, in_f, out_f):
        # stored directly in (in, out) layout == transposed PyTorch nn.Linear weight
        # (a PyTorch checkpoint loader would transpose/pack ONCE at load time)
        return jax.random.normal(kk, (in_f, out_f), jnp.float32) * (1.0 / math.sqrt(in_f))

    for l in range(num_layers):
        k = jax.random.split(keys[2 + l], 8)
        wq = lin(k[0], embed_dim, embed_dim)
        wk = lin(k[1], embed_dim, embed_dim)
        wv = lin(k[2], embed_dim, embed_dim)
        bq = jax.random.normal(k[6], (1, embed_dim), jnp.float32) * 0.02
        bk = jnp.zeros((1, embed_dim), jnp.float32)
        bv = jnp.zeros((1, embed_dim), jnp.float32)
        blk = {
            'g1': jnp.ones((1, embed_dim), jnp.float32),
            'b1': jnp.zeros((1, embed_dim), jnp.float32),
            # QKV packed once at init: (E, 3E) weight, (1, 3E) bias
            'wqkv': jnp.concatenate([wq, wk, wv], axis=1),
            'bqkv': jnp.concatenate([bq, bk, bv], axis=1),
            'wo': lin(k[3], embed_dim, embed_dim),
            'bo': jnp.zeros((1, embed_dim), jnp.float32),
            'g2': jnp.ones((1, embed_dim), jnp.float32),
            'b2': jnp.zeros((1, embed_dim), jnp.float32),
            'w1': lin(k[4], embed_dim, hidden_size),
            'bf1': jax.random.normal(k[7], (1, hidden_size), jnp.float32) * 0.02,
            'w2': lin(k[5], hidden_size, embed_dim),
            'bf2': jnp.zeros((1, embed_dim), jnp.float32),
        }
        params['blocks'].append(blk)
    return params


# ----------------------------- main --------------------------------------------

if __name__ == "__main__":
    vocab_size = 50
    embed_dim = 32
    num_layers = 2
    num_heads = 4
    hidden_size = 64
    max_att_window = 16   # only feeds dead-code bucket formula in the reference
    pos_buckets = 8
    B, L = 2, 8

    key = jax.random.PRNGKey(0)
    pkey, tkey = jax.random.split(key)
    params = init_params(pkey, vocab_size, embed_dim, num_layers, num_heads,
                         hidden_size, pos_buckets)
    tokens = jax.random.randint(tkey, (B, L), 0, vocab_size, dtype=jnp.int32)

    fwd = jax.jit(functools.partial(t5_decoder_forward,
                                    num_heads=num_heads, pos_buckets=pos_buckets))
    # For v6e/v7x peak MXU throughput, pass compute_dtype=jnp.bfloat16 (f32 accumulate).
    out = fwd(tokens, params)
    out = jax.block_until_ready(out)

    assert out.shape == (B, L, embed_dim), out.shape
    assert bool(jnp.all(jnp.isfinite(out)))
    print("KERNEL_OK")
</pallas_src>

<mosaic_0001>
module attributes {stable_mosaic.version = 11 : i64} {
  func.func @decoder_block_kernel(%arg0: i32, %arg1: memref<1x8x32xf32, #tpu.memory_space<vmem>>, %arg2: memref<8x4xf32, #tpu.memory_space<vmem>>, %arg3: memref<1x32xf32, #tpu.memory_space<vmem>>, %arg4: memref<1x32xf32, #tpu.memory_space<vmem>>, %arg5: memref<32x96xf32, #tpu.memory_space<vmem>>, %arg6: memref<1x96xf32, #tpu.memory_space<vmem>>, %arg7: memref<32x32xf32, #tpu.memory_space<vmem>>, %arg8: memref<1x32xf32, #tpu.memory_space<vmem>>, %arg9: memref<1x32xf32, #tpu.memory_space<vmem>>, %arg10: memref<1x32xf32, #tpu.memory_space<vmem>>, %arg11: memref<32x64xf32, #tpu.memory_space<vmem>>, %arg12: memref<1x64xf32, #tpu.memory_space<vmem>>, %arg13: memref<64x32xf32, #tpu.memory_space<vmem>>, %arg14: memref<1x32xf32, #tpu.memory_space<vmem>>, %arg15: memref<1x32xf32, #tpu.memory_space<vmem>>, %arg16: memref<1x32xf32, #tpu.memory_space<vmem>>, %arg17: memref<1x8x32xf32, #tpu.memory_space<vmem>>) attributes {dimension_semantics = [#tpu.dimension_semantics<parallel>], iteration_bounds = array<i64: 2>, scalar_prefetch = 0 : i64, scratch_operands = 0 : i64, tpu.core_type = #tpu.core_type<tc>, window_params = [{transform_indices = @transform_0, window_bounds = array<i64: 1, 8, 32>}, {pipeline_mode = #tpu.pipeline_mode<synchronous>, transform_indices = @transform_1, window_bounds = array<i64: 8, 4>}, {pipeline_mode = #tpu.pipeline_mode<synchronous>, transform_indices = @transform_2, window_bounds = array<i64: 1, 32>}, {pipeline_mode = #tpu.pipeline_mode<synchronous>, transform_indices = @transform_3, window_bounds = array<i64: 1, 32>}, {pipeline_mode = #tpu.pipeline_mode<synchronous>, transform_indices = @transform_4, window_bounds = array<i64: 32, 96>}, {pipeline_mode = #tpu.pipeline_mode<synchronous>, transform_indices = @transform_5, window_bounds = array<i64: 1, 96>}, {pipeline_mode = #tpu.pipeline_mode<synchronous>, transform_indices = @transform_6, window_bounds = array<i64: 32, 32>}, {pipeline_mode = #tpu.pipeline_mode<synchronous>, transform_indices = @transform_7, window_bounds = array<i64: 1, 32>}, {pipeline_mode = #tpu.pipeline_mode<synchronous>, transform_indices = @transform_8, window_bounds = array<i64: 1, 32>}, {pipeline_mode = #tpu.pipeline_mode<synchronous>, transform_indices = @transform_9, window_bounds = array<i64: 1, 32>}, {pipeline_mode = #tpu.pipeline_mode<synchronous>, transform_indices = @transform_10, window_bounds = array<i64: 32, 64>}, {pipeline_mode = #tpu.pipeline_mode<synchronous>, transform_indices = @transform_11, window_bounds = array<i64: 1, 64>}, {pipeline_mode = #tpu.pipeline_mode<synchronous>, transform_indices = @transform_12, window_bounds = array<i64: 64, 32>}, {pipeline_mode = #tpu.pipeline_mode<synchronous>, transform_indices = @transform_13, window_bounds = array<i64: 1, 32>}, {pipeline_mode = #tpu.pipeline_mode<synchronous>, transform_indices = @transform_14, window_bounds = array<i64: 1, 32>}, {pipeline_mode = #tpu.pipeline_mode<synchronous>, transform_indices = @transform_15, window_bounds = array<i64: 1, 32>}, {transform_indices = @transform_16, window_bounds = array<i64: 1, 8, 32>}]} {
    %c0 = arith.constant 0 : index
    %c0_0 = arith.constant 0 : index
    %c0_1 = arith.constant 0 : index
    %0 = vector.load %arg1[%c0, %c0_0, %c0_1] : memref<1x8x32xf32, #tpu.memory_space<vmem>>, vector<1x8x32xf32>
    %1 = vector.shape_cast %0 : vector<1x8x32xf32> to vector<8x32xf32>
    %2 = tpu.iota {dimensions = array<i32: 0>} : vector<8x8xi32>
    %3 = tpu.iota {dimensions = array<i32: 1>} : vector<8x8xi32>
    %4 = arith.subi %3, %2 : vector<8x8xi32>
    %5 = math.absi %4 : vector<8x8xi32>
    %c7_i32 = arith.constant 7 : i32
    %6 = vector.broadcast %c7_i32 : i32 to vector<8x8xi32>
    %7 = arith.minsi %5, %6 : vector<8x8xi32>
    %8 = arith.cmpi sgt, %3, %2 : vector<8x8xi32>
    %c0_2 = arith.constant 0 : index
    %c0_3 = arith.constant 0 : index
    %9 = vector.load %arg2[%c0_2, %c0_3] : memref<8x4xf32, #tpu.memory_space<vmem>>, vector<8x4xf32>
    %cst = arith.constant 0.000000e+00 : f32
    %10 = vector.broadcast %cst : f32 to vector<8x8xf32>
    %c0_i32 = arith.constant 0 : i32
    %11 = vector.broadcast %c0_i32 : i32 to vector<8x8xi32>
    %12 = arith.cmpi eq, %7, %11 : vector<8x8xi32>
    %13 = vector.extract_strided_slice %9 {offsets = [0, 0], sizes = [1, 1], strides = [1, 1]} : vector<8x4xf32> to vector<1x1xf32>
    %14 = vector.extract %13[0, 0] : f32 from vector<1x1xf32>
    %cst_4 = arith.constant 0.000000e+00 : f32
    %15 = vector.broadcast %14 : f32 to vector<8x8xf32>
    %16 = vector.broadcast %cst_4 : f32 to vector<8x8xf32>
    %17 = arith.select %12, %15, %16 : vector<8x8xi1>, vector<8x8xf32>
    %18 = arith.addf %10, %17 : vector<8x8xf32>
    %c1_i32 = arith.constant 1 : i32
    %19 = vector.broadcast %c1_i32 : i32 to vector<8x8xi32>
    %20 = arith.cmpi eq, %7, %19 : vector<8x8xi32>
    %21 = vector.extract_strided_slice %9 {offsets = [1, 0], sizes = [1, 1], strides = [1, 1]} : vector<8x4xf32> to vector<1x1xf32>
    %22 = vector.extract %21[0, 0] : f32 from vector<1x1xf32>
    %cst_5 = arith.constant 0.000000e+00 : f32
    %23 = vector.broadcast %22 : f32 to vector<8x8xf32>
    %24 = vector.broadcast %cst_5 : f32 to vector<8x8xf32>
    %25 = arith.select %20, %23, %24 : vector<8x8xi1>, vector<8x8xf32>
    %26 = arith.addf %18, %25 : vector<8x8xf32>
    %c2_i32 = arith.constant 2 : i32
    %27 = vector.broadcast %c2_i32 : i32 to vector<8x8xi32>
    %28 = arith.cmpi eq, %7, %27 : vector<8x8xi32>
    %29 = vector.extract_strided_slice %9 {offsets = [2, 0], sizes = [1, 1], strides = [1, 1]} : vector<8x4xf32> to vector<1x1xf32>
    %30 = vector.extract %29[0, 0] : f32 from vector<1x1xf32>
    %cst_6 = arith.constant 0.000000e+00 : f32
    %31 = vector.broadcast %30 : f32 to vector<8x8xf32>
    %32 = vector.broadcast %cst_6 : f32 to vector<8x8xf32>
    %33 = arith.select %28, %31, %32 : vector<8x8xi1>, vector<8x8xf32>
    %34 = arith.addf %26, %33 : vector<8x8xf32>
    %c3_i32 = arith.constant 3 : i32
    %35 = vector.broadcast %c3_i32 : i32 to vector<8x8xi32>
    %36 = arith.cmpi eq, %7, %35 : vector<8x8xi32>
    %37 = vector.extract_strided_slice %9 {offsets = [3, 0], sizes = [1, 1], strides = [1, 1]} : vector<8x4xf32> to vector<1x1xf32>
    %38 = vector.extract %37[0, 0] : f32 from vector<1x1xf32>
    %cst_7 = arith.constant 0.000000e+00 : f32
    %39 = vector.broadcast %38 : f32 to vector<8x8xf32>
    %40 = vector.broadcast %cst_7 : f32 to vector<8x8xf32>
    %41 = arith.select %36, %39, %40 : vector<8x8xi1>, vector<8x8xf32>
    %42 = arith.addf %34, %41 : vector<8x8xf32>
    %c4_i32 = arith.constant 4 : i32
    %43 = vector.broadcast %c4_i32 : i32 to vector<8x8xi32>
    %44 = arith.cmpi eq, %7, %43 : vector<8x8xi32>
    %45 = vector.extract_strided_slice %9 {offsets = [4, 0], sizes = [1, 1], strides = [1, 1]} : vector<8x4xf32> to vector<1x1xf32>
    %46 = vector.extract %45[0, 0] : f32 from vector<1x1xf32>
    %cst_8 = arith.constant 0.000000e+00 : f32
    %47 = vector.broadcast %46 : f32 to vector<8x8xf32>
    %48 = vector.broadcast %cst_8 : f32 to vector<8x8xf32>
    %49 = arith.select %44, %47, %48 : vector<8x8xi1>, vector<8x8xf32>
    %50 = arith.addf %42, %49 : vector<8x8xf32>
    %c5_i32 = arith.constant 5 : i32
    %51 = vector.broadcast %c5_i32 : i32 to vector<8x8xi32>
    %52 = arith.cmpi eq, %7, %51 : vector<8x8xi32>
    %53 = vector.extract_strided_slice %9 {offsets = [5, 0], sizes = [1, 1], strides = [1, 1]} : vector<8x4xf32> to vector<1x1xf32>
    %54 = vector.extract %53[0, 0] : f32 from vector<1x1xf32>
    %cst_9 = arith.constant 0.000000e+00 : f32
    %55 = vector.broadcast %54 : f32 to vector<8x8xf32>
    %56 = vector.broadcast %cst_9 : f32 to vector<8x8xf32>
    %57 = arith.select %52, %55, %56 : vector<8x8xi1>, vector<8x8xf32>
    %58 = arith.addf %50, %57 : vector<8x8xf32>
    %c6_i32 = arith.constant 6 : i32
    %59 = vector.broadcast %c6_i32 : i32 to vector<8x8xi32>
    %60 = arith.cmpi eq, %7, %59 : vector<8x8xi32>
    %61 = vector.extract_strided_slice %9 {offsets = [6, 0], sizes = [1, 1], strides = [1, 1]} : vector<8x4xf32> to vector<1x1xf32>
    %62 = vector.extract %61[0, 0] : f32 from vector<1x1xf32>
    %cst_10 = arith.constant 0.000000e+00 : f32
    %63 = vector.broadcast %62 : f32 to vector<8x8xf32>
    %64 = vector.broadcast %cst_10 : f32 to vector<8x8xf32>
    %65 = arith.select %60, %63, %64 : vector<8x8xi1>, vector<8x8xf32>
    %66 = arith.addf %58, %65 : vector<8x8xf32>
    %c7_i32_11 = arith.constant 7 : i32
    %67 = vector.broadcast %c7_i32_11 : i32 to vector<8x8xi32>
    %68 = arith.cmpi eq, %7, %67 : vector<8x8xi32>
    %69 = vector.extract_strided_slice %9 {offsets = [7, 0], sizes = [1, 1], strides = [1, 1]} : vector<8x4xf32> to vector<1x1xf32>
    %70 = vector.extract %69[0, 0] : f32 from vector<1x1xf32>
    %cst_12 = arith.constant 0.000000e+00 : f32
    %71 = vector.broadcast %70 : f32 to vector<8x8xf32>
    %72 = vector.broadcast %cst_12 : f32 to vector<8x8xf32>
    %73 = arith.select %68, %71, %72 : vector<8x8xi1>, vector<8x8xf32>
    %74 = arith.addf %66, %73 : vector<8x8xf32>
    %cst_13 = arith.constant -1.000000e+30 : f32
    %75 = vector.broadcast %cst_13 : f32 to vector<8x8xf32>
    %76 = arith.select %8, %75, %74 : vector<8x8xi1>, vector<8x8xf32>
    %cst_14 = arith.constant 0.000000e+00 : f32
    %77 = vector.broadcast %cst_14 : f32 to vector<8x8xf32>
    %c0_i32_15 = arith.constant 0 : i32
    %78 = vector.broadcast %c0_i32_15 : i32 to vector<8x8xi32>
    %79 = arith.cmpi eq, %7, %78 : vector<8x8xi32>
    %80 = vector.extract_strided_slice %9 {offsets = [0, 1], sizes = [1, 1], strides = [1, 1]} : vector<8x4xf32> to vector<1x1xf32>
    %81 = vector.extract %80[0, 0] : f32 from vector<1x1xf32>
    %cst_16 = arith.constant 0.000000e+00 : f32
    %82 = vector.broadcast %81 : f32 to vector<8x8xf32>
    %83 = vector.broadcast %cst_16 : f32 to vector<8x8xf32>
    %84 = arith.select %79, %82, %83 : vector<8x8xi1>, vector<8x8xf32>
    %85 = arith.addf %77, %84 : vector<8x8xf32>
    %c1_i32_17 = arith.constant 1 : i32
    %86 = vector.broadcast %c1_i32_17 : i32 to vector<8x8xi32>
    %87 = arith.cmpi eq, %7, %86 : vector<8x8xi32>
    %88 = vector.extract_strided_slice %9 {offsets = [1, 1], sizes = [1, 1], strides = [1, 1]} : vector<8x4xf32> to vector<1x1xf32>
    %89 = vector.extract %88[0, 0] : f32 from vector<1x1xf32>
    %cst_18 = arith.constant 0.000000e+00 : f32
    %90 = vector.broadcast %89 : f32 to vector<8x8xf32>
    %91 = vector.broadcast %cst_18 : f32 to vector<8x8xf32>
    %92 = arith.select %87, %90, %91 : vector<8x8xi1>, vector<8x8xf32>
    %93 = arith.addf %85, %92 : vector<8x8xf32>
    %c2_i32_19 = arith.constant 2 : i32
    %94 = vector.broadcast %c2_i32_19 : i32 to vector<8x8xi32>
    %95 = arith.cmpi eq, %7, %94 : vector<8x8xi32>
    %96 = vector.extract_strided_slice %9 {offsets = [2, 1], sizes = [1, 1], strides = [1, 1]} : vector<8x4xf32> to vector<1x1xf32>
    %97 = vector.extract %96[0, 0] : f32 from vector<1x1xf32>
    %cst_20 = arith.constant 0.000000e+00 : f32
    %98 = vector.broadcast %97 : f32 to vector<8x8xf32>
    %99 = vector.broadcast %cst_20 : f32 to vector<8x8xf32>
    %100 = arith.select %95, %98, %99 : vector<8x8xi1>, vector<8x8xf32>
    %101 = arith.addf %93, %100 : vector<8x8xf32>
    %c3_i32_21 = arith.constant 3 : i32
    %102 = vector.broadcast %c3_i32_21 : i32 to vector<8x8xi32>
    %103 = arith.cmpi eq, %7, %102 : vector<8x8xi32>
    %104 = vector.extract_strided_slice %9 {offsets = [3, 1], sizes = [1, 1], strides = [1, 1]} : vector<8x4xf32> to vector<1x1xf32>
    %105 = vector.extract %104[0, 0] : f32 from vector<1x1xf32>
    %cst_22 = arith.constant 0.000000e+00 : f32
    %106 = vector.broadcast %105 : f32 to vector<8x8xf32>
    %107 = vector.broadcast %cst_22 : f32 to vector<8x8xf32>
    %108 = arith.select %103, %106, %107 : vector<8x8xi1>, vector<8x8xf32>
    %109 = arith.addf %101, %108 : vector<8x8xf32>
    %c4_i32_23 = arith.constant 4 : i32
    %110 = vector.broadcast %c4_i32_23 : i32 to vector<8x8xi32>
    %111 = arith.cmpi eq, %7, %110 : vector<8x8xi32>
    %112 = vector.extract_strided_slice %9 {offsets = [4, 1], sizes = [1, 1], strides = [1, 1]} : vector<8x4xf32> to vector<1x1xf32>
    %113 = vector.extract %112[0, 0] : f32 from vector<1x1xf32>
    %cst_24 = arith.constant 0.000000e+00 : f32
    %114 = vector.broadcast %113 : f32 to vector<8x8xf32>
    %115 = vector.broadcast %cst_24 : f32 to vector<8x8xf32>
    %116 = arith.select %111, %114, %115 : vector<8x8xi1>, vector<8x8xf32>
    %117 = arith.addf %109, %116 : vector<8x8xf32>
    %c5_i32_25 = arith.constant 5 : i32
    %118 = vector.broadcast %c5_i32_25 : i32 to vector<8x8xi32>
    %119 = arith.cmpi eq, %7, %118 : vector<8x8xi32>
    %120 = vector.extract_strided_slice %9 {offsets = [5, 1], sizes = [1, 1], strides = [1, 1]} : vector<8x4xf32> to vector<1x1xf32>
    %121 = vector.extract %120[0, 0] : f32 from vector<1x1xf32>
    %cst_26 = arith.constant 0.000000e+00 : f32
    %122 = vector.broadcast %121 : f32 to vector<8x8xf32>
    %123 = vector.broadcast %cst_26 : f32 to vector<8x8xf32>
    %124 = arith.select %119, %122, %123 : vector<8x8xi1>, vector<8x8xf32>
    %125 = arith.addf %117, %124 : vector<8x8xf32>
    %c6_i32_27 = arith.constant 6 : i32
    %126 = vector.broadcast %c6_i32_27 : i32 to vector<8x8xi32>
    %127 = arith.cmpi eq, %7, %126 : vector<8x8xi32>
    %128 = vector.extract_strided_slice %9 {offsets = [6, 1], sizes = [1, 1], strides = [1, 1]} : vector<8x4xf32> to vector<1x1xf32>
    %129 = vector.extract %128[0, 0] : f32 from vector<1x1xf32>
    %cst_28 = arith.constant 0.000000e+00 : f32
    %130 = vector.broadcast %129 : f32 to vector<8x8xf32>
    %131 = vector.broadcast %cst_28 : f32 to vector<8x8xf32>
    %132 = arith.select %127, %130, %131 : vector<8x8xi1>, vector<8x8xf32>
    %133 = arith.addf %125, %132 : vector<8x8xf32>
    %c7_i32_29 = arith.constant 7 : i32
    %134 = vector.broadcast %c7_i32_29 : i32 to vector<8x8xi32>
    %135 = arith.cmpi eq, %7, %134 : vector<8x8xi32>
    %136 = vector.extract_strided_slice %9 {offsets = [7, 1], sizes = [1, 1], strides = [1, 1]} : vector<8x4xf32> to vector<1x1xf32>
    %137 = vector.extract %136[0, 0] : f32 from vector<1x1xf32>
    %cst_30 = arith.constant 0.000000e+00 : f32
    %138 = vector.broadcast %137 : f32 to vector<8x8xf32>
    %139 = vector.broadcast %cst_30 : f32 to vector<8x8xf32>
    %140 = arith.select %135, %138, %139 : vector<8x8xi1>, vector<8x8xf32>
    %141 = arith.addf %133, %140 : vector<8x8xf32>
    %cst_31 = arith.constant -1.000000e+30 : f32
    %142 = vector.broadcast %cst_31 : f32 to vector<8x8xf32>
    %143 = arith.select %8, %142, %141 : vector<8x8xi1>, vector<8x8xf32>
    %cst_32 = arith.constant 0.000000e+00 : f32
    %144 = vector.broadcast %cst_32 : f32 to vector<8x8xf32>
    %c0_i32_33 = arith.constant 0 : i32
    %145 = vector.broadcast %c0_i32_33 : i32 to vector<8x8xi32>
    %146 = arith.cmpi eq, %7, %145 : vector<8x8xi32>
    %147 = vector.extract_strided_slice %9 {offsets = [0, 2], sizes = [1, 1], strides = [1, 1]} : vector<8x4xf32> to vector<1x1xf32>
    %148 = vector.extract %147[0, 0] : f32 from vector<1x1xf32>
    %cst_34 = arith.constant 0.000000e+00 : f32
    %149 = vector.broadcast %148 : f32 to vector<8x8xf32>
    %150 = vector.broadcast %cst_34 : f32 to vector<8x8xf32>
    %151 = arith.select %146, %149, %150 : vector<8x8xi1>, vector<8x8xf32>
    %152 = arith.addf %144, %151 : vector<8x8xf32>
    %c1_i32_35 = arith.constant 1 : i32
    %153 = vector.broadcast %c1_i32_35 : i32 to vector<8x8xi32>
    %154 = arith.cmpi eq, %7, %153 : vector<8x8xi32>
    %155 = vector.extract_strided_slice %9 {offsets = [1, 2], sizes = [1, 1], strides = [1, 1]} : vector<8x4xf32> to vector<1x1xf32>
    %156 = vector.extract %155[0, 0] : f32 from vector<1x1xf32>
    %cst_36 = arith.constant 0.000000e+00 : f32
    %157 = vector.broadcast %156 : f32 to vector<8x8xf32>
    %158 = vector.broadcast %cst_36 : f32 to vector<8x8xf32>
    %159 = arith.select %154, %157, %158 : vector<8x8xi1>, vector<8x8xf32>
    %160 = arith.addf %152, %159 : vector<8x8xf32>
    %c2_i32_37 = arith.constant 2 : i32
    %161 = vector.broadcast %c2_i32_37 : i32 to vector<8x8xi32>
    %162 = arith.cmpi eq, %7, %161 : vector<8x8xi32>
    %163 = vector.extract_strided_slice %9 {offsets = [2, 2], sizes = [1, 1], strides = [1, 1]} : vector<8x4xf32> to vector<1x1xf32>
    %164 = vector.extract %163[0, 0] : f32 from vector<1x1xf32>
    %cst_38 = arith.constant 0.000000e+00 : f32
    %165 = vector.broadcast %164 : f32 to vector<8x8xf32>
    %166 = vector.broadcast %cst_38 : f32 to vector<8x8xf32>
    %167 = arith.select %162, %165, %166 : vector<8x8xi1>, vector<8x8xf32>
    %168 = arith.addf %160, %167 : vector<8x8xf32>
    %c3_i32_39 = arith.constant 3 : i32
    %169 = vector.broadcast %c3_i32_39 : i32 to vector<8x8xi32>
    %170 = arith.cmpi eq, %7, %169 : vector<8x8xi32>
    %171 = vector.extract_strided_slice %9 {offsets = [3, 2], sizes = [1, 1], strides = [1, 1]} : vector<8x4xf32> to vector<1x1xf32>
    %172 = vector.extract %171[0, 0] : f32 from vector<1x1xf32>
    %cst_40 = arith.constant 0.000000e+00 : f32
    %173 = vector.broadcast %172 : f32 to vector<8x8xf32>
    %174 = vector.broadcast %cst_40 : f32 to vector<8x8xf32>
    %175 = arith.select %170, %173, %174 : vector<8x8xi1>, vector<8x8xf32>
    %176 = arith.addf %168, %175 : vector<8x8xf32>
    %c4_i32_41 = arith.constant 4 : i32
    %177 = vector.broadcast %c4_i32_41 : i32 to vector<8x8xi32>
    %178 = arith.cmpi eq, %7, %177 : vector<8x8xi32>
    %179 = vector.extract_strided_slice %9 {offsets = [4, 2], sizes = [1, 1], strides = [1, 1]} : vector<8x4xf32> to vector<1x1xf32>
    %180 = vector.extract %179[0, 0] : f32 from vector<1x1xf32>
    %cst_42 = arith.constant 0.000000e+00 : f32
    %181 = vector.broadcast %180 : f32 to vector<8x8xf32>
    %182 = vector.broadcast %cst_42 : f32 to vector<8x8xf32>
    %183 = arith.select %178, %181, %182 : vector<8x8xi1>, vector<8x8xf32>
    %184 = arith.addf %176, %183 : vector<8x8xf32>
    %c5_i32_43 = arith.constant 5 : i32
    %185 = vector.broadcast %c5_i32_43 : i32 to vector<8x8xi32>
    %186 = arith.cmpi eq, %7, %185 : vector<8x8xi32>
    %187 = vector.extract_strided_slice %9 {offsets = [5, 2], sizes = [1, 1], strides = [1, 1]} : vector<8x4xf32> to vector<1x1xf32>
    %188 = vector.extract %187[0, 0] : f32 from vector<1x1xf32>
    %cst_44 = arith.constant 0.000000e+00 : f32
    %189 = vector.broadcast %188 : f32 to vector<8x8xf32>
    %190 = vector.broadcast %cst_44 : f32 to vector<8x8xf32>
    %191 = arith.select %186, %189, %190 : vector<8x8xi1>, vector<8x8xf32>
    %192 = arith.addf %184, %191 : vector<8x8xf32>
    %c6_i32_45 = arith.constant 6 : i32
    %193 = vector.broadcast %c6_i32_45 : i32 to vector<8x8xi32>
    %194 = arith.cmpi eq, %7, %193 : vector<8x8xi32>
    %195 = vector.extract_strided_slice %9 {offsets = [6, 2], sizes = [1, 1], strides = [1, 1]} : vector<8x4xf32> to vector<1x1xf32>
    %196 = vector.extract %195[0, 0] : f32 from vector<1x1xf32>
    %cst_46 = arith.constant 0.000000e+00 : f32
    %197 = vector.broadcast %196 : f32 to vector<8x8xf32>
    %198 = vector.broadcast %cst_46 : f32 to vector<8x8xf32>
    %199 = arith.select %194, %197, %198 : vector<8x8xi1>, vector<8x8xf32>
    %200 = arith.addf %192, %199 : vector<8x8xf32>
    %c7_i32_47 = arith.constant 7 : i32
    %201 = vector.broadcast %c7_i32_47 : i32 to vector<8x8xi32>
    %202 = arith.cmpi eq, %7, %201 : vector<8x8xi32>
    %203 = vector.extract_strided_slice %9 {offsets = [7, 2], sizes = [1, 1], strides = [1, 1]} : vector<8x4xf32> to vector<1x1xf32>
    %204 = vector.extract %203[0, 0] : f32 from vector<1x1xf32>
    %cst_48 = arith.constant 0.000000e+00 : f32
    %205 = vector.broadcast %204 : f32 to vector<8x8xf32>
    %206 = vector.broadcast %cst_48 : f32 to vector<8x8xf32>
    %207 = arith.select %202, %205, %206 : vector<8x8xi1>, vector<8x8xf32>
    %208 = arith.addf %200, %207 : vector<8x8xf32>
    %cst_49 = arith.constant -1.000000e+30 : f32
    %209 = vector.broadcast %cst_49 : f32 to vector<8x8xf32>
    %210 = arith.select %8, %209, %208 : vector<8x8xi1>, vector<8x8xf32>
    %cst_50 = arith.constant 0.000000e+00 : f32
    %211 = vector.broadcast %cst_50 : f32 to vector<8x8xf32>
    %c0_i32_51 = arith.constant 0 : i32
    %212 = vector.broadcast %c0_i32_51 : i32 to vector<8x8xi32>
    %213 = arith.cmpi eq, %7, %212 : vector<8x8xi32>
    %214 = vector.extract_strided_slice %9 {offsets = [0, 3], sizes = [1, 1], strides = [1, 1]} : vector<8x4xf32> to vector<1x1xf32>
    %215 = vector.extract %214[0, 0] : f32 from vector<1x1xf32>
    %cst_52 = arith.constant 0.000000e+00 : f32
    %216 = vector.broadcast %215 : f32 to vector<8x8xf32>
    %217 = vector.broadcast %cst_52 : f32 to vector<8x8xf32>
    %218 = arith.select %213, %216, %217 : vector<8x8xi1>, vector<8x8xf32>
    %219 = arith.addf %211, %218 : vector<8x8xf32>
    %c1_i32_53 = arith.constant 1 : i32
    %220 = vector.broadcast %c1_i32_53 : i32 to vector<8x8xi32>
    %221 = arith.cmpi eq, %7, %220 : vector<8x8xi32>
    %222 = vector.extract_strided_slice %9 {offsets = [1, 3], sizes = [1, 1], strides = [1, 1]} : vector<8x4xf32> to vector<1x1xf32>
    %223 = vector.extract %222[0, 0] : f32 from vector<1x1xf32>
    %cst_54 = arith.constant 0.000000e+00 : f32
    %224 = vector.broadcast %223 : f32 to vector<8x8xf32>
    %225 = vector.broadcast %cst_54 : f32 to vector<8x8xf32>
    %226 = arith.select %221, %224, %225 : vector<8x8xi1>, vector<8x8xf32>
    %227 = arith.addf %219, %226 : vector<8x8xf32>
    %c2_i32_55 = arith.constant 2 : i32
    %228 = vector.broadcast %c2_i32_55 : i32 to vector<8x8xi32>
    %229 = arith.cmpi eq, %7, %228 : vector<8x8xi32>
    %230 = vector.extract_strided_slice %9 {offsets = [2, 3], sizes = [1, 1], strides = [1, 1]} : vector<8x4xf32> to vector<1x1xf32>
    %231 = vector.extract %230[0, 0] : f32 from vector<1x1xf32>
    %cst_56 = arith.constant 0.000000e+00 : f32
    %232 = vector.broadcast %231 : f32 to vector<8x8xf32>
    %233 = vector.broadcast %cst_56 : f32 to vector<8x8xf32>
    %234 = arith.select %229, %232, %233 : vector<8x8xi1>, vector<8x8xf32>
    %235 = arith.addf %227, %234 : vector<8x8xf32>
    %c3_i32_57 = arith.constant 3 : i32
    %236 = vector.broadcast %c3_i32_57 : i32 to vector<8x8xi32>
    %237 = arith.cmpi eq, %7, %236 : vector<8x8xi32>
    %238 = vector.extract_strided_slice %9 {offsets = [3, 3], sizes = [1, 1], strides = [1, 1]} : vector<8x4xf32> to vector<1x1xf32>
    %239 = vector.extract %238[0, 0] : f32 from vector<1x1xf32>
    %cst_58 = arith.constant 0.000000e+00 : f32
    %240 = vector.broadcast %239 : f32 to vector<8x8xf32>
    %241 = vector.broadcast %cst_58 : f32 to vector<8x8xf32>
    %242 = arith.select %237, %240, %241 : vector<8x8xi1>, vector<8x8xf32>
    %243 = arith.addf %235, %242 : vector<8x8xf32>
    %c4_i32_59 = arith.constant 4 : i32
    %244 = vector.broadcast %c4_i32_59 : i32 to vector<8x8xi32>
    %245 = arith.cmpi eq, %7, %244 : vector<8x8xi32>
    %246 = vector.extract_strided_slice %9 {offsets = [4, 3], sizes = [1, 1], strides = [1, 1]} : vector<8x4xf32> to vector<1x1xf32>
    %247 = vector.extract %246[0, 0] : f32 from vector<1x1xf32>
    %cst_60 = arith.constant 0.000000e+00 : f32
    %248 = vector.broadcast %247 : f32 to vector<8x8xf32>
    %249 = vector.broadcast %cst_60 : f32 to vector<8x8xf32>
    %250 = arith.select %245, %248, %249 : vector<8x8xi1>, vector<8x8xf32>
    %251 = arith.addf %243, %250 : vector<8x8xf32>
    %c5_i32_61 = arith.constant 5 : i32
    %252 = vector.broadcast %c5_i32_61 : i32 to vector<8x8xi32>
    %253 = arith.cmpi eq, %7, %252 : vector<8x8xi32>
    %254 = vector.extract_strided_slice %9 {offsets = [5, 3], sizes = [1, 1], strides = [1, 1]} : vector<8x4xf32> to vector<1x1xf32>
    %255 = vector.extract %254[0, 0] : f32 from vector<1x1xf32>
    %cst_62 = arith.constant 0.000000e+00 : f32
    %256 = vector.broadcast %255 : f32 to vector<8x8xf32>
    %257 = vector.broadcast %cst_62 : f32 to vector<8x8xf32>
    %258 = arith.select %253, %256, %257 : vector<8x8xi1>, vector<8x8xf32>
    %259 = arith.addf %251, %258 : vector<8x8xf32>
    %c6_i32_63 = arith.constant 6 : i32
    %260 = vector.broadcast %c6_i32_63 : i32 to vector<8x8xi32>
    %261 = arith.cmpi eq, %7, %260 : vector<8x8xi32>
    %262 = vector.extract_strided_slice %9 {offsets = [6, 3], sizes = [1, 1], strides = [1, 1]} : vector<8x4xf32> to vector<1x1xf32>
    %263 = vector.extract %262[0, 0] : f32 from vector<1x1xf32>
    %cst_64 = arith.constant 0.000000e+00 : f32
    %264 = vector.broadcast %263 : f32 to vector<8x8xf32>
    %265 = vector.broadcast %cst_64 : f32 to vector<8x8xf32>
    %266 = arith.select %261, %264, %265 : vector<8x8xi1>, vector<8x8xf32>
    %267 = arith.addf %259, %266 : vector<8x8xf32>
    %c7_i32_65 = arith.constant 7 : i32
    %268 = vector.broadcast %c7_i32_65 : i32 to vector<8x8xi32>
    %269 = arith.cmpi eq, %7, %268 : vector<8x8xi32>
    %270 = vector.extract_strided_slice %9 {offsets = [7, 3], sizes = [1, 1], strides = [1, 1]} : vector<8x4xf32> to vector<1x1xf32>
    %271 = vector.extract %270[0, 0] : f32 from vector<1x1xf32>
    %cst_66 = arith.constant 0.000000e+00 : f32
    %272 = vector.broadcast %271 : f32 to vector<8x8xf32>
    %273 = vector.broadcast %cst_66 : f32 to vector<8x8xf32>
    %274 = arith.select %269, %272, %273 : vector<8x8xi1>, vector<8x8xf32>
    %275 = arith.addf %267, %274 : vector<8x8xf32>
    %cst_67 = arith.constant -1.000000e+30 : f32
    %276 = vector.broadcast %cst_67 : f32 to vector<8x8xf32>
    %277 = arith.select %8, %276, %275 : vector<8x8xi1>, vector<8x8xf32>
    %278 = vector.shape_cast %76 : vector<8x8xf32> to vector<1x8x8xf32>
    %279 = vector.shape_cast %143 : vector<8x8xf32> to vector<1x8x8xf32>
    %280 = vector.shape_cast %210 : vector<8x8xf32> to vector<1x8x8xf32>
    %281 = vector.shape_cast %277 : vector<8x8xf32> to vector<1x8x8xf32>
    %282 = tpu.concatenate %278, %279, %280, %281 in 0 : vector<1x8x8xf32>, vector<1x8x8xf32>, vector<1x8x8xf32>, vector<1x8x8xf32> -> vector<4x8x8xf32>
    %c0_68 = arith.constant 0 : index
    %c0_69 = arith.constant 0 : index
    %283 = vector.load %arg3[%c0_68, %c0_69] : memref<1x32xf32, #tpu.memory_space<vmem>>, vector<1x32xf32>
    %c0_70 = arith.constant 0 : index
    %c0_71 = arith.constant 0 : index
    %284 = vector.load %arg4[%c0_70, %c0_71] : memref<1x32xf32, #tpu.memory_space<vmem>>, vector<1x32xf32>
    %cst_72 = arith.constant dense<0.000000e+00> : vector<8xf32>
    %285 = vector.multi_reduction <add>, %1, %cst_72 [1] : vector<8x32xf32> to vector<8xf32>
    %286 = vector.shape_cast %285 : vector<8xf32> to vector<8x1xf32>
    %cst_73 = arith.constant 3.200000e+01 : f32
    %287 = vector.broadcast %cst_73 : f32 to vector<8x1xf32>
    %288 = arith.divf %286, %287 : vector<8x1xf32>
    %289 = vector.broadcast %288 : vector<8x1xf32> to vector<8x32xf32>
    %290 = arith.subf %1, %289 : vector<8x32xf32>
    %291 = arith.mulf %290, %290 : vector<8x32xf32>
    %cst_74 = arith.constant dense<0.000000e+00> : vector<8xf32>
    %292 = vector.multi_reduction <add>, %291, %cst_74 [1] : vector<8x32xf32> to vector<8xf32>
    %293 = vector.shape_cast %292 : vector<8xf32> to vector<8x1xf32>
    %cst_75 = arith.constant 3.200000e+01 : f32
    %294 = vector.broadcast %cst_75 : f32 to vector<8x1xf32>
    %295 = arith.divf %293, %294 : vector<8x1xf32>
    %296 = vector.broadcast %288 : vector<8x1xf32> to vector<8x32xf32>
    %297 = arith.subf %1, %296 : vector<8x32xf32>
    %cst_76 = arith.constant 9.99999974E-6 : f32
    %298 = vector.broadcast %cst_76 : f32 to vector<8x1xf32>
    %299 = arith.addf %295, %298 : vector<8x1xf32>
    %300 = math.rsqrt %299 : vector<8x1xf32>
    %301 = vector.broadcast %300 : vector<8x1xf32> to vector<8x32xf32>
    %302 = arith.mulf %297, %301 : vector<8x32xf32>
    %303 = vector.broadcast %283 : vector<1x32xf32> to vector<8x32xf32>
    %304 = arith.mulf %302, %303 : vector<8x32xf32>
    %305 = vector.broadcast %284 : vector<1x32xf32> to vector<8x32xf32>
    %306 = arith.addf %304, %305 : vector<8x32xf32>
    %c0_77 = arith.constant 0 : index
    %c0_78 = arith.constant 0 : index
    %307 = vector.load %arg5[%c0_77, %c0_78] : memref<32x96xf32, #tpu.memory_space<vmem>>, vector<32x96xf32>
    %cst_79 = arith.constant dense<0.000000e+00> : vector<8x96xf32>
    %308 = tpu.matmul %306, %307, %cst_79 {dimension_numbers = #tpu.dot_dimension_numbers<[1], [0], [0], [1], [0, 0, 1, 1], [], []>} : vector<8x32xf32>, vector<32x96xf32>, vector<8x96xf32> -> vector<8x96xf32>
    %c0_80 = arith.constant 0 : index
    %c0_81 = arith.constant 0 : index
    %309 = vector.load %arg6[%c0_80, %c0_81] : memref<1x96xf32, #tpu.memory_space<vmem>>, vector<1x96xf32>
    %310 = vector.broadcast %309 : vector<1x96xf32> to vector<8x96xf32>
    %311 = arith.addf %308, %310 : vector<8x96xf32>
    %312 = vector.extract_strided_slice %311 {offsets = [0, 0], sizes = [8, 32], strides = [1, 1]} : vector<8x96xf32> to vector<8x32xf32>
    %313 = vector.extract_strided_slice %311 {offsets = [0, 32], sizes = [8, 32], strides = [1, 1]} : vector<8x96xf32> to vector<8x32xf32>
    %314 = vector.extract_strided_slice %311 {offsets = [0, 64], sizes = [8, 32], strides = [1, 1]} : vector<8x96xf32> to vector<8x32xf32>
    %315 = vector.extract_strided_slice %312 {offsets = [0, 0], sizes = [8, 8], strides = [1, 1]} : vector<8x32xf32> to vector<8x8xf32>
    %316 = vector.extract_strided_slice %312 {offsets = [0, 8], sizes = [8, 8], strides = [1, 1]} : vector<8x32xf32> to vector<8x8xf32>
    %317 = vector.extract_strided_slice %312 {offsets = [0, 16], sizes = [8, 8], strides = [1, 1]} : vector<8x32xf32> to vector<8x8xf32>
    %318 = vector.extract_strided_slice %312 {offsets = [0, 24], sizes = [8, 8], strides = [1, 1]} : vector<8x32xf32> to vector<8x8xf32>
    %319 = vector.shape_cast %315 : vector<8x8xf32> to vector<1x8x8xf32>
    %320 = vector.shape_cast %316 : vector<8x8xf32> to vector<1x8x8xf32>
    %321 = vector.shape_cast %317 : vector<8x8xf32> to vector<1x8x8xf32>
    %322 = vector.shape_cast %318 : vector<8x8xf32> to vector<1x8x8xf32>
    %323 = tpu.concatenate %319, %320, %321, %322 in 0 : vector<1x8x8xf32>, vector<1x8x8xf32>, vector<1x8x8xf32>, vector<1x8x8xf32> -> vector<4x8x8xf32>
    %324 = vector.extract_strided_slice %313 {offsets = [0, 0], sizes = [8, 8], strides = [1, 1]} : vector<8x32xf32> to vector<8x8xf32>
    %325 = vector.extract_strided_slice %313 {offsets = [0, 8], sizes = [8, 8], strides = [1, 1]} : vector<8x32xf32> to vector<8x8xf32>
    %326 = vector.extract_strided_slice %313 {offsets = [0, 16], sizes = [8, 8], strides = [1, 1]} : vector<8x32xf32> to vector<8x8xf32>
    %327 = vector.extract_strided_slice %313 {offsets = [0, 24], sizes = [8, 8], strides = [1, 1]} : vector<8x32xf32> to vector<8x8xf32>
    %328 = vector.shape_cast %324 : vector<8x8xf32> to vector<1x8x8xf32>
    %329 = vector.shape_cast %325 : vector<8x8xf32> to vector<1x8x8xf32>
    %330 = vector.shape_cast %326 : vector<8x8xf32> to vector<1x8x8xf32>
    %331 = vector.shape_cast %327 : vector<8x8xf32> to vector<1x8x8xf32>
    %332 = tpu.concatenate %328, %329, %330, %331 in 0 : vector<1x8x8xf32>, vector<1x8x8xf32>, vector<1x8x8xf32>, vector<1x8x8xf32> -> vector<4x8x8xf32>
    %333 = vector.extract_strided_slice %314 {offsets = [0, 0], sizes = [8, 8], strides = [1, 1]} : vector<8x32xf32> to vector<8x8xf32>
    %334 = vector.extract_strided_slice %314 {offsets = [0, 8], sizes = [8, 8], strides = [1, 1]} : vector<8x32xf32> to vector<8x8xf32>
    %335 = vector.extract_strided_slice %314 {offsets = [0, 16], sizes = [8, 8], strides = [1, 1]} : vector<8x32xf32> to vector<8x8xf32>
    %336 = vector.extract_strided_slice %314 {offsets = [0, 24], sizes = [8, 8], strides = [1, 1]} : vector<8x32xf32> to vector<8x8xf32>
    %337 = vector.shape_cast %333 : vector<8x8xf32> to vector<1x8x8xf32>
    %338 = vector.shape_cast %334 : vector<8x8xf32> to vector<1x8x8xf32>
    %339 = vector.shape_cast %335 : vector<8x8xf32> to vector<1x8x8xf32>
    %340 = vector.shape_cast %336 : vector<8x8xf32> to vector<1x8x8xf32>
    %341 = tpu.concatenate %337, %338, %339, %340 in 0 : vector<1x8x8xf32>, vector<1x8x8xf32>, vector<1x8x8xf32>, vector<1x8x8xf32> -> vector<4x8x8xf32>
    "tpu.trace_start"() <{level = 10 : i32, message = "hld,hmd->hlm"}> : () -> ()
    %cst_82 = arith.constant dense<0.000000e+00> : vector<4x8x8xf32>
    %342 = tpu.matmul %323, %332, %cst_82 {dimension_numbers = #tpu.dot_dimension_numbers<[2], [2], [1], [1], [0, 0, 0, 1, 1, 1], [0], [0]>} : vector<4x8x8xf32>, vector<4x8x8xf32>, vector<4x8x8xf32> -> vector<4x8x8xf32>
    "tpu.trace_stop"() : () -> ()
    %343 = arith.addf %342, %282 : vector<4x8x8xf32>
    %cst_83 = arith.constant 0.353553385 : f32
    %344 = vector.broadcast %cst_83 : f32 to vector<4x8x8xf32>
    %345 = arith.mulf %343, %344 : vector<4x8x8xf32>
    %cst_84 = arith.constant dense<0xFF800000> : vector<4x8xf32>
    %346 = vector.multi_reduction <maximumf>, %345, %cst_84 [2] : vector<4x8x8xf32> to vector<4x8xf32>
    %347 = vector.shape_cast %346 : vector<4x8xf32> to vector<4x8x1xf32>
    %348 = vector.broadcast %347 : vector<4x8x1xf32> to vector<4x8x8xf32>
    %349 = arith.subf %345, %348 : vector<4x8x8xf32>
    %350 = math.exp %349 : vector<4x8x8xf32>
    %cst_85 = arith.constant dense<0.000000e+00> : vector<4x8xf32>
    %351 = vector.multi_reduction <add>, %350, %cst_85 [2] : vector<4x8x8xf32> to vector<4x8xf32>
    %352 = vector.shape_cast %351 : vector<4x8xf32> to vector<4x8x1xf32>
    %353 = tpu.reciprocal %352 {approx = true} : vector<4x8x1xf32> -> vector<4x8x1xf32>
    %354 = vector.broadcast %353 : vector<4x8x1xf32> to vector<4x8x8xf32>
    %355 = arith.mulf %350, %354 : vector<4x8x8xf32>
    "tpu.trace_start"() <{level = 10 : i32, message = "hlm,hmd->hld"}> : () -> ()
    %cst_86 = arith.constant dense<0.000000e+00> : vector<4x8x8xf32>
    %356 = tpu.matmul %355, %341, %cst_86 {dimension_numbers = #tpu.dot_dimension_numbers<[2], [1], [1], [2], [0, 0, 0, 1, 1, 2], [0], [0]>} : vector<4x8x8xf32>, vector<4x8x8xf32>, vector<4x8x8xf32> -> vector<4x8x8xf32>
    "tpu.trace_stop"() : () -> ()
    %357 = vector.extract_strided_slice %356 {offsets = [0, 0, 0], sizes = [1, 8, 8], strides = [1, 1, 1]} : vector<4x8x8xf32> to vector<1x8x8xf32>
    %358 = vector.shape_cast %357 : vector<1x8x8xf32> to vector<8x8xf32>
    %359 = vector.extract_strided_slice %356 {offsets = [1, 0, 0], sizes = [1, 8, 8], strides = [1, 1, 1]} : vector<4x8x8xf32> to vector<1x8x8xf32>
    %360 = vector.shape_cast %359 : vector<1x8x8xf32> to vector<8x8xf32>
    %361 = vector.extract_strided_slice %356 {offsets = [2, 0, 0], sizes = [1, 8, 8], strides = [1, 1, 1]} : vector<4x8x8xf32> to vector<1x8x8xf32>
    %362 = vector.shape_cast %361 : vector<1x8x8xf32> to vector<8x8xf32>
    %363 = vector.extract_strided_slice %356 {offsets = [3, 0, 0], sizes = [1, 8, 8], strides = [1, 1, 1]} : vector<4x8x8xf32> to vector<1x8x8xf32>
    %364 = vector.shape_cast %363 : vector<1x8x8xf32> to vector<8x8xf32>
    %365 = tpu.concatenate %358, %360, %362, %364 in 1 : vector<8x8xf32>, vector<8x8xf32>, vector<8x8xf32>, vector<8x8xf32> -> vector<8x32xf32>
    %c0_87 = arith.constant 0 : index
    %c0_88 = arith.constant 0 : index
    %366 = vector.load %arg7[%c0_87, %c0_88] : memref<32x32xf32, #tpu.memory_space<vmem>>, vector<32x32xf32>
    %cst_89 = arith.constant dense<0.000000e+00> : vector<8x32xf32>
    %367 = tpu.matmul %365, %366, %cst_89 {dimension_numbers = #tpu.dot_dimension_numbers<[1], [0], [0], [1], [0, 0, 1, 1], [], []>} : vector<8x32xf32>, vector<32x32xf32>, vector<8x32xf32> -> vector<8x32xf32>
    %c0_90 = arith.constant 0 : index
    %c0_91 = arith.constant 0 : index
    %368 = vector.load %arg8[%c0_90, %c0_91] : memref<1x32xf32, #tpu.memory_space<vmem>>, vector<1x32xf32>
    %369 = vector.broadcast %368 : vector<1x32xf32> to vector<8x32xf32>
    %370 = arith.addf %367, %369 : vector<8x32xf32>
    %371 = arith.addf %1, %370 : vector<8x32xf32>
    %c0_92 = arith.constant 0 : index
    %c0_93 = arith.constant 0 : index
    %372 = vector.load %arg9[%c0_92, %c0_93] : memref<1x32xf32, #tpu.memory_space<vmem>>, vector<1x32xf32>
    %c0_94 = arith.constant 0 : index
    %c0_95 = arith.constant 0 : index
    %373 = vector.load %arg10[%c0_94, %c0_95] : memref<1x32xf32, #tpu.memory_space<vmem>>, vector<1x32xf32>
    %cst_96 = arith.constant dense<0.000000e+00> : vector<8xf32>
    %374 = vector.multi_reduction <add>, %371, %cst_96 [1] : vector<8x32xf32> to vector<8xf32>
    %375 = vector.shape_cast %374 : vector<8xf32> to vector<8x1xf32>
    %cst_97 = arith.constant 3.200000e+01 : f32
    %376 = vector.broadcast %cst_97 : f32 to vector<8x1xf32>
    %377 = arith.divf %375, %376 : vector<8x1xf32>
    %378 = vector.broadcast %377 : vector<8x1xf32> to vector<8x32xf32>
    %379 = arith.subf %371, %378 : vector<8x32xf32>
    %380 = arith.mulf %379, %379 : vector<8x32xf32>
    %cst_98 = arith.constant dense<0.000000e+00> : vector<8xf32>
    %381 = vector.multi_reduction <add>, %380, %cst_98 [1] : vector<8x32xf32> to vector<8xf32>
    %382 = vector.shape_cast %381 : vector<8xf32> to vector<8x1xf32>
    %cst_99 = arith.constant 3.200000e+01 : f32
    %383 = vector.broadcast %cst_99 : f32 to vector<8x1xf32>
    %384 = arith.divf %382, %383 : vector<8x1xf32>
    %385 = vector.broadcast %377 : vector<8x1xf32> to vector<8x32xf32>
    %386 = arith.subf %371, %385 : vector<8x32xf32>
    %cst_100 = arith.constant 9.99999974E-6 : f32
    %387 = vector.broadcast %cst_100 : f32 to vector<8x1xf32>
    %388 = arith.addf %384, %387 : vector<8x1xf32>
    %389 = math.rsqrt %388 : vector<8x1xf32>
    %390 = vector.broadcast %389 : vector<8x1xf32> to vector<8x32xf32>
    %391 = arith.mulf %386, %390 : vector<8x32xf32>
    %392 = vector.broadcast %372 : vector<1x32xf32> to vector<8x32xf32>
    %393 = arith.mulf %391, %392 : vector<8x32xf32>
    %394 = vector.broadcast %373 : vector<1x32xf32> to vector<8x32xf32>
    %395 = arith.addf %393, %394 : vector<8x32xf32>
    %c0_101 = arith.constant 0 : index
    %c0_102 = arith.constant 0 : index
    %396 = vector.load %arg11[%c0_101, %c0_102] : memref<32x64xf32, #tpu.memory_space<vmem>>, vector<32x64xf32>
    %cst_103 = arith.constant dense<0.000000e+00> : vector<8x64xf32>
    %397 = tpu.matmul %395, %396, %cst_103 {dimension_numbers = #tpu.dot_dimension_numbers<[1], [0], [0], [1], [0, 0, 1, 1], [], []>} : vector<8x32xf32>, vector<32x64xf32>, vector<8x64xf32> -> vector<8x64xf32>
    %c0_104 = arith.constant 0 : index
    %c0_105 = arith.constant 0 : index
    %398 = vector.load %arg12[%c0_104, %c0_105] : memref<1x64xf32, #tpu.memory_space<vmem>>, vector<1x64xf32>
    %399 = vector.broadcast %398 : vector<1x64xf32> to vector<8x64xf32>
    %400 = arith.addf %397, %399 : vector<8x64xf32>
    %cst_106 = arith.constant 5.000000e-01 : f32
    %401 = vector.broadcast %cst_106 : f32 to vector<8x64xf32>
    %402 = arith.mulf %401, %400 : vector<8x64xf32>
    %cst_107 = arith.constant 4.471500e-02 : f32
    %403 = vector.broadcast %cst_107 : f32 to vector<8x64xf32>
    %404 = arith.mulf %403, %400 : vector<8x64xf32>
    %405 = arith.mulf %404, %400 : vector<8x64xf32>
    %406 = arith.mulf %405, %400 : vector<8x64xf32>
    %407 = arith.addf %400, %406 : vector<8x64xf32>
    %cst_108 = arith.constant 0.797884583 : f32
    %408 = vector.broadcast %cst_108 : f32 to vector<8x64xf32>
    %409 = arith.mulf %408, %407 : vector<8x64xf32>
    %410 = math.tanh %409 : vector<8x64xf32>
    %cst_109 = arith.constant 1.000000e+00 : f32
    %411 = vector.broadcast %cst_109 : f32 to vector<8x64xf32>
    %412 = arith.addf %411, %410 : vector<8x64xf32>
    %413 = arith.mulf %402, %412 : vector<8x64xf32>
    %c0_110 = arith.constant 0 : index
    %c0_111 = arith.constant 0 : index
    %414 = vector.load %arg13[%c0_110, %c0_111] : memref<64x32xf32, #tpu.memory_space<vmem>>, vector<64x32xf32>
    %cst_112 = arith.constant dense<0.000000e+00> : vector<8x32xf32>
    %415 = tpu.matmul %413, %414, %cst_112 {dimension_numbers = #tpu.dot_dimension_numbers<[1], [0], [0], [1], [0, 0, 1, 1], [], []>} : vector<8x64xf32>, vector<64x32xf32>, vector<8x32xf32> -> vector<8x32xf32>
    %c0_113 = arith.constant 0 : index
    %c0_114 = arith.constant 0 : index
    %416 = vector.load %arg14[%c0_113, %c0_114] : memref<1x32xf32, #tpu.memory_space<vmem>>, vector<1x32xf32>
    %417 = vector.broadcast %416 : vector<1x32xf32> to vector<8x32xf32>
    %418 = arith.addf %415, %417 : vector<8x32xf32>
    %419 = arith.addf %371, %418 : vector<8x32xf32>
    %c0_115 = arith.constant 0 : index
    %c0_116 = arith.constant 0 : index
    %c0_117 = arith.constant 0 : index
    %420 = vector.load %arg17[%c0_115, %c0_116, %c0_117] : memref<1x8x32xf32, #tpu.memory_space<vmem>>, vector<1x8x32xf32>
    %421 = vector.shape_cast %420 : vector<1x8x32xf32> to vector<8x32xf32>
    %422 = vector.shape_cast %419 : vector<8x32xf32> to vector<1x8x32xf32>
    tpu.vector_store %arg17[%c0_115, %c0_116, %c0_117], %422 {strides = array<i32>} : memref<1x8x32xf32, #tpu.memory_space<vmem>>, vector<1x8x32xf32>,
    return
  }
  func.func @transform_0(%arg0: i32) -> (i32, i32, i32) {
    %c0_i32 = arith.constant 0 : i32
    %c0_i32_0 = arith.constant 0 : i32
    %c0_i32_1 = arith.constant 0 : i32
    return %arg0, %c0_i32, %c0_i32_0 : i32, i32, i32
  }
  func.func @transform_1(%arg0: i32) -> (i32, i32) {
    %c0_i32 = arith.constant 0 : i32
    %c0_i32_0 = arith.constant 0 : i32
    %c0_i32_1 = arith.constant 0 : i32
    return %c0_i32, %c0_i32_0 : i32, i32
  }
  func.func @transform_2(%arg0: i32) -> (i32, i32) {
    %c0_i32 = arith.constant 0 : i32
    %c0_i32_0 = arith.constant 0 : i32
    %c0_i32_1 = arith.constant 0 : i32
    return %c0_i32, %c0_i32_0 : i32, i32
  }
  func.func @transform_3(%arg0: i32) -> (i32, i32) {
    %c0_i32 = arith.constant 0 : i32
    %c0_i32_0 = arith.constant 0 : i32
    %c0_i32_1 = arith.constant 0 : i32
    return %c0_i32, %c0_i32_0 : i32, i32
  }
  func.func @transform_4(%arg0: i32) -> (i32, i32) {
    %c0_i32 = arith.constant 0 : i32
    %c0_i32_0 = arith.constant 0 : i32
    %c0_i32_1 = arith.constant 0 : i32
    return %c0_i32, %c0_i32_0 : i32, i32
  }
  func.func @transform_5(%arg0: i32) -> (i32, i32) {
    %c0_i32 = arith.constant 0 : i32
    %c0_i32_0 = arith.constant 0 : i32
    %c0_i32_1 = arith.constant 0 : i32
    return %c0_i32, %c0_i32_0 : i32, i32
  }
  func.func @transform_6(%arg0: i32) -> (i32, i32) {
    %c0_i32 = arith.constant 0 : i32
    %c0_i32_0 = arith.constant 0 : i32
    %c0_i32_1 = arith.constant 0 : i32
    return %c0_i32, %c0_i32_0 : i32, i32
  }
  func.func @transform_7(%arg0: i32) -> (i32, i32) {
    %c0_i32 = arith.constant 0 : i32
    %c0_i32_0 = arith.constant 0 : i32
    %c0_i32_1 = arith.constant 0 : i32
    return %c0_i32, %c0_i32_0 : i32, i32
  }
  func.func @transform_8(%arg0: i32) -> (i32, i32) {
    %c0_i32 = arith.constant 0 : i32
    %c0_i32_0 = arith.constant 0 : i32
    %c0_i32_1 = arith.constant 0 : i32
    return %c0_i32, %c0_i32_0 : i32, i32
  }
  func.func @transform_9(%arg0: i32) -> (i32, i32) {
    %c0_i32 = arith.constant 0 : i32
    %c0_i32_0 = arith.constant 0 : i32
    %c0_i32_1 = arith.constant 0 : i32
    return %c0_i32, %c0_i32_0 : i32, i32
  }
  func.func @transform_10(%arg0: i32) -> (i32, i32) {
    %c0_i32 = arith.constant 0 : i32
    %c0_i32_0 = arith.constant 0 : i32
    %c0_i32_1 = arith.constant 0 : i32
    return %c0_i32, %c0_i32_0 : i32, i32
  }
  func.func @transform_11(%arg0: i32) -> (i32, i32) {
    %c0_i32 = arith.constant 0 : i32
    %c0_i32_0 = arith.constant 0 : i32
    %c0_i32_1 = arith.constant 0 : i32
    return %c0_i32, %c0_i32_0 : i32, i32
  }
  func.func @transform_12(%arg0: i32) -> (i32, i32) {
    %c0_i32 = arith.constant 0 : i32
    %c0_i32_0 = arith.constant 0 : i32
    %c0_i32_1 = arith.constant 0 : i32
    return %c0_i32, %c0_i32_0 : i32, i32
  }
  func.func @transform_13(%arg0: i32) -> (i32, i32) {
    %c0_i32 = arith.constant 0 : i32
    %c0_i32_0 = arith.constant 0 : i32
    %c0_i32_1 = arith.constant 0 : i32
    return %c0_i32, %c0_i32_0 : i32, i32
  }
  func.func @transform_14(%arg0: i32) -> (i32, i32) {
    %c0_i32 = arith.constant 0 : i32
    %c0_i32_0 = arith.constant 0 : i32
    %c0_i32_1 = arith.constant 0 : i32
    return %c0_i32, %c0_i32_0 : i32, i32
  }
  func.func @transform_15(%arg0: i32) -> (i32, i32) {
    %c0_i32 = arith.constant 0 : i32
    %c0_i32_0 = arith.constant 0 : i32
    %c0_i32_1 = arith.constant 0 : i32
    return %c0_i32, %c0_i32_0 : i32, i32
  }
  func.func @transform_16(%arg0: i32) -> (i32, i32, i32) {
    %c0_i32 = arith.constant 0 : i32
    %c0_i32_0 = arith.constant 0 : i32
    %c0_i32_1 = arith.constant 0 : i32
    return %arg0, %c0_i32, %c0_i32_0 : i32, i32, i32
  }
}

module attributes {stable_mosaic.version = 11 : i64} {
  func.func @decoder_block_kernel(%arg0: i32, %arg1: memref<1x8x32xf32, #tpu.memory_space<vmem>>, %arg2: memref<8x4xf32, #tpu.memory_space<vmem>>, %arg3: memref<1x32xf32, #tpu.memory_space<vmem>>, %arg4: memref<1x32xf32, #tpu.memory_space<vmem>>, %arg5: memref<32x96xf32, #tpu.memory_space<vmem>>, %arg6: memref<1x96xf32, #tpu.memory_space<vmem>>, %arg7: memref<32x32xf32, #tpu.memory_space<vmem>>, %arg8: memref<1x32xf32, #tpu.memory_space<vmem>>, %arg9: memref<1x32xf32, #tpu.memory_space<vmem>>, %arg10: memref<1x32xf32, #tpu.memory_space<vmem>>, %arg11: memref<32x64xf32, #tpu.memory_space<vmem>>, %arg12: memref<1x64xf32, #tpu.memory_space<vmem>>, %arg13: memref<64x32xf32, #tpu.memory_space<vmem>>, %arg14: memref<1x32xf32, #tpu.memory_space<vmem>>, %arg15: memref<1x32xf32, #tpu.memory_space<vmem>>, %arg16: memref<1x32xf32, #tpu.memory_space<vmem>>, %arg17: memref<1x8x32xf32, #tpu.memory_space<vmem>>) attributes {dimension_semantics = [#tpu.dimension_semantics<parallel>], iteration_bounds = array<i64: 2>, scalar_prefetch = 0 : i64, scratch_operands = 0 : i64, tpu.core_type = #tpu.core_type<tc>, window_params = [{transform_indices = @transform_0, window_bounds = array<i64: 1, 8, 32>}, {pipeline_mode = #tpu.pipeline_mode<synchronous>, transform_indices = @transform_1, window_bounds = array<i64: 8, 4>}, {pipeline_mode = #tpu.pipeline_mode<synchronous>, transform_indices = @transform_2, window_bounds = array<i64: 1, 32>}, {pipeline_mode = #tpu.pipeline_mode<synchronous>, transform_indices = @transform_3, window_bounds = array<i64: 1, 32>}, {pipeline_mode = #tpu.pipeline_mode<synchronous>, transform_indices = @transform_4, window_bounds = array<i64: 32, 96>}, {pipeline_mode = #tpu.pipeline_mode<synchronous>, transform_indices = @transform_5, window_bounds = array<i64: 1, 96>}, {pipeline_mode = #tpu.pipeline_mode<synchronous>, transform_indices = @transform_6, window_bounds = array<i64: 32, 32>}, {pipeline_mode = #tpu.pipeline_mode<synchronous>, transform_indices = @transform_7, window_bounds = array<i64: 1, 32>}, {pipeline_mode = #tpu.pipeline_mode<synchronous>, transform_indices = @transform_8, window_bounds = array<i64: 1, 32>}, {pipeline_mode = #tpu.pipeline_mode<synchronous>, transform_indices = @transform_9, window_bounds = array<i64: 1, 32>}, {pipeline_mode = #tpu.pipeline_mode<synchronous>, transform_indices = @transform_10, window_bounds = array<i64: 32, 64>}, {pipeline_mode = #tpu.pipeline_mode<synchronous>, transform_indices = @transform_11, window_bounds = array<i64: 1, 64>}, {pipeline_mode = #tpu.pipeline_mode<synchronous>, transform_indices = @transform_12, window_bounds = array<i64: 64, 32>}, {pipeline_mode = #tpu.pipeline_mode<synchronous>, transform_indices = @transform_13, window_bounds = array<i64: 1, 32>}, {pipeline_mode = #tpu.pipeline_mode<synchronous>, transform_indices = @transform_14, window_bounds = array<i64: 1, 32>}, {pipeline_mode = #tpu.pipeline_mode<synchronous>, transform_indices = @transform_15, window_bounds = array<i64: 1, 32>}, {transform_indices = @transform_16, window_bounds = array<i64: 1, 8, 32>}]} {
    %c0 = arith.constant 0 : index
    %c0_0 = arith.constant 0 : index
    %c0_1 = arith.constant 0 : index
    %0 = vector.load %arg1[%c0, %c0_0, %c0_1] : memref<1x8x32xf32, #tpu.memory_space<vmem>>, vector<1x8x32xf32>
    %1 = vector.shape_cast %0 : vector<1x8x32xf32> to vector<8x32xf32>
    %2 = tpu.iota {dimensions = array<i32: 0>} : vector<8x8xi32>
    %3 = tpu.iota {dimensions = array<i32: 1>} : vector<8x8xi32>
    %4 = arith.subi %3, %2 : vector<8x8xi32>
    %5 = math.absi %4 : vector<8x8xi32>
    %c7_i32 = arith.constant 7 : i32
    %6 = vector.broadcast %c7_i32 : i32 to vector<8x8xi32>
    %7 = arith.minsi %5, %6 : vector<8x8xi32>
    %8 = arith.cmpi sgt, %3, %2 : vector<8x8xi32>
    %c0_2 = arith.constant 0 : index
    %c0_3 = arith.constant 0 : index
    %9 = vector.load %arg2[%c0_2, %c0_3] : memref<8x4xf32, #tpu.memory_space<vmem>>, vector<8x4xf32>
    %cst = arith.constant 0.000000e+00 : f32
    %10 = vector.broadcast %cst : f32 to vector<8x8xf32>
    %c0_i32 = arith.constant 0 : i32
    %11 = vector.broadcast %c0_i32 : i32 to vector<8x8xi32>
    %12 = arith.cmpi eq, %7, %11 : vector<8x8xi32>
    %13 = vector.extract_strided_slice %9 {offsets = [0, 0], sizes = [1, 1], strides = [1, 1]} : vector<8x4xf32> to vector<1x1xf32>
    %14 = vector.extract %13[0, 0] : f32 from vector<1x1xf32>
    %cst_4 = arith.constant 0.000000e+00 : f32
    %15 = vector.broadcast %14 : f32 to vector<8x8xf32>
    %16 = vector.broadcast %cst_4 : f32 to vector<8x8xf32>
    %17 = arith.select %12, %15, %16 : vector<8x8xi1>, vector<8x8xf32>
    %18 = arith.addf %10, %17 : vector<8x8xf32>
    %c1_i32 = arith.constant 1 : i32
    %19 = vector.broadcast %c1_i32 : i32 to vector<8x8xi32>
    %20 = arith.cmpi eq, %7, %19 : vector<8x8xi32>
    %21 = vector.extract_strided_slice %9 {offsets = [1, 0], sizes = [1, 1], strides = [1, 1]} : vector<8x4xf32> to vector<1x1xf32>
    %22 = vector.extract %21[0, 0] : f32 from vector<1x1xf32>
    %cst_5 = arith.constant 0.000000e+00 : f32
    %23 = vector.broadcast %22 : f32 to vector<8x8xf32>
    %24 = vector.broadcast %cst_5 : f32 to vector<8x8xf32>
    %25 = arith.select %20, %23, %24 : vector<8x8xi1>, vector<8x8xf32>
    %26 = arith.addf %18, %25 : vector<8x8xf32>
    %c2_i32 = arith.constant 2 : i32
    %27 = vector.broadcast %c2_i32 : i32 to vector<8x8xi32>
    %28 = arith.cmpi eq, %7, %27 : vector<8x8xi32>
    %29 = vector.extract_strided_slice %9 {offsets = [2, 0], sizes = [1, 1], strides = [1, 1]} : vector<8x4xf32> to vector<1x1xf32>
    %30 = vector.extract %29[0, 0] : f32 from vector<1x1xf32>
    %cst_6 = arith.constant 0.000000e+00 : f32
    %31 = vector.broadcast %30 : f32 to vector<8x8xf32>
    %32 = vector.broadcast %cst_6 : f32 to vector<8x8xf32>
    %33 = arith.select %28, %31, %32 : vector<8x8xi1>, vector<8x8xf32>
    %34 = arith.addf %26, %33 : vector<8x8xf32>
    %c3_i32 = arith.constant 3 : i32
    %35 = vector.broadcast %c3_i32 : i32 to vector<8x8xi32>
    %36 = arith.cmpi eq, %7, %35 : vector<8x8xi32>
    %37 = vector.extract_strided_slice %9 {offsets = [3, 0], sizes = [1, 1], strides = [1, 1]} : vector<8x4xf32> to vector<1x1xf32>
    %38 = vector.extract %37[0, 0] : f32 from vector<1x1xf32>
    %cst_7 = arith.constant 0.000000e+00 : f32
    %39 = vector.broadcast %38 : f32 to vector<8x8xf32>
    %40 = vector.broadcast %cst_7 : f32 to vector<8x8xf32>
    %41 = arith.select %36, %39, %40 : vector<8x8xi1>, vector<8x8xf32>
    %42 = arith.addf %34, %41 : vector<8x8xf32>
    %c4_i32 = arith.constant 4 : i32
    %43 = vector.broadcast %c4_i32 : i32 to vector<8x8xi32>
    %44 = arith.cmpi eq, %7, %43 : vector<8x8xi32>
    %45 = vector.extract_strided_slice %9 {offsets = [4, 0], sizes = [1, 1], strides = [1, 1]} : vector<8x4xf32> to vector<1x1xf32>
    %46 = vector.extract %45[0, 0] : f32 from vector<1x1xf32>
    %cst_8 = arith.constant 0.000000e+00 : f32
    %47 = vector.broadcast %46 : f32 to vector<8x8xf32>
    %48 = vector.broadcast %cst_8 : f32 to vector<8x8xf32>
    %49 = arith.select %44, %47, %48 : vector<8x8xi1>, vector<8x8xf32>
    %50 = arith.addf %42, %49 : vector<8x8xf32>
    %c5_i32 = arith.constant 5 : i32
    %51 = vector.broadcast %c5_i32 : i32 to vector<8x8xi32>
    %52 = arith.cmpi eq, %7, %51 : vector<8x8xi32>
    %53 = vector.extract_strided_slice %9 {offsets = [5, 0], sizes = [1, 1], strides = [1, 1]} : vector<8x4xf32> to vector<1x1xf32>
    %54 = vector.extract %53[0, 0] : f32 from vector<1x1xf32>
    %cst_9 = arith.constant 0.000000e+00 : f32
    %55 = vector.broadcast %54 : f32 to vector<8x8xf32>
    %56 = vector.broadcast %cst_9 : f32 to vector<8x8xf32>
    %57 = arith.select %52, %55, %56 : vector<8x8xi1>, vector<8x8xf32>
    %58 = arith.addf %50, %57 : vector<8x8xf32>
    %c6_i32 = arith.constant 6 : i32
    %59 = vector.broadcast %c6_i32 : i32 to vector<8x8xi32>
    %60 = arith.cmpi eq, %7, %59 : vector<8x8xi32>
    %61 = vector.extract_strided_slice %9 {offsets = [6, 0], sizes = [1, 1], strides = [1, 1]} : vector<8x4xf32> to vector<1x1xf32>
    %62 = vector.extract %61[0, 0] : f32 from vector<1x1xf32>
    %cst_10 = arith.constant 0.000000e+00 : f32
    %63 = vector.broadcast %62 : f32 to vector<8x8xf32>
    %64 = vector.broadcast %cst_10 : f32 to vector<8x8xf32>
    %65 = arith.select %60, %63, %64 : vector<8x8xi1>, vector<8x8xf32>
    %66 = arith.addf %58, %65 : vector<8x8xf32>
    %c7_i32_11 = arith.constant 7 : i32
    %67 = vector.broadcast %c7_i32_11 : i32 to vector<8x8xi32>
    %68 = arith.cmpi eq, %7, %67 : vector<8x8xi32>
    %69 = vector.extract_strided_slice %9 {offsets = [7, 0], sizes = [1, 1], strides = [1, 1]} : vector<8x4xf32> to vector<1x1xf32>
    %70 = vector.extract %69[0, 0] : f32 from vector<1x1xf32>
    %cst_12 = arith.constant 0.000000e+00 : f32
    %71 = vector.broadcast %70 : f32 to vector<8x8xf32>
    %72 = vector.broadcast %cst_12 : f32 to vector<8x8xf32>
    %73 = arith.select %68, %71, %72 : vector<8x8xi1>, vector<8x8xf32>
    %74 = arith.addf %66, %73 : vector<8x8xf32>
    %cst_13 = arith.constant -1.000000e+30 : f32
    %75 = vector.broadcast %cst_13 : f32 to vector<8x8xf32>
    %76 = arith.select %8, %75, %74 : vector<8x8xi1>, vector<8x8xf32>
    %cst_14 = arith.constant 0.000000e+00 : f32
    %77 = vector.broadcast %cst_14 : f32 to vector<8x8xf32>
    %c0_i32_15 = arith.constant 0 : i32
    %78 = vector.broadcast %c0_i32_15 : i32 to vector<8x8xi32>
    %79 = arith.cmpi eq, %7, %78 : vector<8x8xi32>
    %80 = vector.extract_strided_slice %9 {offsets = [0, 1], sizes = [1, 1], strides = [1, 1]} : vector<8x4xf32> to vector<1x1xf32>
    %81 = vector.extract %80[0, 0] : f32 from vector<1x1xf32>
    %cst_16 = arith.constant 0.000000e+00 : f32
    %82 = vector.broadcast %81 : f32 to vector<8x8xf32>
    %83 = vector.broadcast %cst_16 : f32 to vector<8x8xf32>
    %84 = arith.select %79, %82, %83 : vector<8x8xi1>, vector<8x8xf32>
    %85 = arith.addf %77, %84 : vector<8x8xf32>
    %c1_i32_17 = arith.constant 1 : i32
    %86 = vector.broadcast %c1_i32_17 : i32 to vector<8x8xi32>
    %87 = arith.cmpi eq, %7, %86 : vector<8x8xi32>
    %88 = vector.extract_strided_slice %9 {offsets = [1, 1], sizes = [1, 1], strides = [1, 1]} : vector<8x4xf32> to vector<1x1xf32>
    %89 = vector.extract %88[0, 0] : f32 from vector<1x1xf32>
    %cst_18 = arith.constant 0.000000e+00 : f32
    %90 = vector.broadcast %89 : f32 to vector<8x8xf32>
    %91 = vector.broadcast %cst_18 : f32 to vector<8x8xf32>
    %92 = arith.select %87, %90, %91 : vector<8x8xi1>, vector<8x8xf32>
    %93 = arith.addf %85, %92 : vector<8x8xf32>
    %c2_i32_19 = arith.constant 2 : i32
    %94 = vector.broadcast %c2_i32_19 : i32 to vector<8x8xi32>
    %95 = arith.cmpi eq, %7, %94 : vector<8x8xi32>
    %96 = vector.extract_strided_slice %9 {offsets = [2, 1], sizes = [1, 1], strides = [1, 1]} : vector<8x4xf32> to vector<1x1xf32>
    %97 = vector.extract %96[0, 0] : f32 from vector<1x1xf32>
    %cst_20 = arith.constant 0.000000e+00 : f32
    %98 = vector.broadcast %97 : f32 to vector<8x8xf32>
    %99 = vector.broadcast %cst_20 : f32 to vector<8x8xf32>
    %100 = arith.select %95, %98, %99 : vector<8x8xi1>, vector<8x8xf32>
    %101 = arith.addf %93, %100 : vector<8x8xf32>
    %c3_i32_21 = arith.constant 3 : i32
    %102 = vector.broadcast %c3_i32_21 : i32 to vector<8x8xi32>
    %103 = arith.cmpi eq, %7, %102 : vector<8x8xi32>
    %104 = vector.extract_strided_slice %9 {offsets = [3, 1], sizes = [1, 1], strides = [1, 1]} : vector<8x4xf32> to vector<1x1xf32>
    %105 = vector.extract %104[0, 0] : f32 from vector<1x1xf32>
    %cst_22 = arith.constant 0.000000e+00 : f32
    %106 = vector.broadcast %105 : f32 to vector<8x8xf32>
    %107 = vector.broadcast %cst_22 : f32 to vector<8x8xf32>
    %108 = arith.select %103, %106, %107 : vector<8x8xi1>, vector<8x8xf32>
    %109 = arith.addf %101, %108 : vector<8x8xf32>
    %c4_i32_23 = arith.constant 4 : i32
    %110 = vector.broadcast %c4_i32_23 : i32 to vector<8x8xi32>
    %111 = arith.cmpi eq, %7, %110 : vector<8x8xi32>
    %112 = vector.extract_strided_slice %9 {offsets = [4, 1], sizes = [1, 1], strides = [1, 1]} : vector<8x4xf32> to vector<1x1xf32>
    %113 = vector.extract %112[0, 0] : f32 from vector<1x1xf32>
    %cst_24 = arith.constant 0.000000e+00 : f32
    %114 = vector.broadcast %113 : f32 to vector<8x8xf32>
    %115 = vector.broadcast %cst_24 : f32 to vector<8x8xf32>
    %116 = arith.select %111, %114, %115 : vector<8x8xi1>, vector<8x8xf32>
    %117 = arith.addf %109, %116 : vector<8x8xf32>
    %c5_i32_25 = arith.constant 5 : i32
    %118 = vector.broadcast %c5_i32_25 : i32 to vector<8x8xi32>
    %119 = arith.cmpi eq, %7, %118 : vector<8x8xi32>
    %120 = vector.extract_strided_slice %9 {offsets = [5, 1], sizes = [1, 1], strides = [1, 1]} : vector<8x4xf32> to vector<1x1xf32>
    %121 = vector.extract %120[0, 0] : f32 from vector<1x1xf32>
    %cst_26 = arith.constant 0.000000e+00 : f32
    %122 = vector.broadcast %121 : f32 to vector<8x8xf32>
    %123 = vector.broadcast %cst_26 : f32 to vector<8x8xf32>
    %124 = arith.select %119, %122, %123 : vector<8x8xi1>, vector<8x8xf32>
    %125 = arith.addf %117, %124 : vector<8x8xf32>
    %c6_i32_27 = arith.constant 6 : i32
    %126 = vector.broadcast %c6_i32_27 : i32 to vector<8x8xi32>
    %127 = arith.cmpi eq, %7, %126 : vector<8x8xi32>
    %128 = vector.extract_strided_slice %9 {offsets = [6, 1], sizes = [1, 1], strides = [1, 1]} : vector<8x4xf32> to vector<1x1xf32>
    %129 = vector.extract %128[0, 0] : f32 from vector<1x1xf32>
    %cst_28 = arith.constant 0.000000e+00 : f32
    %130 = vector.broadcast %129 : f32 to vector<8x8xf32>
    %131 = vector.broadcast %cst_28 : f32 to vector<8x8xf32>
    %132 = arith.select %127, %130, %131 : vector<8x8xi1>, vector<8x8xf32>
    %133 = arith.addf %125, %132 : vector<8x8xf32>
    %c7_i32_29 = arith.constant 7 : i32
    %134 = vector.broadcast %c7_i32_29 : i32 to vector<8x8xi32>
    %135 = arith.cmpi eq, %7, %134 : vector<8x8xi32>
    %136 = vector.extract_strided_slice %9 {offsets = [7, 1], sizes = [1, 1], strides = [1, 1]} : vector<8x4xf32> to vector<1x1xf32>
    %137 = vector.extract %136[0, 0] : f32 from vector<1x1xf32>
    %cst_30 = arith.constant 0.000000e+00 : f32
    %138 = vector.broadcast %137 : f32 to vector<8x8xf32>
    %139 = vector.broadcast %cst_30 : f32 to vector<8x8xf32>
    %140 = arith.select %135, %138, %139 : vector<8x8xi1>, vector<8x8xf32>
    %141 = arith.addf %133, %140 : vector<8x8xf32>
    %cst_31 = arith.constant -1.000000e+30 : f32
    %142 = vector.broadcast %cst_31 : f32 to vector<8x8xf32>
    %143 = arith.select %8, %142, %141 : vector<8x8xi1>, vector<8x8xf32>
    %cst_32 = arith.constant 0.000000e+00 : f32
    %144 = vector.broadcast %cst_32 : f32 to vector<8x8xf32>
    %c0_i32_33 = arith.constant 0 : i32
    %145 = vector.broadcast %c0_i32_33 : i32 to vector<8x8xi32>
    %146 = arith.cmpi eq, %7, %145 : vector<8x8xi32>
    %147 = vector.extract_strided_slice %9 {offsets = [0, 2], sizes = [1, 1], strides = [1, 1]} : vector<8x4xf32> to vector<1x1xf32>
    %148 = vector.extract %147[0, 0] : f32 from vector<1x1xf32>
    %cst_34 = arith.constant 0.000000e+00 : f32
    %149 = vector.broadcast %148 : f32 to vector<8x8xf32>
    %150 = vector.broadcast %cst_34 : f32 to vector<8x8xf32>
    %151 = arith.select %146, %149, %150 : vector<8x8xi1>, vector<8x8xf32>
    %152 = arith.addf %144, %151 : vector<8x8xf32>
    %c1_i32_35 = arith.constant 1 : i32
    %153 = vector.broadcast %c1_i32_35 : i32 to vector<8x8xi32>
    %154 = arith.cmpi eq, %7, %153 : vector<8x8xi32>
    %155 = vector.extract_strided_slice %9 {offsets = [1, 2], sizes = [1, 1], strides = [1, 1]} : vector<8x4xf32> to vector<1x1xf32>
    %156 = vector.extract %155[0, 0] : f32 from vector<1x1xf32>
    %cst_36 = arith.constant 0.000000e+00 : f32
    %157 = vector.broadcast %156 : f32 to vector<8x8xf32>
    %158 = vector.broadcast %cst_36 : f32 to vector<8x8xf32>
    %159 = arith.select %154, %157, %158 : vector<8x8xi1>, vector<8x8xf32>
    %160 = arith.addf %152, %159 : vector<8x8xf32>
    %c2_i32_37 = arith.constant 2 : i32
    %161 = vector.broadcast %c2_i32_37 : i32 to vector<8x8xi32>
    %162 = arith.cmpi eq, %7, %161 : vector<8x8xi32>
    %163 = vector.extract_strided_slice %9 {offsets = [2, 2], sizes = [1, 1], strides = [1, 1]} : vector<8x4xf32> to vector<1x1xf32>
    %164 = vector.extract %163[0, 0] : f32 from vector<1x1xf32>
    %cst_38 = arith.constant 0.000000e+00 : f32
    %165 = vector.broadcast %164 : f32 to vector<8x8xf32>
    %166 = vector.broadcast %cst_38 : f32 to vector<8x8xf32>
    %167 = arith.select %162, %165, %166 : vector<8x8xi1>, vector<8x8xf32>
    %168 = arith.addf %160, %167 : vector<8x8xf32>
    %c3_i32_39 = arith.constant 3 : i32
    %169 = vector.broadcast %c3_i32_39 : i32 to vector<8x8xi32>
    %170 = arith.cmpi eq, %7, %169 : vector<8x8xi32>
    %171 = vector.extract_strided_slice %9 {offsets = [3, 2], sizes = [1, 1], strides = [1, 1]} : vector<8x4xf32> to vector<1x1xf32>
    %172 = vector.extract %171[0, 0] : f32 from vector<1x1xf32>
    %cst_40 = arith.constant 0.000000e+00 : f32
    %173 = vector.broadcast %172 : f32 to vector<8x8xf32>
    %174 = vector.broadcast %cst_40 : f32 to vector<8x8xf32>
    %175 = arith.select %170, %173, %174 : vector<8x8xi1>, vector<8x8xf32>
    %176 = arith.addf %168, %175 : vector<8x8xf32>
    %c4_i32_41 = arith.constant 4 : i32
    %177 = vector.broadcast %c4_i32_41 : i32 to vector<8x8xi32>
    %178 = arith.cmpi eq, %7, %177 : vector<8x8xi32>
    %179 = vector.extract_strided_slice %9 {offsets = [4, 2], sizes = [1, 1], strides = [1, 1]} : vector<8x4xf32> to vector<1x1xf32>
    %180 = vector.extract %179[0, 0] : f32 from vector<1x1xf32>
    %cst_42 = arith.constant 0.000000e+00 : f32
    %181 = vector.broadcast %180 : f32 to vector<8x8xf32>
    %182 = vector.broadcast %cst_42 : f32 to vector<8x8xf32>
    %183 = arith.select %178, %181, %182 : vector<8x8xi1>, vector<8x8xf32>
    %184 = arith.addf %176, %183 : vector<8x8xf32>
    %c5_i32_43 = arith.constant 5 : i32
    %185 = vector.broadcast %c5_i32_43 : i32 to vector<8x8xi32>
    %186 = arith.cmpi eq, %7, %185 : vector<8x8xi32>
    %187 = vector.extract_strided_slice %9 {offsets = [5, 2], sizes = [1, 1], strides = [1, 1]} : vector<8x4xf32> to vector<1x1xf32>
    %188 = vector.extract %187[0, 0] : f32 from vector<1x1xf32>
    %cst_44 = arith.constant 0.000000e+00 : f32
    %189 = vector.broadcast %188 : f32 to vector<8x8xf32>
    %190 = vector.broadcast %cst_44 : f32 to vector<8x8xf32>
    %191 = arith.select %186, %189, %190 : vector<8x8xi1>, vector<8x8xf32>
    %192 = arith.addf %184, %191 : vector<8x8xf32>
    %c6_i32_45 = arith.constant 6 : i32
    %193 = vector.broadcast %c6_i32_45 : i32 to vector<8x8xi32>
    %194 = arith.cmpi eq, %7, %193 : vector<8x8xi32>
    %195 = vector.extract_strided_slice %9 {offsets = [6, 2], sizes = [1, 1], strides = [1, 1]} : vector<8x4xf32> to vector<1x1xf32>
    %196 = vector.extract %195[0, 0] : f32 from vector<1x1xf32>
    %cst_46 = arith.constant 0.000000e+00 : f32
    %197 = vector.broadcast %196 : f32 to vector<8x8xf32>
    %198 = vector.broadcast %cst_46 : f32 to vector<8x8xf32>
    %199 = arith.select %194, %197, %198 : vector<8x8xi1>, vector<8x8xf32>
    %200 = arith.addf %192, %199 : vector<8x8xf32>
    %c7_i32_47 = arith.constant 7 : i32
    %201 = vector.broadcast %c7_i32_47 : i32 to vector<8x8xi32>
    %202 = arith.cmpi eq, %7, %201 : vector<8x8xi32>
    %203 = vector.extract_strided_slice %9 {offsets = [7, 2], sizes = [1, 1], strides = [1, 1]} : vector<8x4xf32> to vector<1x1xf32>
    %204 = vector.extract %203[0, 0] : f32 from vector<1x1xf32>
    %cst_48 = arith.constant 0.000000e+00 : f32
    %205 = vector.broadcast %204 : f32 to vector<8x8xf32>
    %206 = vector.broadcast %cst_48 : f32 to vector<8x8xf32>
    %207 = arith.select %202, %205, %206 : vector<8x8xi1>, vector<8x8xf32>
    %208 = arith.addf %200, %207 : vector<8x8xf32>
    %cst_49 = arith.constant -1.000000e+30 : f32
    %209 = vector.broadcast %cst_49 : f32 to vector<8x8xf32>
    %210 = arith.select %8, %209, %208 : vector<8x8xi1>, vector<8x8xf32>
    %cst_50 = arith.constant 0.000000e+00 : f32
    %211 = vector.broadcast %cst_50 : f32 to vector<8x8xf32>
    %c0_i32_51 = arith.constant 0 : i32
    %212 = vector.broadcast %c0_i32_51 : i32 to vector<8x8xi32>
    %213 = arith.cmpi eq, %7, %212 : vector<8x8xi32>
    %214 = vector.extract_strided_slice %9 {offsets = [0, 3], sizes = [1, 1], strides = [1, 1]} : vector<8x4xf32> to vector<1x1xf32>
    %215 = vector.extract %214[0, 0] : f32 from vector<1x1xf32>
    %cst_52 = arith.constant 0.000000e+00 : f32
    %216 = vector.broadcast %215 : f32 to vector<8x8xf32>
    %217 = vector.broadcast %cst_52 : f32 to vector<8x8xf32>
    %218 = arith.select %213, %216, %217 : vector<8x8xi1>, vector<8x8xf32>
    %219 = arith.addf %211, %218 : vector<8x8xf32>
    %c1_i32_53 = arith.constant 1 : i32
    %220 = vector.broadcast %c1_i32_53 : i32 to vector<8x8xi32>
    %221 = arith.cmpi eq, %7, %220 : vector<8x8xi32>
    %222 = vector.extract_strided_slice %9 {offsets = [1, 3], sizes = [1, 1], strides = [1, 1]} : vector<8x4xf32> to vector<1x1xf32>
    %223 = vector.extract %222[0, 0] : f32 from vector<1x1xf32>
    %cst_54 = arith.constant 0.000000e+00 : f32
    %224 = vector.broadcast %223 : f32 to vector<8x8xf32>
    %225 = vector.broadcast %cst_54 : f32 to vector<8x8xf32>
    %226 = arith.select %221, %224, %225 : vector<8x8xi1>, vector<8x8xf32>
    %227 = arith.addf %219, %226 : vector<8x8xf32>
    %c2_i32_55 = arith.constant 2 : i32
    %228 = vector.broadcast %c2_i32_55 : i32 to vector<8x8xi32>
    %229 = arith.cmpi eq, %7, %228 : vector<8x8xi32>
    %230 = vector.extract_strided_slice %9 {offsets = [2, 3], sizes = [1, 1], strides = [1, 1]} : vector<8x4xf32> to vector<1x1xf32>
    %231 = vector.extract %230[0, 0] : f32 from vector<1x1xf32>
    %cst_56 = arith.constant 0.000000e+00 : f32
    %232 = vector.broadcast %231 : f32 to vector<8x8xf32>
    %233 = vector.broadcast %cst_56 : f32 to vector<8x8xf32>
    %234 = arith.select %229, %232, %233 : vector<8x8xi1>, vector<8x8xf32>
    %235 = arith.addf %227, %234 : vector<8x8xf32>
    %c3_i32_57 = arith.constant 3 : i32
    %236 = vector.broadcast %c3_i32_57 : i32 to vector<8x8xi32>
    %237 = arith.cmpi eq, %7, %236 : vector<8x8xi32>
    %238 = vector.extract_strided_slice %9 {offsets = [3, 3], sizes = [1, 1], strides = [1, 1]} : vector<8x4xf32> to vector<1x1xf32>
    %239 = vector.extract %238[0, 0] : f32 from vector<1x1xf32>
    %cst_58 = arith.constant 0.000000e+00 : f32
    %240 = vector.broadcast %239 : f32 to vector<8x8xf32>
    %241 = vector.broadcast %cst_58 : f32 to vector<8x8xf32>
    %242 = arith.select %237, %240, %241 : vector<8x8xi1>, vector<8x8xf32>
    %243 = arith.addf %235, %242 : vector<8x8xf32>
    %c4_i32_59 = arith.constant 4 : i32
    %244 = vector.broadcast %c4_i32_59 : i32 to vector<8x8xi32>
    %245 = arith.cmpi eq, %7, %244 : vector<8x8xi32>
    %246 = vector.extract_strided_slice %9 {offsets = [4, 3], sizes = [1, 1], strides = [1, 1]} : vector<8x4xf32> to vector<1x1xf32>
    %247 = vector.extract %246[0, 0] : f32 from vector<1x1xf32>
    %cst_60 = arith.constant 0.000000e+00 : f32
    %248 = vector.broadcast %247 : f32 to vector<8x8xf32>
    %249 = vector.broadcast %cst_60 : f32 to vector<8x8xf32>
    %250 = arith.select %245, %248, %249 : vector<8x8xi1>, vector<8x8xf32>
    %251 = arith.addf %243, %250 : vector<8x8xf32>
    %c5_i32_61 = arith.constant 5 : i32
    %252 = vector.broadcast %c5_i32_61 : i32 to vector<8x8xi32>
    %253 = arith.cmpi eq, %7, %252 : vector<8x8xi32>
    %254 = vector.extract_strided_slice %9 {offsets = [5, 3], sizes = [1, 1], strides = [1, 1]} : vector<8x4xf32> to vector<1x1xf32>
    %255 = vector.extract %254[0, 0] : f32 from vector<1x1xf32>
    %cst_62 = arith.constant 0.000000e+00 : f32
    %256 = vector.broadcast %255 : f32 to vector<8x8xf32>
    %257 = vector.broadcast %cst_62 : f32 to vector<8x8xf32>
    %258 = arith.select %253, %256, %257 : vector<8x8xi1>, vector<8x8xf32>
    %259 = arith.addf %251, %258 : vector<8x8xf32>
    %c6_i32_63 = arith.constant 6 : i32
    %260 = vector.broadcast %c6_i32_63 : i32 to vector<8x8xi32>
    %261 = arith.cmpi eq, %7, %260 : vector<8x8xi32>
    %262 = vector.extract_strided_slice %9 {offsets = [6, 3], sizes = [1, 1], strides = [1, 1]} : vector<8x4xf32> to vector<1x1xf32>
    %263 = vector.extract %262[0, 0] : f32 from vector<1x1xf32>
    %cst_64 = arith.constant 0.000000e+00 : f32
    %264 = vector.broadcast %263 : f32 to vector<8x8xf32>
    %265 = vector.broadcast %cst_64 : f32 to vector<8x8xf32>
    %266 = arith.select %261, %264, %265 : vector<8x8xi1>, vector<8x8xf32>
    %267 = arith.addf %259, %266 : vector<8x8xf32>
    %c7_i32_65 = arith.constant 7 : i32
    %268 = vector.broadcast %c7_i32_65 : i32 to vector<8x8xi32>
    %269 = arith.cmpi eq, %7, %268 : vector<8x8xi32>
    %270 = vector.extract_strided_slice %9 {offsets = [7, 3], sizes = [1, 1], strides = [1, 1]} : vector<8x4xf32> to vector<1x1xf32>
    %271 = vector.extract %270[0, 0] : f32 from vector<1x1xf32>
    %cst_66 = arith.constant 0.000000e+00 : f32
    %272 = vector.broadcast %271 : f32 to vector<8x8xf32>
    %273 = vector.broadcast %cst_66 : f32 to vector<8x8xf32>
    %274 = arith.select %269, %272, %273 : vector<8x8xi1>, vector<8x8xf32>
    %275 = arith.addf %267, %274 : vector<8x8xf32>
    %cst_67 = arith.constant -1.000000e+30 : f32
    %276 = vector.broadcast %cst_67 : f32 to vector<8x8xf32>
    %277 = arith.select %8, %276, %275 : vector<8x8xi1>, vector<8x8xf32>
    %278 = vector.shape_cast %76 : vector<8x8xf32> to vector<1x8x8xf32>
    %279 = vector.shape_cast %143 : vector<8x8xf32> to vector<1x8x8xf32>
    %280 = vector.shape_cast %210 : vector<8x8xf32> to vector<1x8x8xf32>
    %281 = vector.shape_cast %277 : vector<8x8xf32> to vector<1x8x8xf32>
    %282 = tpu.concatenate %278, %279, %280, %281 in 0 : vector<1x8x8xf32>, vector<1x8x8xf32>, vector<1x8x8xf32>, vector<1x8x8xf32> -> vector<4x8x8xf32>
    %c0_68 = arith.constant 0 : index
    %c0_69 = arith.constant 0 : index
    %283 = vector.load %arg3[%c0_68, %c0_69] : memref<1x32xf32, #tpu.memory_space<vmem>>, vector<1x32xf32>
    %c0_70 = arith.constant 0 : index
    %c0_71 = arith.constant 0 : index
    %284 = vector.load %arg4[%c0_70, %c0_71] : memref<1x32xf32, #tpu.memory_space<vmem>>, vector<1x32xf32>
    %cst_72 = arith.constant dense<0.000000e+00> : vector<8xf32>
    %285 = vector.multi_reduction <add>, %1, %cst_72 [1] : vector<8x32xf32> to vector<8xf32>
    %286 = vector.shape_cast %285 : vector<8xf32> to vector<8x1xf32>
    %cst_73 = arith.constant 3.200000e+01 : f32
    %287 = vector.broadcast %cst_73 : f32 to vector<8x1xf32>
    %288 = arith.divf %286, %287 : vector<8x1xf32>
    %289 = vector.broadcast %288 : vector<8x1xf32> to vector<8x32xf32>
    %290 = arith.subf %1, %289 : vector<8x32xf32>
    %291 = arith.mulf %290, %290 : vector<8x32xf32>
    %cst_74 = arith.constant dense<0.000000e+00> : vector<8xf32>
    %292 = vector.multi_reduction <add>, %291, %cst_74 [1] : vector<8x32xf32> to vector<8xf32>
    %293 = vector.shape_cast %292 : vector<8xf32> to vector<8x1xf32>
    %cst_75 = arith.constant 3.200000e+01 : f32
    %294 = vector.broadcast %cst_75 : f32 to vector<8x1xf32>
    %295 = arith.divf %293, %294 : vector<8x1xf32>
    %296 = vector.broadcast %288 : vector<8x1xf32> to vector<8x32xf32>
    %297 = arith.subf %1, %296 : vector<8x32xf32>
    %cst_76 = arith.constant 9.99999974E-6 : f32
    %298 = vector.broadcast %cst_76 : f32 to vector<8x1xf32>
    %299 = arith.addf %295, %298 : vector<8x1xf32>
    %300 = math.rsqrt %299 : vector<8x1xf32>
    %301 = vector.broadcast %300 : vector<8x1xf32> to vector<8x32xf32>
    %302 = arith.mulf %297, %301 : vector<8x32xf32>
    %303 = vector.broadcast %283 : vector<1x32xf32> to vector<8x32xf32>
    %304 = arith.mulf %302, %303 : vector<8x32xf32>
    %305 = vector.broadcast %284 : vector<1x32xf32> to vector<8x32xf32>
    %306 = arith.addf %304, %305 : vector<8x32xf32>
    %c0_77 = arith.constant 0 : index
    %c0_78 = arith.constant 0 : index
    %307 = vector.load %arg5[%c0_77, %c0_78] : memref<32x96xf32, #tpu.memory_space<vmem>>, vector<32x96xf32>
    %cst_79 = arith.constant dense<0.000000e+00> : vector<8x96xf32>
    %308 = tpu.matmul %306, %307, %cst_79 {dimension_numbers = #tpu.dot_dimension_numbers<[1], [0], [0], [1], [0, 0, 1, 1], [], []>} : vector<8x32xf32>, vector<32x96xf32>, vector<8x96xf32> -> vector<8x96xf32>
    %c0_80 = arith.constant 0 : index
    %c0_81 = arith.constant 0 : index
    %309 = vector.load %arg6[%c0_80, %c0_81] : memref<1x96xf32, #tpu.memory_space<vmem>>, vector<1x96xf32>
    %310 = vector.broadcast %309 : vector<1x96xf32> to vector<8x96xf32>
    %311 = arith.addf %308, %310 : vector<8x96xf32>
    %312 = vector.extract_strided_slice %311 {offsets = [0, 0], sizes = [8, 32], strides = [1, 1]} : vector<8x96xf32> to vector<8x32xf32>
    %313 = vector.extract_strided_slice %311 {offsets = [0, 32], sizes = [8, 32], strides = [1, 1]} : vector<8x96xf32> to vector<8x32xf32>
    %314 = vector.extract_strided_slice %311 {offsets = [0, 64], sizes = [8, 32], strides = [1, 1]} : vector<8x96xf32> to vector<8x32xf32>
    %315 = vector.extract_strided_slice %312 {offsets = [0, 0], sizes = [8, 8], strides = [1, 1]} : vector<8x32xf32> to vector<8x8xf32>
    %316 = vector.extract_strided_slice %312 {offsets = [0, 8], sizes = [8, 8], strides = [1, 1]} : vector<8x32xf32> to vector<8x8xf32>
    %317 = vector.extract_strided_slice %312 {offsets = [0, 16], sizes = [8, 8], strides = [1, 1]} : vector<8x32xf32> to vector<8x8xf32>
    %318 = vector.extract_strided_slice %312 {offsets = [0, 24], sizes = [8, 8], strides = [1, 1]} : vector<8x32xf32> to vector<8x8xf32>
    %319 = vector.shape_cast %315 : vector<8x8xf32> to vector<1x8x8xf32>
    %320 = vector.shape_cast %316 : vector<8x8xf32> to vector<1x8x8xf32>
    %321 = vector.shape_cast %317 : vector<8x8xf32> to vector<1x8x8xf32>
    %322 = vector.shape_cast %318 : vector<8x8xf32> to vector<1x8x8xf32>
    %323 = tpu.concatenate %319, %320, %321, %322 in 0 : vector<1x8x8xf32>, vector<1x8x8xf32>, vector<1x8x8xf32>, vector<1x8x8xf32> -> vector<4x8x8xf32>
    %324 = vector.extract_strided_slice %313 {offsets = [0, 0], sizes = [8, 8], strides = [1, 1]} : vector<8x32xf32> to vector<8x8xf32>
    %325 = vector.extract_strided_slice %313 {offsets = [0, 8], sizes = [8, 8], strides = [1, 1]} : vector<8x32xf32> to vector<8x8xf32>
    %326 = vector.extract_strided_slice %313 {offsets = [0, 16], sizes = [8, 8], strides = [1, 1]} : vector<8x32xf32> to vector<8x8xf32>
    %327 = vector.extract_strided_slice %313 {offsets = [0, 24], sizes = [8, 8], strides = [1, 1]} : vector<8x32xf32> to vector<8x8xf32>
    %328 = vector.shape_cast %324 : vector<8x8xf32> to vector<1x8x8xf32>
    %329 = vector.shape_cast %325 : vector<8x8xf32> to vector<1x8x8xf32>
    %330 = vector.shape_cast %326 : vector<8x8xf32> to vector<1x8x8xf32>
    %331 = vector.shape_cast %327 : vector<8x8xf32> to vector<1x8x8xf32>
    %332 = tpu.concatenate %328, %329, %330, %331 in 0 : vector<1x8x8xf32>, vector<1x8x8xf32>, vector<1x8x8xf32>, vector<1x8x8xf32> -> vector<4x8x8xf32>
    %333 = vector.extract_strided_slice %314 {offsets = [0, 0], sizes = [8, 8], strides = [1, 1]} : vector<8x32xf32> to vector<8x8xf32>
    %334 = vector.extract_strided_slice %314 {offsets = [0, 8], sizes = [8, 8], strides = [1, 1]} : vector<8x32xf32> to vector<8x8xf32>
    %335 = vector.extract_strided_slice %314 {offsets = [0, 16], sizes = [8, 8], strides = [1, 1]} : vector<8x32xf32> to vector<8x8xf32>
    %336 = vector.extract_strided_slice %314 {offsets = [0, 24], sizes = [8, 8], strides = [1, 1]} : vector<8x32xf32> to vector<8x8xf32>
    %337 = vector.shape_cast %333 : vector<8x8xf32> to vector<1x8x8xf32>
    %338 = vector.shape_cast %334 : vector<8x8xf32> to vector<1x8x8xf32>
    %339 = vector.shape_cast %335 : vector<8x8xf32> to vector<1x8x8xf32>
    %340 = vector.shape_cast %336 : vector<8x8xf32> to vector<1x8x8xf32>
    %341 = tpu.concatenate %337, %338, %339, %340 in 0 : vector<1x8x8xf32>, vector<1x8x8xf32>, vector<1x8x8xf32>, vector<1x8x8xf32> -> vector<4x8x8xf32>
    "tpu.trace_start"() <{level = 10 : i32, message = "hld,hmd->hlm"}> : () -> ()
    %cst_82 = arith.constant dense<0.000000e+00> : vector<4x8x8xf32>
    %342 = tpu.matmul %323, %332, %cst_82 {dimension_numbers = #tpu.dot_dimension_numbers<[2], [2], [1], [1], [0, 0, 0, 1, 1, 1], [0], [0]>} : vector<4x8x8xf32>, vector<4x8x8xf32>, vector<4x8x8xf32> -> vector<4x8x8xf32>
    "tpu.trace_stop"() : () -> ()
    %343 = arith.addf %342, %282 : vector<4x8x8xf32>
    %cst_83 = arith.constant 0.353553385 : f32
    %344 = vector.broadcast %cst_83 : f32 to vector<4x8x8xf32>
    %345 = arith.mulf %343, %344 : vector<4x8x8xf32>
    %cst_84 = arith.constant dense<0xFF800000> : vector<4x8xf32>
    %346 = vector.multi_reduction <maximumf>, %345, %cst_84 [2] : vector<4x8x8xf32> to vector<4x8xf32>
    %347 = vector.shape_cast %346 : vector<4x8xf32> to vector<4x8x1xf32>
    %348 = vector.broadcast %347 : vector<4x8x1xf32> to vector<4x8x8xf32>
    %349 = arith.subf %345, %348 : vector<4x8x8xf32>
    %350 = math.exp %349 : vector<4x8x8xf32>
    %cst_85 = arith.constant dense<0.000000e+00> : vector<4x8xf32>
    %351 = vector.multi_reduction <add>, %350, %cst_85 [2] : vector<4x8x8xf32> to vector<4x8xf32>
    %352 = vector.shape_cast %351 : vector<4x8xf32> to vector<4x8x1xf32>
    %353 = tpu.reciprocal %352 {approx = true} : vector<4x8x1xf32> -> vector<4x8x1xf32>
    %354 = vector.broadcast %353 : vector<4x8x1xf32> to vector<4x8x8xf32>
    %355 = arith.mulf %350, %354 : vector<4x8x8xf32>
    "tpu.trace_start"() <{level = 10 : i32, message = "hlm,hmd->hld"}> : () -> ()
    %cst_86 = arith.constant dense<0.000000e+00> : vector<4x8x8xf32>
    %356 = tpu.matmul %355, %341, %cst_86 {dimension_numbers = #tpu.dot_dimension_numbers<[2], [1], [1], [2], [0, 0, 0, 1, 1, 2], [0], [0]>} : vector<4x8x8xf32>, vector<4x8x8xf32>, vector<4x8x8xf32> -> vector<4x8x8xf32>
    "tpu.trace_stop"() : () -> ()
    %357 = vector.extract_strided_slice %356 {offsets = [0, 0, 0], sizes = [1, 8, 8], strides = [1, 1, 1]} : vector<4x8x8xf32> to vector<1x8x8xf32>
    %358 = vector.shape_cast %357 : vector<1x8x8xf32> to vector<8x8xf32>
    %359 = vector.extract_strided_slice %356 {offsets = [1, 0, 0], sizes = [1, 8, 8], strides = [1, 1, 1]} : vector<4x8x8xf32> to vector<1x8x8xf32>
    %360 = vector.shape_cast %359 : vector<1x8x8xf32> to vector<8x8xf32>
    %361 = vector.extract_strided_slice %356 {offsets = [2, 0, 0], sizes = [1, 8, 8], strides = [1, 1, 1]} : vector<4x8x8xf32> to vector<1x8x8xf32>
    %362 = vector.shape_cast %361 : vector<1x8x8xf32> to vector<8x8xf32>
    %363 = vector.extract_strided_slice %356 {offsets = [3, 0, 0], sizes = [1, 8, 8], strides = [1, 1, 1]} : vector<4x8x8xf32> to vector<1x8x8xf32>
    %364 = vector.shape_cast %363 : vector<1x8x8xf32> to vector<8x8xf32>
    %365 = tpu.concatenate %358, %360, %362, %364 in 1 : vector<8x8xf32>, vector<8x8xf32>, vector<8x8xf32>, vector<8x8xf32> -> vector<8x32xf32>
    %c0_87 = arith.constant 0 : index
    %c0_88 = arith.constant 0 : index
    %366 = vector.load %arg7[%c0_87, %c0_88] : memref<32x32xf32, #tpu.memory_space<vmem>>, vector<32x32xf32>
    %cst_89 = arith.constant dense<0.000000e+00> : vector<8x32xf32>
    %367 = tpu.matmul %365, %366, %cst_89 {dimension_numbers = #tpu.dot_dimension_numbers<[1], [0], [0], [1], [0, 0, 1, 1], [], []>} : vector<8x32xf32>, vector<32x32xf32>, vector<8x32xf32> -> vector<8x32xf32>
    %c0_90 = arith.constant 0 : index
    %c0_91 = arith.constant 0 : index
    %368 = vector.load %arg8[%c0_90, %c0_91] : memref<1x32xf32, #tpu.memory_space<vmem>>, vector<1x32xf32>
    %369 = vector.broadcast %368 : vector<1x32xf32> to vector<8x32xf32>
    %370 = arith.addf %367, %369 : vector<8x32xf32>
    %371 = arith.addf %1, %370 : vector<8x32xf32>
    %c0_92 = arith.constant 0 : index
    %c0_93 = arith.constant 0 : index
    %372 = vector.load %arg9[%c0_92, %c0_93] : memref<1x32xf32, #tpu.memory_space<vmem>>, vector<1x32xf32>
    %c0_94 = arith.constant 0 : index
    %c0_95 = arith.constant 0 : index
    %373 = vector.load %arg10[%c0_94, %c0_95] : memref<1x32xf32, #tpu.memory_space<vmem>>, vector<1x32xf32>
    %cst_96 = arith.constant dense<0.000000e+00> : vector<8xf32>
    %374 = vector.multi_reduction <add>, %371, %cst_96 [1] : vector<8x32xf32> to vector<8xf32>
    %375 = vector.shape_cast %374 : vector<8xf32> to vector<8x1xf32>
    %cst_97 = arith.constant 3.200000e+01 : f32
    %376 = vector.broadcast %cst_97 : f32 to vector<8x1xf32>
    %377 = arith.divf %375, %376 : vector<8x1xf32>
    %378 = vector.broadcast %377 : vector<8x1xf32> to vector<8x32xf32>
    %379 = arith.subf %371, %378 : vector<8x32xf32>
    %380 = arith.mulf %379, %379 : vector<8x32xf32>
    %cst_98 = arith.constant dense<0.000000e+00> : vector<8xf32>
    %381 = vector.multi_reduction <add>, %380, %cst_98 [1] : vector<8x32xf32> to vector<8xf32>
    %382 = vector.shape_cast %381 : vector<8xf32> to vector<8x1xf32>
    %cst_99 = arith.constant 3.200000e+01 : f32
    %383 = vector.broadcast %cst_99 : f32 to vector<8x1xf32>
    %384 = arith.divf %382, %383 : vector<8x1xf32>
    %385 = vector.broadcast %377 : vector<8x1xf32> to vector<8x32xf32>
    %386 = arith.subf %371, %385 : vector<8x32xf32>
    %cst_100 = arith.constant 9.99999974E-6 : f32
    %387 = vector.broadcast %cst_100 : f32 to vector<8x1xf32>
    %388 = arith.addf %384, %387 : vector<8x1xf32>
    %389 = math.rsqrt %388 : vector<8x1xf32>
    %390 = vector.broadcast %389 : vector<8x1xf32> to vector<8x32xf32>
    %391 = arith.mulf %386, %390 : vector<8x32xf32>
    %392 = vector.broadcast %372 : vector<1x32xf32> to vector<8x32xf32>
    %393 = arith.mulf %391, %392 : vector<8x32xf32>
    %394 = vector.broadcast %373 : vector<1x32xf32> to vector<8x32xf32>
    %395 = arith.addf %393, %394 : vector<8x32xf32>
    %c0_101 = arith.constant 0 : index
    %c0_102 = arith.constant 0 : index
    %396 = vector.load %arg11[%c0_101, %c0_102] : memref<32x64xf32, #tpu.memory_space<vmem>>, vector<32x64xf32>
    %cst_103 = arith.constant dense<0.000000e+00> : vector<8x64xf32>
    %397 = tpu.matmul %395, %396, %cst_103 {dimension_numbers = #tpu.dot_dimension_numbers<[1], [0], [0], [1], [0, 0, 1, 1], [], []>} : vector<8x32xf32>, vector<32x64xf32>, vector<8x64xf32> -> vector<8x64xf32>
    %c0_104 = arith.constant 0 : index
    %c0_105 = arith.constant 0 : index
    %398 = vector.load %arg12[%c0_104, %c0_105] : memref<1x64xf32, #tpu.memory_space<vmem>>, vector<1x64xf32>
    %399 = vector.broadcast %398 : vector<1x64xf32> to vector<8x64xf32>
    %400 = arith.addf %397, %399 : vector<8x64xf32>
    %cst_106 = arith.constant 5.000000e-01 : f32
    %401 = vector.broadcast %cst_106 : f32 to vector<8x64xf32>
    %402 = arith.mulf %401, %400 : vector<8x64xf32>
    %cst_107 = arith.constant 4.471500e-02 : f32
    %403 = vector.broadcast %cst_107 : f32 to vector<8x64xf32>
    %404 = arith.mulf %403, %400 : vector<8x64xf32>
    %405 = arith.mulf %404, %400 : vector<8x64xf32>
    %406 = arith.mulf %405, %400 : vector<8x64xf32>
    %407 = arith.addf %400, %406 : vector<8x64xf32>
    %cst_108 = arith.constant 0.797884583 : f32
    %408 = vector.broadcast %cst_108 : f32 to vector<8x64xf32>
    %409 = arith.mulf %408, %407 : vector<8x64xf32>
    %410 = math.tanh %409 : vector<8x64xf32>
    %cst_109 = arith.constant 1.000000e+00 : f32
    %411 = vector.broadcast %cst_109 : f32 to vector<8x64xf32>
    %412 = arith.addf %411, %410 : vector<8x64xf32>
    %413 = arith.mulf %402, %412 : vector<8x64xf32>
    %c0_110 = arith.constant 0 : index
    %c0_111 = arith.constant 0 : index
    %414 = vector.load %arg13[%c0_110, %c0_111] : memref<64x32xf32, #tpu.memory_space<vmem>>, vector<64x32xf32>
    %cst_112 = arith.constant dense<0.000000e+00> : vector<8x32xf32>
    %415 = tpu.matmul %413, %414, %cst_112 {dimension_numbers = #tpu.dot_dimension_numbers<[1], [0], [0], [1], [0, 0, 1, 1], [], []>} : vector<8x64xf32>, vector<64x32xf32>, vector<8x32xf32> -> vector<8x32xf32>
    %c0_113 = arith.constant 0 : index
    %c0_114 = arith.constant 0 : index
    %416 = vector.load %arg14[%c0_113, %c0_114] : memref<1x32xf32, #tpu.memory_space<vmem>>, vector<1x32xf32>
    %417 = vector.broadcast %416 : vector<1x32xf32> to vector<8x32xf32>
    %418 = arith.addf %415, %417 : vector<8x32xf32>
    %419 = arith.addf %371, %418 : vector<8x32xf32>
    %c0_115 = arith.constant 0 : index
    %c0_116 = arith.constant 0 : index
    %420 = vector.load %arg15[%c0_115, %c0_116] : memref<1x32xf32, #tpu.memory_space<vmem>>, vector<1x32xf32>
    %c0_117 = arith.constant 0 : index
    %c0_118 = arith.constant 0 : index
    %421 = vector.load %arg16[%c0_117, %c0_118] : memref<1x32xf32, #tpu.memory_space<vmem>>, vector<1x32xf32>
    %cst_119 = arith.constant dense<0.000000e+00> : vector<8xf32>
    %422 = vector.multi_reduction <add>, %419, %cst_119 [1] : vector<8x32xf32> to vector<8xf32>
    %423 = vector.shape_cast %422 : vector<8xf32> to vector<8x1xf32>
    %cst_120 = arith.constant 3.200000e+01 : f32
    %424 = vector.broadcast %cst_120 : f32 to vector<8x1xf32>
    %425 = arith.divf %423, %424 : vector<8x1xf32>
    %426 = vector.broadcast %425 : vector<8x1xf32> to vector<8x32xf32>
    %427 = arith.subf %419, %426 : vector<8x32xf32>
    %428 = arith.mulf %427, %427 : vector<8x32xf32>
    %cst_121 = arith.constant dense<0.000000e+00> : vector<8xf32>
    %429 = vector.multi_reduction <add>, %428, %cst_121 [1] : vector<8x32xf32> to vector<8xf32>
    %430 = vector.shape_cast %429 : vector<8xf32> to vector<8x1xf32>
    %cst_122 = arith.constant 3.200000e+01 : f32
    %431 = vector.broadcast %cst_122 : f32 to vector<8x1xf32>
    %432 = arith.divf %430, %431 : vector<8x1xf32>
    %433 = vector.broadcast %425 : vector<8x1xf32> to vector<8x32xf32>
    %434 = arith.subf %419, %433 : vector<8x32xf32>
    %cst_123 = arith.constant 9.99999974E-6 : f32
    %435 = vector.broadcast %cst_123 : f32 to vector<8x1xf32>
    %436 = arith.addf %432, %435 : vector<8x1xf32>
    %437 = math.rsqrt %436 : vector<8x1xf32>
    %438 = vector.broadcast %437 : vector<8x1xf32> to vector<8x32xf32>
    %439 = arith.mulf %434, %438 : vector<8x32xf32>
    %440 = vector.broadcast %420 : vector<1x32xf32> to vector<8x32xf32>
    %441 = arith.mulf %439, %440 : vector<8x32xf32>
    %442 = vector.broadcast %421 : vector<1x32xf32> to vector<8x32xf32>
    %443 = arith.addf %441, %442 : vector<8x32xf32>
    %c0_124 = arith.constant 0 : index
    %c0_125 = arith.constant 0 : index
    %c0_126 = arith.constant 0 : index
    %444 = vector.load %arg17[%c0_124, %c0_125, %c0_126] : memref<1x8x32xf32, #tpu.memory_space<vmem>>, vector<1x8x32xf32>
    %445 = vector.shape_cast %444 : vector<1x8x32xf32> to vector<8x32xf32>
    %446 = vector.shape_cast %443 : vector<8x32xf32> to vector<1x8x32xf32>
    tpu.vector_store %arg17[%c0_124, %c0_125, %c0_126], %446 {strides = array<i32>} : memref<1x8x32xf32, #tpu.memory_space<vmem>>, vector<1x8x32xf32>,
    return
  }
  func.func @transform_0(%arg0: i32) -> (i32, i32, i32) {
    %c0_i32 = arith.constant 0 : i32
    %c0_i32_0 = arith.constant 0 : i32
    %c0_i32_1 = arith.constant 0 : i32
    return %arg0, %c0_i32, %c0_i32_0 : i32, i32, i32
  }
  func.func @transform_1(%arg0: i32) -> (i32, i32) {
    %c0_i32 = arith.constant 0 : i32
    %c0_i32_0 = arith.constant 0 : i32
    %c0_i32_1 = arith.constant 0 : i32
    return %c0_i32, %c0_i32_0 : i32, i32
  }
  func.func @transform_2(%arg0: i32) -> (i32, i32) {
    %c0_i32 = arith.constant 0 : i32
    %c0_i32_0 = arith.constant 0 : i32
    %c0_i32_1 = arith.constant 0 : i32
    return %c0_i32, %c0_i32_0 : i32, i32
  }
  func.func @transform_3(%arg0: i32) -> (i32, i32) {
    %c0_i32 = arith.constant 0 : i32
    %c0_i32_0 = arith.constant 0 : i32
    %c0_i32_1 = arith.constant 0 : i32
    return %c0_i32, %c0_i32_0 : i32, i32
  }
  func.func @transform_4(%arg0: i32) -> (i32, i32) {
    %c0_i32 = arith.constant 0 : i32
    %c0_i32_0 = arith.constant 0 : i32
    %c0_i32_1 = arith.constant 0 : i32
    return %c0_i32, %c0_i32_0 : i32, i32
  }
  func.func @transform_5(%arg0: i32) -> (i32, i32) {
    %c0_i32 = arith.constant 0 : i32
    %c0_i32_0 = arith.constant 0 : i32
    %c0_i32_1 = arith.constant 0 : i32
    return %c0_i32, %c0_i32_0 : i32, i32
  }
  func.func @transform_6(%arg0: i32) -> (i32, i32) {
    %c0_i32 = arith.constant 0 : i32
    %c0_i32_0 = arith.constant 0 : i32
    %c0_i32_1 = arith.constant 0 : i32
    return %c0_i32, %c0_i32_0 : i32, i32
  }
  func.func @transform_7(%arg0: i32) -> (i32, i32) {
    %c0_i32 = arith.constant 0 : i32
    %c0_i32_0 = arith.constant 0 : i32
    %c0_i32_1 = arith.constant 0 : i32
    return %c0_i32, %c0_i32_0 : i32, i32
  }
  func.func @transform_8(%arg0: i32) -> (i32, i32) {
    %c0_i32 = arith.constant 0 : i32
    %c0_i32_0 = arith.constant 0 : i32
    %c0_i32_1 = arith.constant 0 : i32
    return %c0_i32, %c0_i32_0 : i32, i32
  }
  func.func @transform_9(%arg0: i32) -> (i32, i32) {
    %c0_i32 = arith.constant 0 : i32
    %c0_i32_0 = arith.constant 0 : i32
    %c0_i32_1 = arith.constant 0 : i32
    return %c0_i32, %c0_i32_0 : i32, i32
  }
  func.func @transform_10(%arg0: i32) -> (i32, i32) {
    %c0_i32 = arith.constant 0 : i32
    %c0_i32_0 = arith.constant 0 : i32
    %c0_i32_1 = arith.constant 0 : i32
    return %c0_i32, %c0_i32_0 : i32, i32
  }
  func.func @transform_11(%arg0: i32) -> (i32, i32) {
    %c0_i32 = arith.constant 0 : i32
    %c0_i32_0 = arith.constant 0 : i32
    %c0_i32_1 = arith.constant 0 : i32
    return %c0_i32, %c0_i32_0 : i32, i32
  }
  func.func @transform_12(%arg0: i32) -> (i32, i32) {
    %c0_i32 = arith.constant 0 : i32
    %c0_i32_0 = arith.constant 0 : i32
    %c0_i32_1 = arith.constant 0 : i32
    return %c0_i32, %c0_i32_0 : i32, i32
  }
  func.func @transform_13(%arg0: i32) -> (i32, i32) {
    %c0_i32 = arith.constant 0 : i32
    %c0_i32_0 = arith.constant 0 : i32
    %c0_i32_1 = arith.constant 0 : i32
    return %c0_i32, %c0_i32_0 : i32, i32
  }
  func.func @transform_14(%arg0: i32) -> (i32, i32) {
    %c0_i32 = arith.constant 0 : i32
    %c0_i32_0 = arith.constant 0 : i32
    %c0_i32_1 = arith.constant 0 : i32
    return %c0_i32, %c0_i32_0 : i32, i32
  }
  func.func @transform_15(%arg0: i32) -> (i32, i32) {
    %c0_i32 = arith.constant 0 : i32
    %c0_i32_0 = arith.constant 0 : i32
    %c0_i32_1 = arith.constant 0 : i32
    return %c0_i32, %c0_i32_0 : i32, i32
  }
  func.func @transform_16(%arg0: i32) -> (i32, i32, i32) {
    %c0_i32 = arith.constant 0 : i32
    %c0_i32_0 = arith.constant 0 : i32
    %c0_i32_1 = arith.constant 0 : i32
    return %arg0, %c0_i32, %c0_i32_0 : i32, i32, i32
  }
}

</mosaic_0001>

<bundles_post_ra>
// kernel: t5_decoder_forward.3
= control target key start
LH: loop header
LB: loop body
LE: loop exit
PB: predicated region body
PF: predicated region fallthrough
CT: control target
= control target key end

     0   :  { %s2868_s0 = inlined_call_operand.vmem [shape: f32[2,8,32], index: 0, kind: input, shape index: {}]   ;;  %s2869_s1 = inlined_call_operand.vmem [shape: f32[8,4], index: 1, kind: input, shape index: {}]   ;;  %s2870_s2 = inlined_call_operand.vmem [shape: f32[1,32], index: 2, kind: input, shape index: {}]   ;;  %s2871_s3 = inlined_call_operand.vmem [shape: f32[1,32], index: 3, kind: input, shape index: {}]   ;;  %s2872_s4 = inlined_call_operand.vmem [shape: f32[32,96], index: 4, kind: input, shape index: {}]   ;;  %s2873_s5 = inlined_call_operand.vmem [shape: f32[1,96], index: 5, kind: input, shape index: {}]   ;;  %s2874_s6 = inlined_call_operand.vmem [shape: f32[32,32], index: 6, kind: input, shape index: {}]   ;;  %s2875_s7 = inlined_call_operand.vmem [shape: f32[1,32], index: 7, kind: input, shape index: {}]   ;;  %s2876_s8 = inlined_call_operand.vmem [shape: f32[1,32], index: 8, kind: input, shape index: {}]   ;;  %s2877_s9 = inlined_call_operand.vmem [shape: f32[1,32], index: 9, kind: input, shape index: {}]   ;;  %s2878_s10 = inlined_call_operand.vmem [shape: f32[32,64], index: 10, kind: input, shape index: {}]   ;;  %s2879_s11 = inlined_call_operand.vmem [shape: f32[1,64], index: 11, kind: input, shape index: {}]   ;;  %s2880_s12 = inlined_call_operand.vmem [shape: f32[64,32], index: 12, kind: input, shape index: {}]   ;;  %s2881_s13 = inlined_call_operand.vmem [shape: f32[1,32], index: 13, kind: input, shape index: {}]   ;;  %s2882_s14 = inlined_call_operand.vmem [shape: f32[1,32], index: 14, kind: input, shape index: {}]   ;;  %s2883_s15 = inlined_call_operand.vmem [shape: f32[1,32], index: 15, kind: input, shape index: {}]   ;;  %s2884_s16 = inlined_call_operand.hbm [shape: f32[2,8,32], index: 16, kind: output, shape index: {}]  }
   0x1   :  { %2892 = sst [smem:[#allocation11_spill]] %s2868_s0 }
   0x2   :  { %2893 = sst [smem:[#allocation12_spill]] %s2869_s1 }
   0x3   :  { %2894 = sst [smem:[#allocation13_spill]] %s2870_s2 }
   0x4   :  { %2895 = sst [smem:[#allocation14_spill]] %s2871_s3 }
   0x5   :  { %2896 = sst [smem:[#allocation15_spill]] %s2872_s4 }
   0x6   :  { %2897 = sst [smem:[#allocation16_spill]] %s2873_s5 }
   0x7   :  { %2898 = sst [smem:[#allocation17_spill]] %s2884_s16 }
   0x8   :  { %21 = vsyncpa [#allocation3], 0 }
   0x9   :  { %23 = vsyncpa [#allocation3 + $0x1], 0  ;;  %s2425_s21 = smov 0   ;;  %s2427_s22 = smov 0  }
   0xa   :  { %s2429_s23 = smov 0   ;;  %s2431_s24 = smov 0  }
   0xb LB: > { %2899 = sst [smem:[#allocation5_spill]] %s2311_s21  ;;  %s2446_s25 = sadd.s32 4294967295, %s2323_s24   ;;  %s2323_s24 = sphi %s2431_s24, %s2917_s24   ;;  %s2319_s23 = sphi %s2429_s23, %s2919_s23   ;;  %s2315_s22 = sphi %s2427_s22, %s2921_s22   ;;  %s2311_s21 = sphi %s2425_s21, %s2920_s21  }
   0xc   : > { %2900 = sst [smem:[#allocation6_spill]] %s2319_s23  ;;  %s1921_s26 = sadd.s32 4294967294, %s2323_s24  }
   0xd   : > { %2901 = sst [smem:[#allocation7_spill]] %s2323_s24  ;;  %s2450_s27 = sadd.s32 1, %s2323_s24  }
   0xe   : > { %2902 = sst [smem:[#allocation8_spill]] %s2450_s27  ;;  %s377_s28 = sadd.s32 1, %s2319_s23 }
   0xf   : > { %s374_s29 = ssub.s32 %s2323_s24, %s2450_s27  ;;  %p387_p0 = scmp.ne.s32.totalorder %s2319_s23, %s2315_s22 }
  0x10   : > { %p375_p1 = scmp.eq.s32.totalorder %s374_s29, 0  ;;  %p388_p2 = scmp.eq.s32.totalorder %s2446_s25, 1 }
  0x11   : > { %p393_p3 = scmp.ne.s32.totalorder %s2315_s22, %s2311_s21  ;;  %p394_p4 = scmp.eq.s32.totalorder %s1921_s26, 1 }
  0x12   : > { %s2461_s30 = scalar_select %p375_p1, %s2319_s23, %s377_s28  }
  0x13   : > { %p2463_p5 = por %p388_p2, %p387_p0  ;;  %p2467_p6 = por %p394_p4, %p393_p3 }
  0x14   : > { %2903 = sst [smem:[#allocation9_spill]] %s2461_s30  ;;  %p1924_p7 = scmp.ge.s32.totalorder %s2323_s24, 1 }
  0x15   : > { %s2905_s17 = scalar_select %p2467_p6, 1, 0 }
  0x16   : > { %p464_p8 = scmp.lt.s32.totalorder %s2323_s24, 3 }
  0x17   : > { %2906 = sst [smem:[#allocation10_spill]] %s2905_s17 }
  0x18   : > { %p465_p9 = pnand %p1924_p7, %p464_p8 }
  0x19   : > { %p513_p10 = scmp.lt.s32.totalorder (!%p465_p9), %s2446_s25, 1  ;;  %vm727_vm0 = vcmask (!%p465_p9), 261120   ;;  %s2907_s28 = sld [smem:[#allocation11_spill]] (!%p465_p9)  ;;  %v2325_v10 = vmov (!%p465_p9), 0.0|0.0   ;;  %vm2326_vm1 = vmmov (!%p465_p9), 0   ;;  %v2327_v13 = vmov (!%p465_p9), 0.0  }
  0x1a   : > { %468 = sbr.rel (%p465_p9) target bundleno = 2975 (0xb9f), region = 84  ;;  %s2908_s4 = sld [smem:[#allocation15_spill]] (!%p465_p9)  ;;  %2090 = vmatprep.subr.bf16.mxu1 (!%p465_p9), %v2325_v10  ;;  %2006 = vmatprep.mubr.msk.f32.mxu1 (!%p465_p9), %vm2326_vm1, %v2327_v13  ;;  %vm849_vm2 = vcmask (!%p465_p9), 64512   ;;  %v518_v61 = vlaneseq (!%p465_p9)  ;;  %vm1517_vm13 = vcmask (!%p465_p9), 130048   ;;  %vm1519_vm14 = vcmask (!%p465_p9), 195584  }
  0x1b   : > { %2019 = vmatprep.subr.mxu0 (!%p465_p9), %v2327_v13  ;;  %2021 = vmatprep.mubr.msk.f32.mxu0 (!%p465_p9), %vm2326_vm1, %v2327_v13  ;;  %s2909_s2 = sld [smem:[#allocation13_spill]] (!%p465_p9)  ;;  %s2910_s3 = sld [smem:[#allocation14_spill]] (!%p465_p9)  ;;  %vm1743_vm15 = vcmask (!%p465_p9), 523264  }
  0x1c   : > { %s2911_s5 = sld [smem:[#allocation16_spill]] (!%p465_p9)  ;;  %s2330_s23 = smov (!%p465_p9), 112  }
  0x1d   : > { %s2331_s30 = smov (!%p465_p9), 96   ;;  %s2912_s1 = sld [smem:[#allocation12_spill]] (!%p465_p9) }
  0x1e   : > { %s2333_s26 = smov (!%p465_p9), 126  }
  0x20   : > { %v756_v7 = vld [vmem:[%s2908_s4] sm:$0xff] (!%p465_p9)  ;;  %v757_v8 = vld [vmem:[%s2908_s4 + $0x8] sm:$0xff] (!%p465_p9)  ;;  %v758_v9 = vld [vmem:[%s2908_s4 + $0x10] sm:$0xff] (!%p465_p9) }
  0x21   : > { %s514_s18 = scalar_select %p513_p10, %s2446_s25, 1  ;;  %v2091_v11 = vpack.c.bf16 %v757_v8, %v756_v7  ;;  %v759_v12 = vld [vmem:[%s2908_s4 + $0x18] sm:$0xff]  ;;  %v1928_v19 = vld [vmem:[%s2909_s2] ss:$0 sm:$0xff] }
  0x22   : > { %v2094_v14 = vpack.c.bf16 %v759_v12, %v758_v9  ;;  %v1929_v21 = vld [vmem:[%s2910_s3] ss:$0 sm:$0xff] }
  0x23   : > { %s1926_s19 = sshll.u32 %s514_s18, 3  ;;  %2092 = vmatpush3.bf16.msra.mxu1 %v2091_v11  ;;  %v1930_v24 = vld [vmem:[%s2911_s5] ss:$0 sm:$0xff] }
  0x24   : > { %s516_s29 = scalar_lea.vmem %s2907_s28, %s1926_s19  ;;  %2093 = vmatprep.subr.bf16.mxu1 %v2325_v10  ;;  %s2328_s28 = smov 104   ;;  %v529_v28 = vld [vmem:[%s2912_s1] sm:$0xff] }
  0x25   : > { %v2478_v0 = vld [vmem:[%s516_s29] sm:$0xff]  ;;  %s2329_s29 = smov 120   ;;  %2120 = vpush %v529_v28  ;;  %v536_v29 = vrot.slane %v529_v28, 1  ;;  %v542_v30 = vrot.slane %v529_v28, 2  ;;  %s2332_s19 = smov 127   ;;  %v548_v31 = vrot.slane %v529_v28, 3 }
  0x26   : > { %v728_v1 = vsel %vm727_vm0, %v2478_v0, 0.0  ;;  %v554_v32 = vrot.slane %v529_v28, 4  ;;  %v560_v33 = vrot.slane %v529_v28, 5  ;;  %v566_v34 = vrot.slane %v529_v28, 6 }
  0x27   : > { %729 = vadd.xlane.f32.xlu0 %v728_v1  ;;  %2095 = vmatpush3.bf16.msra.mxu1 %v2094_v14  ;;  %2122 = vpush %v536_v29  ;;  %v572_v36 = vrot.slane %v529_v28, 7  ;;  %v2570_v1 = vshrl.u32 %v518_v61, 7 }
  0x28   : > { %2009 = vmatprep.subr.mxu1 %v2327_v13  ;;  %2124 = vpush %v542_v30 }
  0x29   : > { %2126 = vpush %v548_v31 }
  0x2a   : > { %2128 = vpush %v554_v32 }
  0x2b   : > { %2130 = vpush %v560_v33 }
  0x2c   : > { %2132 = vpush %v566_v34 }
  0x2d   : > { %2134 = vpush %v572_v36 }
  0xb4   : > { %v730_v2 = vpop.xlane.xlu0 %729 }
  0xb5   : > { %v732_v3 = vmul.f32 0.03125, %v730_v2  ;;  %v2572_v2 = vand.u32 127, %v518_v61 }
  0xb7   : > { %v733_v4 = vsub.f32 %v2478_v0, %v732_v3  ;;  %vm528_vm12 = vcmp.gt.s32.totalorder %v2572_v2, %v2570_v1 }
  0xb9   : > { %v734_v5 = vmul.f32 %v733_v4, %v733_v4 }
  0xbb   : > { %v735_v6 = vsel %vm727_vm0, %v734_v5, 0.0 }
  0xbc   : > { %736 = vadd.xlane.f32.xlu0 %v735_v6 }
 0x149   : > { %v737_v15 = vpop.xlane.xlu0 %736 }
 0x14a   : > { %v738_v16 = vmul.f32 0.03125, %v737_v15 }
 0x14c   : > { %v739_v17 = vadd.f32 1e-05, %v738_v16 }
 0x14e   : > { %2237 = vrsqrt.f32 %v739_v17 }
 0x158   : > { %v2238_v18 = vpop.eup %2237 }
 0x159   : > { %v741_v20 = vmul.f32 %v2238_v18, %v733_v4  ;;  %v522_v4 = vsub.s32 %v2572_v2, %v2570_v1 }
 0x15b   : > { %v748_v22 = vmul.f32 %v1928_v19, %v741_v20  ;;  %v524_v7 = vsub.s32 0, %v522_v4 }
 0x15d   : > { %v755_v23 = vadd.f32 %v1929_v21, %v748_v22  ;;  %v1927_v9 = vmin.u32 %v524_v7, %v522_v4 }
 0x15f   : > { %2007 = vmatmul.mubr.msk.f32.vlgmr.msra.gmra.mrb[0].mxu1 %vm727_vm0, %v755_v23  ;;  %vm526_vm3 = vcmp.lt.s32.totalorder %v1927_v9, 7 }
 0x160   : > { %2011 = vmatprep.mubr.msk.f32.mxu1 %vm2326_vm1, %v2327_v13  ;;  %v2576_v11 = vsel %vm526_vm3, %v1927_v9, 7 }
 0x161   : > { %vm530_vm4 = vcmp.eq.s32.totalorder %v2576_v11, 0  ;;  %vm535_vm5 = vcmp.eq.s32.totalorder %v2576_v11, 1  ;;  %vm541_vm6 = vcmp.eq.s32.totalorder %v2576_v11, 2  ;;  %vm547_vm7 = vcmp.eq.s32.totalorder %v2576_v11, 3 }
 0x162   : > { %vm553_vm8 = vcmp.eq.s32.totalorder %v2576_v11, 4  ;;  %vm559_vm9 = vcmp.eq.s32.totalorder %v2576_v11, 5  ;;  %vm565_vm10 = vcmp.eq.s32.totalorder %v2576_v11, 6  ;;  %vm571_vm11 = vcmp.eq.s32.totalorder %v2576_v11, 7 }
 0x232   : > { %v836_v25 = vpop.f32.mrb[0].mxu1 }
 0x233   : > { %v2516_v26 = vadd.f32 %v1930_v24, %v836_v25  ;;  %v2008_v27 = vpop.f32.mrb[1].mxu1 }
 0x235   : > { %845 = vrot.lane.b32.xlu0 %v2516_v26, %s2328_s28  ;;  %841 = vrot.lane.b32.xlu1 %v2516_v26, %s2329_s29  ;;  %s2334_s28 = smov 125   ;;  %s2121_s29 = spop %2120 }
 0x236   : > { %v532_v12 = vstv %s2121_s29 }
 0x237   : > { %v533_v15 = vsel %vm530_vm4, %v532_v12, 0.0 }
 0x239   : > { %843 = vrot.lane.b32.xlu1 %v2516_v26, %s2330_s23  ;;  %590 = vrot.lane.b32.xlu0 %v542_v30, %s2332_s19  ;;  %s2123_s23 = spop %2122 }
 0x23a   : > { %v538_v14 = vstv %s2123_s23 }
 0x23b   : > { %v539_v16 = vsel %vm535_vm5, %v538_v14, 0.0 }
 0x23c   : > { %v540_v18 = vadd.f32 %v539_v16, %v533_v15 }
 0x23d   : > { %847 = vrot.lane.b32.xlu1 %v2516_v26, %s2331_s30  ;;  %602 = vrot.lane.b32.xlu0 %v554_v32, %s2332_s19 }
 0x241   : > { %614 = vrot.lane.b32.xlu0 %v566_v34, %s2332_s19 }
 0x245   : > { %627 = vrot.lane.b32.xlu0 %v529_v28, %s2333_s26 }
 0x249   : > { %639 = vrot.lane.b32.xlu0 %v542_v30, %s2333_s26 }
 0x24d   : > { %651 = vrot.lane.b32.xlu0 %v554_v32, %s2333_s26 }
 0x251   : > { %663 = vrot.lane.b32.xlu0 %v566_v34, %s2333_s26 }
 0x255   : > { %676 = vrot.lane.b32.xlu0 %v529_v28, %s2334_s28 }
 0x259   : > { %688 = vrot.lane.b32.xlu0 %v542_v30, %s2334_s28 }
 0x25d   : > { %700 = vrot.lane.b32.xlu0 %v554_v32, %s2334_s28 }
 0x261   : > { %712 = vrot.lane.b32.xlu0 %v566_v34, %s2334_s28 }
 0x2a7   : > { %v2528_v35 = vpop.permute.xlu1 %841  ;;  %v2537_v38 = vpop.permute.xlu0 %845 }
 0x2a8   : > { %924 = vrot.lane.b32.xlu1 %v2528_v35, %s2331_s30 }
 0x2ab   : > { %v2533_v37 = vpop.permute.xlu1 %843  ;;  %v591_v40 = vpop.permute.xlu0 %590 }
 0x2ac   : > { %1000 = vrot.lane.b32.xlu1 %v2533_v37, %s2331_s30 }
 0x2af   : > { %v848_v39 = vpop.permute.xlu1 %847  ;;  %v603_v42 = vpop.permute.xlu0 %602 }
 0x2b0   : > { %1076 = vrot.lane.b32.xlu1 %v2537_v38, %s2331_s30  ;;  %2010 = vmatpush3.xpose.msk.msra.mxu1 %vm849_vm2, %v848_v39  ;;  %s2125_s30 = spop %2124 }
 0x2b1   : > { %2014 = vmatprep.subr.mxu1 %v2327_v13  ;;  %v544_v17 = vstv %s2125_s30  ;;  %s2127_s18 = spop %2126 }
 0x2b2   : > { %v545_v19 = vsel %vm541_vm6, %v544_v17, 0.0  ;;  %v550_v20 = vstv %s2127_s18  ;;  %s2129_s20 = spop %2128 }
 0x2b3   : > { %2012 = vmatmul.mubr.msk.f32.vlgmr.msra.gmra.mrb[2].mxu1 %vm849_vm2, %v2516_v26  ;;  %v615_v45 = vpop.permute.xlu0 %614  ;;  %v546_v21 = vadd.f32 %v545_v19, %v540_v18  ;;  %v551_v22 = vsel %vm547_vm7, %v550_v20, 0.0  ;;  %v556_v23 = vstv %s2129_s20 }
 0x2b4   : > { %578 = vrot.lane.b32.xlu1 %v529_v28, %s2332_s19  ;;  %2016 = vmatprep.mubr.msk.f32.mxu1 %vm2326_vm1, %v2327_v13  ;;  %v557_v25 = vsel %vm553_vm8, %v556_v23, 0.0 }
 0x2b5   : > { %v552_v24 = vadd.f32 %v551_v22, %v546_v21 }
 0x2b7   : > { %v628_v47 = vpop.permute.xlu0 %627  ;;  %v558_v28 = vadd.f32 %v557_v25, %v552_v24 }
 0x2b8   : > { %584 = vrot.lane.b32.xlu1 %v536_v29, %s2332_s19 }
 0x2bb   : > { %v640_v49 = vpop.permute.xlu0 %639 }
 0x2bc   : > { %596 = vrot.lane.b32.xlu1 %v548_v31, %s2332_s19 }
 0x2bf   : > { %v652_v52 = vpop.permute.xlu0 %651 }
 0x2c0   : > { %608 = vrot.lane.b32.xlu1 %v560_v33, %s2332_s19 }
 0x2c3   : > { %v664_v54 = vpop.permute.xlu0 %663 }
 0x2c4   : > { %620 = vrot.lane.b32.xlu1 %v572_v36, %s2332_s19  ;;  %s2131_s19 = spop %2130 }
 0x2c5   : > { %v562_v27 = vstv %s2131_s19 }
 0x2c7   : > { %v677_v57 = vpop.permute.xlu0 %676 }
 0x2c8   : > { %633 = vrot.lane.b32.xlu1 %v536_v29, %s2333_s26 }
 0x2cb   : > { %v689_v59 = vpop.permute.xlu0 %688 }
 0x2cc   : > { %645 = vrot.lane.b32.xlu1 %v548_v31, %s2333_s26 }
 0x2cf   : > { %v701_v63 = vpop.permute.xlu0 %700 }
 0x2d0   : > { %657 = vrot.lane.b32.xlu1 %v560_v33, %s2333_s26 }
 0x2d3   : > { %v713_v5 = vpop.permute.xlu0 %712 }
 0x2d4   : > { %669 = vrot.lane.b32.xlu1 %v572_v36, %s2333_s26  ;;  %s2133_s26 = spop %2132 }
 0x2d5   : > { %v568_v30 = vstv %s2133_s26 }
 0x2d6   : > { %v569_v32 = vsel %vm565_vm10, %v568_v30, 0.0 }
 0x2d8   : > { %682 = vrot.lane.b32.xlu1 %v536_v29, %s2334_s28  ;;  %v563_v29 = vsel %vm559_vm9, %v562_v27, 0.0 }
 0x2dc   : > { %694 = vrot.lane.b32.xlu1 %v548_v31, %s2334_s28  ;;  %v564_v31 = vadd.f32 %v563_v29, %v558_v28 }
 0x2de   : > { %v570_v34 = vadd.f32 %v569_v32, %v564_v31 }
 0x2e0   : > { %706 = vrot.lane.b32.xlu1 %v560_v33, %s2334_s28 }
 0x2e4   : > { %718 = vrot.lane.b32.xlu1 %v572_v36, %s2334_s28  ;;  %s2135_s28 = spop %2134 }
 0x2e5   : > { %v574_v33 = vstv %s2135_s28 }
 0x2e6   : > { %v575_v36 = vsel %vm571_vm11, %v574_v33, 0.0 }
 0x2e7   : > { %v576_v39 = vadd.f32 %v575_v36, %v570_v34 }
 0x31a   : > { %v925_v41 = vpop.permute.xlu1 %924 }
 0x31b   : > { %2015 = vmatpush3.xpose.msk.msra.mxu1 %vm849_vm2, %v925_v41 }
 0x31c   : > { %2024 = vmatprep.subr.mxu1 %v2327_v13 }
 0x31e   : > { %2017 = vmatmul.mubr.msk.f32.vlgmr.msra.gmra.mrb[4].mxu1 %vm849_vm2, %v2528_v35  ;;  %v1001_v43 = vpop.permute.xlu1 %1000 }
 0x31f   : > { %2020 = vmatpush3.xpose.msk.msra.mxu0 %vm849_vm2, %v1001_v43  ;;  %2026 = vmatprep.mubr.msk.f32.mxu1 %vm2326_vm1, %v2327_v13 }
 0x320   : > { %2029 = vmatprep.subr.mxu0 %v2327_v13 }
 0x322   : > { %2022 = vmatmul.mubr.msk.f32.vlgmr.msra.gmra.mrb[0].mxu0 %vm849_vm2, %v2533_v37  ;;  %v1077_v44 = vpop.permute.xlu1 %1076 }
 0x323   : > { %2025 = vmatpush3.xpose.msk.msra.mxu1 %vm849_vm2, %v1077_v44  ;;  %2031 = vmatprep.mubr.msk.f32.mxu0 %vm2326_vm1, %v2327_v13 }
 0x324   : > { %2034 = vmatprep.subr.mxu1 %v2327_v13 }
 0x326   : > { %2027 = vmatmul.mubr.msk.f32.vlgmr.msra.gmra.mrb[6].mxu1 %vm849_vm2, %v2537_v38  ;;  %v579_v46 = vpop.permute.xlu1 %578 }
 0x327   : > { %2136 = vpush %v579_v46  ;;  %2036 = vmatprep.mubr.msk.f32.mxu1 %vm2326_vm1, %v2327_v13 }
 0x32a   : > { %v585_v48 = vpop.permute.xlu1 %584 }
 0x32b   : > { %2138 = vpush %v585_v48 }
 0x32c   : > { %2140 = vpush %v591_v40  ;;  %v577_v40 = vsel %vm528_vm12, -1e+30, %v576_v39 }
 0x32e   : > { %v597_v50 = vpop.permute.xlu1 %596 }
 0x32f   : > { %2142 = vpush %v597_v50 }
 0x330   : > { %2144 = vpush %v603_v42 }
 0x332   : > { %v609_v51 = vpop.permute.xlu1 %608 }
 0x333   : > { %2146 = vpush %v609_v51 }
 0x334   : > { %2148 = vpush %v615_v45 }
 0x336   : > { %v621_v53 = vpop.permute.xlu1 %620 }
 0x337   : > { %2150 = vpush %v621_v53 }
 0x338   : > { %2152 = vpush %v628_v47 }
 0x33a   : > { %v634_v55 = vpop.permute.xlu1 %633 }
 0x33b   : > { %2154 = vpush %v634_v55 }
 0x33c   : > { %2156 = vpush %v640_v49 }
 0x33e   : > { %v646_v56 = vpop.permute.xlu1 %645 }
 0x33f   : > { %2158 = vpush %v646_v56 }
 0x340   : > { %2160 = vpush %v652_v52 }
 0x342   : > { %v658_v58 = vpop.permute.xlu1 %657 }
 0x343   : > { %2162 = vpush %v658_v58 }
 0x344   : > { %2164 = vpush %v664_v54 }
 0x346   : > { %v670_v60 = vpop.permute.xlu1 %669 }
 0x347   : > { %2166 = vpush %v670_v60 }
 0x348   : > { %2168 = vpush %v677_v57 }
 0x34a   : > { %v683_v62 = vpop.permute.xlu1 %682 }
 0x34b   : > { %2170 = vpush %v683_v62 }
 0x34c   : > { %2172 = vpush %v689_v59 }
 0x34e   : > { %v695_v3 = vpop.permute.xlu1 %694 }
 0x34f   : > { %2174 = vpush %v695_v3 }
 0x350   : > { %2176 = vpush %v701_v63 }
 0x352   : > { %v707_v6 = vpop.permute.xlu1 %706 }
 0x353   : > { %2178 = vpush %v707_v6 }
 0x354   : > { %2180 = vpush %v713_v5 }
 0x356   : > { %v719_v8 = vpop.permute.xlu1 %718 }
 0x357   : > { %2182 = vpush %v719_v8 }
 0x358   : > { %s2137_s29 = spop %2136 }
 0x359   : > { %v581_v46 = vstv %s2137_s29 }
 0x35a   : > { %v582_v48 = vsel %vm530_vm4, %v581_v46, 0.0 }
 0x35c   : > { %s2139_s23 = spop %2138 }
 0x35d   : > { %s2141_s30 = spop %2140  ;;  %v587_v47 = vstv %s2139_s23 }
 0x35e   : > { %v588_v49 = vsel %vm535_vm5, %v587_v47, 0.0  ;;  %v593_v50 = vstv %s2141_s30 }
 0x35f   : > { %v589_v53 = vadd.f32 %v588_v49, %v582_v48  ;;  %v594_v54 = vsel %vm541_vm6, %v593_v50, 0.0 }
 0x360   : > { %s2611_s18 = spop %2142 }
 0x361   : > { %s2613_s20 = spop %2144  ;;  %v599_v57 = vstv %s2611_s18  ;;  %v595_v61 = vadd.f32 %v594_v54, %v589_v53 }
 0x362   : > { %v600_v63 = vsel %vm547_vm7, %v599_v57, 0.0  ;;  %v605_v6 = vstv %s2613_s20 }
 0x363   : > { %v601_v9 = vadd.f32 %v600_v63, %v595_v61  ;;  %v606_v15 = vsel %vm553_vm8, %v605_v6, 0.0 }
 0x364   : > { %s2615_s19 = spop %2146 }
 0x365   : > { %s2617_s26 = spop %2148  ;;  %v611_v18 = vstv %s2615_s19  ;;  %v607_v21 = vadd.f32 %v606_v15, %v601_v9  ;;  %s2336_s19 = smov 8  }
 0x366   : > { %v612_v24 = vsel %vm559_vm9, %v611_v18, 0.0  ;;  %v617_v28 = vstv %s2617_s26  ;;  %s2337_s26 = smov 16  }
 0x367   : > { %v613_v31 = vadd.f32 %v612_v24, %v607_v21  ;;  %v618_v34 = vsel %vm565_vm10, %v617_v28, 0.0 }
 0x368   : > { %s2619_s28 = spop %2150 }
 0x369   : > { %s2153_s1 = spop %2152 }
 0x36a   : > { %v630_v51 = vstv %s2153_s1 }
 0x36b   : > { %v631_v55 = vsel %vm530_vm4, %v630_v51, 0.0 }
 0x36c   : > { %s2155_s2 = spop %2154 }
 0x36d   : > { %s2157_s3 = spop %2156  ;;  %v636_v52 = vstv %s2155_s2 }
 0x36e   : > { %v637_v56 = vsel %vm535_vm5, %v636_v52, 0.0  ;;  %v642_v58 = vstv %s2157_s3 }
 0x36f   : > { %v638_v62 = vadd.f32 %v637_v56, %v631_v55  ;;  %v643_v3 = vsel %vm541_vm6, %v642_v58, 0.0 }
 0x370   : > { %s2621_s4 = spop %2158 }
 0x371   : > { %s2623_s5 = spop %2160  ;;  %v648_v7 = vstv %s2621_s4  ;;  %v644_v12 = vadd.f32 %v643_v3, %v638_v62 }
 0x372   : > { %v649_v16 = vsel %vm547_vm7, %v648_v7, 0.0  ;;  %v654_v19 = vstv %s2623_s5 }
 0x373   : > { %v650_v22 = vadd.f32 %v649_v16, %v644_v12  ;;  %v655_v25 = vsel %vm553_vm8, %v654_v19, 0.0 }
 0x374   : > { %s2625_s27 = spop %2162 }
 0x375   : > { %s2627_s17 = spop %2164  ;;  %v660_v29 = vstv %s2625_s27  ;;  %v656_v32 = vadd.f32 %v655_v25, %v650_v22  ;;  %s2913_s27 = sld [smem:[#allocation17_spill]] }
 0x376   : > { %v661_v36 = vsel %vm559_vm9, %v660_v29, 0.0 }
 0x378   : > { %s2629_s21 = spop %2166 }
 0x379   : > { %s2169_s24 = spop %2168  ;;  %v672_v50 = vstv %s2629_s21 }
 0x37a   : > { %v679_v59 = vstv %s2169_s24  ;;  %v673_v55 = vsel %vm571_vm11, %v672_v50, 0.0 }
 0x37b   : > { %v680_v4 = vsel %vm530_vm4, %v679_v59, 0.0 }
 0x37c   : > { %s2171_s16 = spop %2170 }
 0x37d   : > { %v685_v60 = vstv %s2171_s16  ;;  %s2173_s29 = spop %2172  ;;  %s2335_s16 = smov 64  }
 0x37e   : > { %v686_v5 = vsel %vm535_vm5, %v685_v60, 0.0  ;;  %v691_v8 = vstv %s2173_s29 }
 0x37f   : > { %v687_v14 = vadd.f32 %v686_v5, %v680_v4  ;;  %v692_v17 = vsel %vm541_vm6, %v691_v8, 0.0 }
 0x380   : > { %s2175_s1 = spop %2174 }
 0x381   : > { %v697_v20 = vstv %s2175_s1  ;;  %s2177_s2 = spop %2176  ;;  %v693_v23 = vadd.f32 %v692_v17, %v687_v14 }
 0x382   : > { %v698_v27 = vsel %vm547_vm7, %v697_v20, 0.0  ;;  %v703_v30 = vstv %s2177_s2 }
 0x383   : > { %v699_v33 = vadd.f32 %v698_v27, %v693_v23  ;;  %v704_v39 = vsel %vm553_vm8, %v703_v30, 0.0 }
 0x384   : > { %s2179_s3 = spop %2178 }
 0x385   : > { %s2181_s4 = spop %2180  ;;  %v705_v46 = vadd.f32 %v704_v39, %v699_v33 }
 0x386   : > { %v920_v41 = vpop.f32.mrb[2].mxu1  ;;  %v715_v51 = vstv %s2181_s4  ;;  %s1955_s4 = sshll.u32 %s2446_s25, 7  ;;  %s2339_s25 = smov [#allocation2]  }
 0x387   : > { %v921_v42 = vadd.f32 %v920_v41, %v577_v40  ;;  %v2013_v43 = vpop.f32.mrb[3].mxu1  ;;  %v623_v40 = vstv %s2619_s28  ;;  %v666_v41 = vstv %s2627_s17  ;;  %v716_v56 = vsel %vm565_vm10, %v715_v51, 0.0  ;;  %s2338_s28 = smov 24   ;;  %s2825_s17 = scalar_lea.hbm %s2913_s27, %s1955_s4 }
 0x388   : > { %v619_v43 = vadd.f32 %v618_v34, %v613_v31  ;;  %v624_v47 = vsel %vm571_vm11, %v623_v40, 0.0  ;;  %v667_v48 = vsel %vm565_vm10, %v666_v41, 0.0  ;;  %s2183_s5 = spop %2182  ;;  %s2265_s18 = sshll.u32 %s2339_s25, 4  ;;  %s2266_s18 = int_to_ptr.vmem [resolvable:$false] %s2265_s18 }
 0x389   : > { %v2607_v44 = vmul.f32 0.35355338, %v921_v42  ;;  %v709_v42 = vstv %s2179_s3  ;;  %v721_v57 = vstv %s2183_s5  ;;  %s2267_s20 = scalar_lea.vmem %s2266_s18, 256 }
 0x38a   : > { %v710_v49 = vsel %vm559_vm9, %v709_v42, 0.0  ;;  %v625_v52 = vadd.f32 %v624_v47, %v619_v43  ;;  %v722_v3 = vsel %vm571_vm11, %v721_v57, 0.0  ;;  %v1521_v57 = vld [vmem:[%s2874_s6] sm:$0xff] }
 0x38b   : > { %v1156_v45 = vsel %vm849_vm2, %v2607_v44, -inf  ;;  %v711_v54 = vadd.f32 %v710_v49, %v705_v46 }
 0x38c   : > { %1157 = vmax.xlane.f32.xlu0 %v1156_v45  ;;  %v662_v45 = vadd.f32 %v661_v36, %v656_v32  ;;  %v626_v60 = vsel %vm528_vm12, -1e+30, %v625_v52 }
 0x38d   : > { %v717_v59 = vadd.f32 %v716_v56, %v711_v54 }
 0x38e   : > { %v668_v53 = vadd.f32 %v667_v48, %v662_v45 }
 0x38f   : > { %v723_v5 = vadd.f32 %v722_v3, %v717_v59 }
 0x390   : > { %v674_v58 = vadd.f32 %v673_v55, %v668_v53 }
 0x391   : > { %v724_v15 = vsel %vm528_vm12, -1e+30, %v723_v5 }
 0x392   : > { %v675_v6 = vsel %vm528_vm12, -1e+30, %v674_v58  ;;  %v1522_v58 = vld [vmem:[%s2874_s6 + $0x8] sm:$0xff] }
 0x393   : > { %v2097_v59 = vpack.c.bf16 %v1522_v58, %v1521_v57 }
 0x3f1   : > { %v996_v61 = vpop.f32.mrb[4].mxu1 }
 0x3f2   : > { %v997_v62 = vadd.f32 %v996_v61, %v626_v60  ;;  %v2018_v63 = vpop.f32.mrb[5].mxu1  ;;  %v1523_v60 = vld [vmem:[%s2874_s6 + $0x10] sm:$0xff]  ;;  %v1524_v61 = vld [vmem:[%s2874_s6 + $0x18] sm:$0xff] }
 0x3f4   : > { %v1153_v4 = vmul.f32 0.35355338, %v997_v62  ;;  %v2100_v62 = vpack.c.bf16 %v1524_v61, %v1523_v60 }
 0x3f5   : > { %v1072_v7 = vpop.f32.mrb[0].mxu0 }
 0x3f6   : > { %v1073_v8 = vadd.f32 %v1072_v7, %v675_v6  ;;  %v2023_v9 = vpop.f32.mrb[1].mxu0  ;;  %v1159_v12 = vsel %vm849_vm2, %v1153_v4, -inf }
 0x3f7   : > { %1160 = vmax.xlane.f32.xlu1 %v1159_v12 }
 0x3f8   : > { %v1154_v14 = vmul.f32 0.35355338, %v1073_v8 }
 0x3f9   : > { %v1148_v16 = vpop.f32.mrb[6].mxu1 }
 0x3fa   : > { %v1149_v11 = vadd.f32 %v1148_v16, %v724_v15  ;;  %v2028_v17 = vpop.f32.mrb[7].mxu1  ;;  %v1162_v18 = vsel %vm849_vm2, %v1154_v14, -inf }
 0x3fb   : > { %1163 = vmax.xlane.f32.xlu0 %v1162_v18 }
 0x3fc   : > { %v1155_v19 = vmul.f32 0.35355338, %v1149_v11  ;;  %v1944_v11 = vld [vmem:[%s2875_s7] ss:$0 sm:$0xff] }
 0x3fe   : > { %v1165_v20 = vsel %vm849_vm2, %v1155_v19, -inf }
 0x3ff   : > { %1166 = vmax.xlane.f32.xlu0 %v1165_v20 }
 0x408   : > { %1200 = vrot.lane.b32.xlu1 %v2516_v26, %s2335_s16 }
 0x419   : > { %v1158_v21 = vpop.xlane.xlu0 %1157 }
 0x41a   : > { %v1168_v22 = vsub.f32 %v2607_v44, %v1158_v21 }
 0x41c   : > { %v1172_v23 = vmul.f32 1.442695, %v1168_v22 }
 0x41e   : > { %2239 = vpow2.f32 %v1172_v23 }
 0x428   : > { %v2240_v1 = vpop.eup %2239 }
 0x429   : > { %v1180_v2 = vsel %vm849_vm2, %v2240_v1, 0.0 }
 0x42c   : > { %1181 = vadd.xlane.f32.xlu1 %v1180_v2 }
 0x484   : > { %v1161_v24 = vpop.xlane.xlu1 %1160 }
 0x485   : > { %v1169_v25 = vsub.f32 %v1153_v4, %v1161_v24  ;;  %v1635_v24 = vld [vmem:[%s2878_s10] sm:$0xff] }
 0x487   : > { %v1174_v27 = vmul.f32 1.442695, %v1169_v25 }
 0x488   : > { %v1164_v28 = vpop.xlane.xlu0 %1163  ;;  %v1201_v29 = vpop.permute.xlu1 %1200 }
 0x489   : > { %2241 = vpow2.f32 %v1174_v27  ;;  %v1170_v30 = vsub.f32 %v1154_v14, %v1164_v28  ;;  %2030 = vmatpush3.msra.mxu0 %v1201_v29  ;;  %v1637_v27 = vld [vmem:[%s2878_s10 + $0x10] sm:$0xff]  ;;  %v1638_v28 = vld [vmem:[%s2878_s10 + $0x18] sm:$0xff] }
 0x48a   : > { %2039 = vmatprep.subr.mxu0 %v2327_v13  ;;  %v2106_v29 = vpack.c.bf16 %v1638_v28, %v1637_v27 }
 0x48b   : > { %v1176_v26 = vmul.f32 1.442695, %v1170_v30 }
 0x48c   : > { %v1167_v31 = vpop.xlane.xlu0 %1166 }
 0x48d   : > { %2243 = vpow2.f32 %v1176_v26  ;;  %v1171_v44 = vsub.f32 %v1155_v19, %v1167_v31 }
 0x48f   : > { %v1178_v32 = vmul.f32 1.442695, %v1171_v44 }
 0x491   : > { %2245 = vpow2.f32 %v1178_v32  ;;  %v1946_v32 = vld [vmem:[%s2876_s8] ss:$0 sm:$0xff] }
 0x493   : > { %v2242_v33 = vpop.eup %2241 }
 0x494   : > { %v1183_v34 = vsel %vm849_vm2, %v2242_v33, 0.0 }
 0x495   : > { %1184 = vadd.xlane.f32.xlu0 %v1183_v34  ;;  %v1947_v34 = vld [vmem:[%s2877_s9] ss:$0 sm:$0xff] }
 0x497   : > { %v2244_v36 = vpop.eup %2243 }
 0x498   : > { %v1186_v39 = vsel %vm849_vm2, %v2244_v36, 0.0 }
 0x499   : > { %1187 = vadd.xlane.f32.xlu1 %v1186_v39 }
 0x49b   : > { %v2246_v40 = vpop.eup %2245 }
 0x49c   : > { %v1189_v41 = vsel %vm849_vm2, %v2246_v40, 0.0 }
 0x49d   : > { %1190 = vadd.xlane.f32.xlu0 %v1189_v41  ;;  %v1729_v41 = vld [vmem:[%s2880_s12 + $0x8] sm:$0xff] }
 0x4aa   : > { %1352 = vrot.lane.b32.xlu1 %v2533_v37, %s2335_s16 }
 0x4ae   : > { %1428 = vrot.lane.b32.xlu1 %v2537_v38, %s2335_s16 }
 0x4b3   : > { %1276 = vrot.lane.b32.xlu0 %v2528_v35, %s2335_s16 }
 0x4b9   : > { %v1182_v42 = vpop.xlane.xlu1 %1181 }
 0x4ba   : > { %2247 = vrcp.f32 %v1182_v42 }
 0x4c4   : > { %v2248_v43 = vpop.eup %2247 }
 0x4c5   : > { %v1196_v45 = vmul.f32 %v2248_v43, %v2240_v1  ;;  %v1730_v43 = vld [vmem:[%s2880_s12 + $0x10] sm:$0xff] }
 0x4c7   : > { %2032 = vmatmul.mubr.msk.f32.vlgmr.msra.gmra.mrb[2].mxu0 %vm849_vm2, %v1196_v45  ;;  %v1731_v45 = vld [vmem:[%s2880_s12 + $0x18] sm:$0xff] }
 0x4c8   : > { %2041 = vmatprep.mubr.msk.f32.mxu0 %vm2326_vm1, %v2327_v13 }
 0x522   : > { %v1185_v46 = vpop.xlane.xlu0 %1184 }
 0x523   : > { %2249 = vrcp.f32 %v1185_v46  ;;  %v2112_v46 = vpack.c.bf16 %v1731_v45, %v1730_v43 }
 0x526   : > { %v1188_v47 = vpop.xlane.xlu1 %1187 }
 0x527   : > { %2251 = vrcp.f32 %v1188_v47  ;;  %v1732_v47 = vld [vmem:[%s2880_s12 + $0x20] sm:$0xff] }
 0x52a   : > { %v1353_v37 = vpop.permute.xlu1 %1352  ;;  %v1191_v48 = vpop.xlane.xlu0 %1190 }
 0x52b   : > { %2253 = vrcp.f32 %v1191_v48  ;;  %2040 = vmatpush3.msra.mxu0 %v1353_v37  ;;  %v1733_v37 = vld [vmem:[%s2880_s12 + $0x28] sm:$0xff] }
 0x52c   : > { %2096 = vmatprep.subr.bf16.mxu0 %v2325_v10  ;;  %v2115_v48 = vpack.c.bf16 %v1733_v37, %v1732_v47 }
 0x52d   : > { %v2250_v35 = vpop.eup %2249 }
 0x52e   : > { %v1197_v38 = vmul.f32 %v2250_v35, %v2242_v33  ;;  %v1277_v49 = vpop.permute.xlu0 %1276  ;;  %v1429_v50 = vpop.permute.xlu1 %1428  ;;  %v1734_v35 = vld [vmem:[%s2880_s12 + $0x30] sm:$0xff] }
 0x52f   : > { %2035 = vmatpush3.msra.mxu1 %v1277_v49 }
 0x530   : > { %2037 = vmatmul.mubr.msk.f32.vlgmr.msra.gmra.mrb[8].mxu1 %vm849_vm2, %v1197_v38  ;;  %2044 = vmatprep.subr.mxu1 %v2327_v13  ;;  %v1735_v38 = vld [vmem:[%s2880_s12 + $0x38] sm:$0xff] }
 0x531   : > { %v2252_v51 = vpop.eup %2251  ;;  %2045 = vmatpush3.msra.mxu1 %v1429_v50  ;;  %2046 = vmatprep.mubr.msk.f32.mxu1 %vm2326_vm1, %v2327_v13  ;;  %v2118_v49 = vpack.c.bf16 %v1735_v38, %v1734_v35  ;;  %v1948_v50 = vld [vmem:[%s2879_s11] ss:$0 sm:$0xff] }
 0x532   : > { %v1198_v52 = vmul.f32 %v2252_v51, %v2244_v36  ;;  %2102 = vmatprep.subr.bf16.mxu1 %v2325_v10 }
 0x534   : > { %2042 = vmatmul.mubr.msk.f32.vlgmr.msra.gmra.mrb[4].mxu0 %vm849_vm2, %v1198_v52 }
 0x535   : > { %v2254_v53 = vpop.eup %2253  ;;  %2057 = vmatprep.mubr.msk.f32.mxu0 %vm2326_vm1, %v2327_v13  ;;  %2098 = vmatpush3.bf16.msra.mxu0 %v2097_v59 }
 0x536   : > { %v1199_v54 = vmul.f32 %v2254_v53, %v2246_v40  ;;  %2099 = vmatprep.subr.bf16.mxu0 %v2325_v10  ;;  %v1728_v40 = vld [vmem:[%s2880_s12] sm:$0xff] }
 0x537   : > { %v2109_v42 = vpack.c.bf16 %v1729_v41, %v1728_v40 }
 0x538   : > { %2047 = vmatmul.mubr.msk.f32.vlgmr.msra.gmra.mrb[10].mxu1 %vm849_vm2, %v1199_v54 }
 0x539   : > { %2068 = vmatprep.mubr.msk.f32.mxu1 %vm2326_vm1, %v2327_v13  ;;  %2101 = vmatpush3.bf16.msra.mxu0 %v2100_v62 }
 0x53a   : > { %2108 = vmatprep.subr.bf16.mxu0 %v2325_v10 }
 0x59a   : > { %v1272_v55 = vpop.f32.mrb[2].mxu0 }
 0x59b   : > { %v2033_v56 = vpop.f32.mrb[3].mxu0 }
 0x603   : > { %v1348_v63 = vpop.f32.mrb[8].mxu1 }
 0x604   : > { %1505 = vrot.lane.b32.xlu0 %v1348_v63, %s2336_s19  ;;  %v2038_v3 = vpop.f32.mrb[9].mxu1 }
 0x607   : > { %v1424_v4 = vpop.f32.mrb[4].mxu0 }
 0x608   : > { %1509 = vrot.lane.b32.xlu1 %v1424_v4, %s2337_s26  ;;  %v2043_v5 = vpop.f32.mrb[5].mxu0  ;;  %s510_s26 = sand.u32 1, %s2315_s22  }
 0x609   : > { %s1849_s23 = scalar_lea.sflag [#allocation3], %s510_s26 }
 0x60b   : > { %v1500_v6 = vpop.f32.mrb[10].mxu1 }
 0x60c   : > { %1513 = vrot.lane.b32.xlu0 %v1500_v6, %s2338_s28  ;;  %v2048_v7 = vpop.f32.mrb[11].mxu1  ;;  %s1925_s28 = sshll.u32 %s510_s26, 3 }
 0x60d   : > { %s512_s5 = scalar_lea.vmem [#allocation2], %s1925_s28 }
 0x60e   : > { %s1862_s16 = sshll.u32 %s512_s5, 4  ;;  %s2827_s16 = int_to_ptr.vmem [resolvable:$true] %s1862_s16 }
 0x60f   : > { %s2261_s30 = scalar_lea.vmem %s2827_s16, 128  ;;  %p2268_p0 = scmp.lt.s32.totalorder %s2827_s16, %s2266_s18 }
 0x610   : > { %p2262_p11 = scmp.ne.s32.totalorder %s2827_s16, %s2261_s30  ;;  %p2269_p1 = scmp.lt.s32.totalorder %s2267_s20, %s2261_s30 }
 0x612   : > { %p2263_p12 = pnand %p2262_p11, %p2463_p5  ;;  %p2270_p2 = por %p2269_p1, %p2268_p0 }
 0x614   : > { %p2264_p13 = pneg %p2263_p12 }
 0x616   : > { %p2271_p3 = pnand %p2270_p2, %p2264_p13 }
 0x676   : > { %v1506_v8 = vpop.permute.xlu0 %1505 }
 0x677   : > { %v1516_v12 = vsel %vm849_vm2, %v1272_v55, %v1506_v8 }
 0x67a   : > { %v1510_v9 = vpop.permute.xlu1 %1509 }
 0x67b   : > { %v1518_v14 = vsel %vm1517_vm13, %v1516_v12, %v1510_v9 }
 0x67e   : > { %v1514_v15 = vpop.permute.xlu0 %1513 }
 0x67f   : > { %v1520_v16 = vsel %vm1519_vm14, %v1518_v14, %v1514_v15 }
 0x680   : > { %2058 = vmatmul.mubr.msk.f32.vlgmr.msra.gmra.mrb[6].mxu0 %vm727_vm0, %v1520_v16 }
 0x681   : > { %2087 = vmatprep.mubr.msk.f32.mxu0 %vm2326_vm1, %v2327_v13  ;;  %2110 = vmatpush3.bf16.msra.mxu0 %v2109_v42 }
 0x682   : > { %2111 = vmatprep.subr.bf16.mxu0 %v2325_v10 }
 0x685   : > { %2113 = vmatpush3.bf16.msra.mxu0 %v2112_v46 }
 0x686   : > { %2114 = vmatprep.subr.bf16.mxu0 %v2325_v10 }
 0x689   : > { %2116 = vmatpush3.bf16.msra.mxu0 %v2115_v48 }
 0x68a   : > { %2117 = vmatprep.subr.bf16.mxu0 %v2325_v10 }
 0x68d   : > { %2119 = vmatpush3.bf16.msra.mxu0 %v2118_v49 }
 0x753   : > { %v1601_v17 = vpop.f32.mrb[6].mxu0 }
 0x754   : > { %v1602_v18 = vadd.f32 %v1944_v11, %v1601_v17  ;;  %v2059_v19 = vpop.f32.mrb[7].mxu0 }
 0x756   : > { %v2752_v20 = vadd.f32 %v1602_v18, %v2478_v0  ;;  %v1636_v0 = vld [vmem:[%s2878_s10 + $0x8] sm:$0xff]  ;;  %v1952_v18 = vld [vmem:[%s2882_s14] ss:$0 sm:$0xff] }
 0x757   : > { %v2103_v25 = vpack.c.bf16 %v1636_v0, %v1635_v24 }
 0x758   : > { %v1608_v21 = vsel %vm727_vm0, %v2752_v20, 0.0 }
 0x759   : > { %1609 = vadd.xlane.f32.xlu1 %v1608_v21  ;;  %2104 = vmatpush3.bf16.msra.mxu1 %v2103_v25 }
 0x75a   : > { %2105 = vmatprep.subr.bf16.mxu1 %v2325_v10  ;;  %v1950_v10 = vld [vmem:[%s2881_s13] ss:$0 sm:$0xff] }
 0x75d   : > { %2107 = vmatpush3.bf16.msra.mxu1 %v2106_v29 }
 0x7e6   : > { %v1610_v22 = vpop.xlane.xlu1 %1609 }
 0x7e7   : > { %v1611_v23 = vmul.f32 0.03125, %v1610_v22 }
 0x7e9   : > { %v1612_v1 = vsub.f32 %v2752_v20, %v1611_v23 }
 0x7eb   : > { %v1613_v2 = vmul.f32 %v1612_v1, %v1612_v1 }
 0x7ed   : > { %v1614_v13 = vsel %vm727_vm0, %v1613_v2, 0.0 }
 0x7ee   : > { %1615 = vadd.xlane.f32.xlu0 %v1614_v13 }
 0x87b   : > { %v1616_v30 = vpop.xlane.xlu0 %1615 }
 0x87c   : > { %v1617_v26 = vmul.f32 0.03125, %v1616_v30 }
 0x87e   : > { %v1618_v31 = vadd.f32 1e-05, %v1617_v26 }
 0x880   : > { %2255 = vrsqrt.f32 %v1618_v31 }
 0x88a   : > { %v2256_v44 = vpop.eup %2255 }
 0x88b   : > { %v1620_v33 = vmul.f32 %v2256_v44, %v1612_v1 }
 0x88d   : > { %v1627_v36 = vmul.f32 %v1946_v32, %v1620_v33 }
 0x88f   : > { %v1634_v39 = vadd.f32 %v1947_v34, %v1627_v36 }
 0x891   : > { %2069 = vmatmul.mubr.msk.f32.vlgmr.msra.gmra.mrb[12].mxu1 %vm727_vm0, %v1634_v39 }
 0x964   : > { %v1715_v51 = vpop.f32.mrb[12].mxu1 }
 0x965   : > { %v1716_v52 = vadd.f32 %v1948_v50, %v1715_v51  ;;  %v2070_v53 = vpop.f32.mrb[13].mxu1 }
 0x967   : > { %v1720_v54 = vmul.f32 0.044715, %v1716_v52  ;;  %v1719_v60 = vmul.f32 0.5, %v1716_v52 }
 0x969   : > { %v1721_v55 = vmul.f32 %v1720_v54, %v1716_v52 }
 0x96b   : > { %v1722_v56 = vmul.f32 %v1721_v55, %v1716_v52 }
 0x96d   : > { %v1723_v57 = vadd.f32 %v1722_v56, %v1716_v52 }
 0x96f   : > { %v1724_v58 = vmul.f32 0.7978846, %v1723_v57 }
 0x971   : > { %2257 = vtanh.f32 %v1724_v58 }
 0x97b   : > { %v2258_v59 = vpop.eup %2257 }
 0x97c   : > { %v1726_v61 = vadd.f32 1.0, %v2258_v59 }
 0x97e   : > { %v1727_v62 = vmul.f32 %v1726_v61, %v1719_v60 }
 0x980   : > { %2088 = vmatmul.mubr.msk.f32.vlgmr.msra.gmra.mrb[8].mxu0 %vm1743_vm15, %v1727_v62 }
 0xa53   : > { %v1813_v63 = vpop.f32.mrb[8].mxu0 }
 0xa54   : > { %v1814_v3 = vadd.f32 %v1950_v10, %v1813_v63  ;;  %v2089_v4 = vpop.f32.mrb[9].mxu0 }
 0xa56   : > { %v1817_v5 = vadd.f32 %v1814_v3, %v2752_v20  ;;  %v1953_v20 = vld [vmem:[%s2883_s15] ss:$0 sm:$0xff] }
 0xa58   : > { %v1820_v6 = vsel %vm727_vm0, %v1817_v5, 0.0 }
 0xa59   : > { %1821 = vadd.xlane.f32.xlu0 %v1820_v6 }
 0xae6   : > { %v1822_v7 = vpop.xlane.xlu0 %1821 }
 0xae7   : > { %v1823_v8 = vmul.f32 0.03125, %v1822_v7 }
 0xae9   : > { %v1824_v9 = vsub.f32 %v1817_v5, %v1823_v8 }
 0xaeb   : > { %v1825_v12 = vmul.f32 %v1824_v9, %v1824_v9 }
 0xaed   : > { %v1826_v14 = vsel %vm727_vm0, %v1825_v12, 0.0 }
 0xaee   : > { %1827 = vadd.xlane.f32.xlu1 %v1826_v14 }
 0xb7b   : > { %v1828_v15 = vpop.xlane.xlu1 %1827 }
 0xb7c   : > { %v1829_v16 = vmul.f32 0.03125, %v1828_v15 }
 0xb7e   : > { %v1830_v11 = vadd.f32 1e-05, %v1829_v16 }
 0xb80   : > { %2259 = vrsqrt.f32 %v1830_v11 }
 0xb8a   : > { %v2260_v17 = vpop.eup %2259 }
 0xb8b   : > { %v1832_v19 = vmul.f32 %v2260_v17, %v1824_v9 }
 0xb8d   : > { %v1839_v21 = vmul.f32 %v1952_v18, %v1832_v19 }
 0xb8f   : > { %v1846_v22 = vadd.f32 %v1953_v20, %v1839_v21 }
 0xb91   : > { %1847 = vst.msk [vmem:[%s512_s5] sm:$0xff] %vm727_vm0, %v1846_v22 }
 0xb92   : > { %2274 = shalt.err (!%p2271_p3)
}
 0xb93   : > { %s2275_s19 = scalar_lea.hbm %s2825_s17, 128  ;;  %s2279_s29 = scalar_lea.hbm %s2913_s27, 256 }
 0xb94   : > { %p2276_p4 = scmp.ne.s32.totalorder %s2825_s17, %s2275_s19  ;;  %p2280_p9 = scmp.lt.u32.totalorder %s2825_s17, %s2913_s27 }
 0xb95   : > { %p2281_p10 = scmp.lt.u32.totalorder %s2279_s29, %s2275_s19  ;;  %p2283_p12 = scmp.lt.u32.totalorder %s2275_s19, %s2825_s17 }
 0xb96   : > { %p2277_p7 = pnand %p2276_p4, %p2463_p5 }
 0xb97   : > { %p2282_p11 = por %p2281_p10, %p2280_p9 }
 0xb98   : > { %p2278_p8 = pneg %p2277_p7 }
 0xb99   : > { %p2284_p13 = por %p2283_p12, %p2282_p11 }
 0xb9b   : > { %p2285_p0 = pnand %p2284_p13, %p2278_p8 }
 0xb9d   : > { %2288 = shalt.err (!%p2285_p0)
}
 0xb9e   : > { %2184 = dma.vmem_to_hbm [thread:$0]  (%p2463_p5), %s2827_s16, 128, %s2825_s17, %s1849_s23  }
 0xb9f PF: > { %s2914_s3 = sld [smem:[#allocation7_spill]]  ;;  %s2915_s4 = sld [smem:[#allocation5_spill]] }
 0xba5   : > { %p2190_p1 = scmp.ge.s32.totalorder %s2914_s3, 2  ;;  %s1874_s21 = sand.u32 1, %s2915_s4  }
 0xba6   : > { %s1875_s24 = scalar_lea.sflag [#allocation3], %s1874_s21 }
 0xba7   : > { %p2187_p2 = pnand %p2190_p1, %p2467_p6 }
 0xba9   : > { %2306 = dma.done.wait (!%p2187_p2), %s1875_s24, 128  }
 0xbaa   : > { %2308 = vsyncadd (!%p2187_p2), %s1875_s24, 4294967168  ;;  %s2917_s24 = sld [smem:[#allocation8_spill]]  ;;  %s2918_s30 = sld [smem:[#allocation6_spill]] }
 0xbab   : > { %s2919_s23 = sld [smem:[#allocation9_spill]]  ;;  %s2920_s21 = smov %s2315_s22 }
 0xbb0   : > { %p26_p3 = scmp.ge.s32.totalorder %s2917_s24, 4   ;;  %s2921_s22 = smov %s2918_s30 }
 0xbb2   :  { %28 = sbr.rel (!%p26_p3) target bundleno = 11 (0xb), region = 119 }
 0xbb9   :  { %1880 = vsyncpa [#allocation3], 1 }
 0xbba   :  { %1882 = vsyncpa [#allocation3 + $0x1], 1 }

// kernel: t5_decoder_forward.2
= control target key start
LH: loop header
LB: loop body
LE: loop exit
PB: predicated region body
PF: predicated region fallthrough
CT: control target
= control target key end

     0   :  { %s2283_s21 = smov 0   ;;  %s2642_s0 = inlined_call_operand.vmem [shape: f32[2,8,32], index: 0, kind: input, shape index: {}]   ;;  %s2643_s1 = inlined_call_operand.vmem [shape: f32[8,4], index: 1, kind: input, shape index: {}]   ;;  %s2644_s2 = inlined_call_operand.vmem [shape: f32[1,32], index: 2, kind: input, shape index: {}]   ;;  %s2645_s3 = inlined_call_operand.vmem [shape: f32[1,32], index: 3, kind: input, shape index: {}]   ;;  %s2646_s4 = inlined_call_operand.vmem [shape: f32[32,96], index: 4, kind: input, shape index: {}]   ;;  %s2647_s5 = inlined_call_operand.vmem [shape: f32[1,96], index: 5, kind: input, shape index: {}]   ;;  %s2648_s6 = inlined_call_operand.vmem [shape: f32[32,32], index: 6, kind: input, shape index: {}]   ;;  %s2649_s7 = inlined_call_operand.vmem [shape: f32[1,32], index: 7, kind: input, shape index: {}]   ;;  %s2650_s8 = inlined_call_operand.vmem [shape: f32[1,32], index: 8, kind: input, shape index: {}]   ;;  %s2651_s9 = inlined_call_operand.vmem [shape: f32[1,32], index: 9, kind: input, shape index: {}]   ;;  %s2652_s10 = inlined_call_operand.vmem [shape: f32[32,64], index: 10, kind: input, shape index: {}]   ;;  %s2653_s11 = inlined_call_operand.vmem [shape: f32[1,64], index: 11, kind: input, shape index: {}]   ;;  %s2654_s12 = inlined_call_operand.vmem [shape: f32[64,32], index: 12, kind: input, shape index: {}]   ;;  %s2655_s13 = inlined_call_operand.vmem [shape: f32[1,32], index: 13, kind: input, shape index: {}]   ;;  %s2656_s14 = inlined_call_operand.vmem [shape: f32[1,32], index: 14, kind: input, shape index: {}]   ;;  %s2657_s15 = inlined_call_operand.vmem [shape: f32[1,32], index: 15, kind: input, shape index: {}]   ;;  %s2658_s16 = inlined_call_operand.vmem [shape: f32[2,8,32], index: 16, kind: output, shape index: {}]  }
   0x1   :  { %2660 = sst [smem:[#allocation2_spill]] %s2642_s0 }
   0x2   :  { %2661 = sst [smem:[#allocation3_spill]] %s2643_s1 }
   0x3   :  { %2662 = sst [smem:[#allocation4_spill]] %s2644_s2 }
   0x4   :  { %2663 = sst [smem:[#allocation5_spill]] %s2645_s3 }
   0x5 LB: > { %s1872_s22 = sadd.s32 4294967295, %s2182_s21   ;;  %p1876_p0 = scmp.ge.s32.totalorder %s2182_s21, 1  ;;  %s2182_s21 = sphi %s2283_s21, %s26_s21  }
   0x6   : > { %p461_p1 = scmp.lt.s32.totalorder %s2182_s21, 3 }
   0x8   : > { %p462_p2 = pnand %p1876_p0, %p461_p1 }
   0x9   : > { %p509_p3 = scmp.lt.s32.totalorder (!%p462_p2), %s1872_s22, 1  ;;  %vm727_vm0 = vcmask (!%p462_p2), 261120   ;;  %s2664_s24 = sld [smem:[#allocation2_spill]] (!%p462_p2)  ;;  %v756_v7 = vld [vmem:[%s2646_s4] sm:$0xff] (!%p462_p2)  ;;  %v757_v8 = vld [vmem:[%s2646_s4 + $0x8] sm:$0xff] (!%p462_p2)  ;;  %v758_v9 = vld [vmem:[%s2646_s4 + $0x10] sm:$0xff] (!%p462_p2)  ;;  %v518_v61 = vlaneseq (!%p462_p2) }
   0xa   : > { %465 = sbr.rel (%p462_p2) target bundleno = 2632 (0xa48), region = 84  ;;  %v2184_v10 = vmov (!%p462_p2), 0.0|0.0   ;;  %v2039_v11 = vpack.c.bf16 (!%p462_p2), %v757_v8, %v756_v7  ;;  %v759_v12 = vld [vmem:[%s2646_s4 + $0x18] sm:$0xff] (!%p462_p2)  ;;  %vm2185_vm1 = vmmov (!%p462_p2), 0   ;;  %v2186_v13 = vmov (!%p462_p2), 0.0   ;;  %s2665_s2 = sld [smem:[#allocation4_spill]] (!%p462_p2) }
   0xb   : > { %2038 = vmatprep.subr.bf16.mxu1 (!%p462_p2), %v2184_v10  ;;  %1954 = vmatprep.mubr.msk.f32.mxu1 (!%p462_p2), %vm2185_vm1, %v2186_v13  ;;  %v2042_v14 = vpack.c.bf16 (!%p462_p2), %v759_v12, %v758_v9  ;;  %s2666_s3 = sld [smem:[#allocation5_spill]] (!%p462_p2)  ;;  %v1882_v24 = vld [vmem:[%s2647_s5] ss:$0 sm:$0xff] (!%p462_p2)  ;;  %s2187_s26 = smov (!%p462_p2), 104   ;;  %vm849_vm2 = vcmask (!%p462_p2), 64512   ;;  %vm1517_vm13 = vcmask (!%p462_p2), 130048  }
   0xc   : > { %1967 = vmatprep.subr.mxu0 (!%p462_p2), %v2186_v13  ;;  %1969 = vmatprep.mubr.msk.f32.mxu0 (!%p462_p2), %vm2185_vm1, %v2186_v13  ;;  %s2188_s27 = smov (!%p462_p2), 120   ;;  %s2189_s28 = smov (!%p462_p2), 112   ;;  %vm1519_vm14 = vcmask (!%p462_p2), 195584   ;;  %vm1743_vm15 = vcmask (!%p462_p2), 523264  }
   0xd   : > { %2040 = vmatpush3.bf16.msra.mxu1 (!%p462_p2), %v2039_v11  ;;  %s2190_s29 = smov (!%p462_p2), 96   ;;  %s2667_s1 = sld [smem:[#allocation3_spill]] (!%p462_p2) }
   0xe   : > { %2041 = vmatprep.subr.bf16.mxu1 (!%p462_p2), %v2184_v10  ;;  %s2191_s17 = smov (!%p462_p2), 127   ;;  %s2192_s18 = smov (!%p462_p2), 126  }
   0xf   : > { %s2193_s19 = smov (!%p462_p2), 125  }
  0x10   : > { %v1880_v19 = vld [vmem:[%s2665_s2] ss:$0 sm:$0xff] (!%p462_p2) }
  0x11   : > { %s2670_s22 = smov (!%p509_p3, %s1872_s22), 1  ;;  %2043 = vmatpush3.bf16.msra.mxu1 %v2042_v14  ;;  %v1881_v21 = vld [vmem:[%s2666_s3] ss:$0 sm:$0xff] }
  0x12   : > { %s2659_s14 = sshll.u32 %s2670_s22, 3  ;;  %1957 = vmatprep.subr.mxu1 %v2186_v13 }
  0x13   : > { %s512_s25 = scalar_lea.vmem %s2664_s24, %s2659_s14  ;;  %v529_v28 = vld [vmem:[%s2667_s1] sm:$0xff] }
  0x14   : > { %v2299_v0 = vld [vmem:[%s512_s25] sm:$0xff]  ;;  %2068 = vpush %v529_v28  ;;  %v536_v29 = vrot.slane %v529_v28, 1  ;;  %v542_v30 = vrot.slane %v529_v28, 2  ;;  %v548_v31 = vrot.slane %v529_v28, 3  ;;  %v554_v32 = vrot.slane %v529_v28, 4 }
  0x15   : > { %v728_v1 = vsel %vm727_vm0, %v2299_v0, 0.0  ;;  %v560_v33 = vrot.slane %v529_v28, 5  ;;  %v566_v34 = vrot.slane %v529_v28, 6  ;;  %v572_v36 = vrot.slane %v529_v28, 7 }
  0x16   : > { %729 = vadd.xlane.f32.xlu0 %v728_v1  ;;  %2070 = vpush %v536_v29  ;;  %v2391_v1 = vshrl.u32 %v518_v61, 7 }
  0x17   : > { %2072 = vpush %v542_v30 }
  0x18   : > { %2074 = vpush %v548_v31 }
  0x19   : > { %2076 = vpush %v554_v32 }
  0x1a   : > { %2078 = vpush %v560_v33 }
  0x1b   : > { %2080 = vpush %v566_v34 }
  0x1c   : > { %2082 = vpush %v572_v36 }
  0x45   : > { %s2069_s20 = spop %2068 }
  0x46   : > { %v532_v12 = vstv %s2069_s20 }
  0x47   : > { %s2071_s15 = spop %2070 }
  0x48   : > { %v538_v14 = vstv %s2071_s15  ;;  %s2073_s23 = spop %2072 }
  0x49   : > { %s2075_s24 = spop %2074 }
  0x4a   : > { %s2077_s25 = spop %2076 }
  0xa3   : > { %v730_v2 = vpop.xlane.xlu0 %729 }
  0xa4   : > { %v732_v3 = vmul.f32 0.03125, %v730_v2  ;;  %v2393_v2 = vand.u32 127, %v518_v61 }
  0xa6   : > { %v733_v4 = vsub.f32 %v2299_v0, %v732_v3  ;;  %vm528_vm12 = vcmp.gt.s32.totalorder %v2393_v2, %v2391_v1 }
  0xa8   : > { %v734_v5 = vmul.f32 %v733_v4, %v733_v4 }
  0xaa   : > { %v735_v6 = vsel %vm727_vm0, %v734_v5, 0.0 }
  0xab   : > { %736 = vadd.xlane.f32.xlu0 %v735_v6 }
 0x138   : > { %v737_v15 = vpop.xlane.xlu0 %736 }
 0x139   : > { %v738_v16 = vmul.f32 0.03125, %v737_v15 }
 0x13b   : > { %v739_v17 = vadd.f32 1e-05, %v738_v16 }
 0x13d   : > { %2154 = vrsqrt.f32 %v739_v17  ;;  %v544_v17 = vstv %s2073_s23 }
 0x147   : > { %v2155_v18 = vpop.eup %2154 }
 0x148   : > { %v741_v20 = vmul.f32 %v2155_v18, %v733_v4  ;;  %v522_v4 = vsub.s32 %v2393_v2, %v2391_v1 }
 0x14a   : > { %v748_v22 = vmul.f32 %v1880_v19, %v741_v20  ;;  %v524_v7 = vsub.s32 0, %v522_v4  ;;  %v550_v20 = vstv %s2075_s24 }
 0x14c   : > { %v755_v23 = vadd.f32 %v1881_v21, %v748_v22  ;;  %v1879_v9 = vmin.u32 %v524_v7, %v522_v4 }
 0x14e   : > { %1955 = vmatmul.mubr.msk.f32.vlgmr.msra.gmra.mrb[0].mxu1 %vm727_vm0, %v755_v23  ;;  %vm526_vm3 = vcmp.lt.s32.totalorder %v1879_v9, 7  ;;  %v556_v23 = vstv %s2077_s25 }
 0x14f   : > { %1959 = vmatprep.mubr.msk.f32.mxu1 %vm2185_vm1, %v2186_v13  ;;  %v2397_v11 = vsel %vm526_vm3, %v1879_v9, 7 }
 0x150   : > { %vm530_vm4 = vcmp.eq.s32.totalorder %v2397_v11, 0  ;;  %vm535_vm5 = vcmp.eq.s32.totalorder %v2397_v11, 1  ;;  %vm541_vm6 = vcmp.eq.s32.totalorder %v2397_v11, 2  ;;  %vm547_vm7 = vcmp.eq.s32.totalorder %v2397_v11, 3 }
 0x151   : > { %v533_v15 = vsel %vm530_vm4, %v532_v12, 0.0  ;;  %v539_v16 = vsel %vm535_vm5, %v538_v14, 0.0  ;;  %v545_v19 = vsel %vm541_vm6, %v544_v17, 0.0  ;;  %v551_v22 = vsel %vm547_vm7, %v550_v20, 0.0 }
 0x152   : > { %v540_v18 = vadd.f32 %v539_v16, %v533_v15  ;;  %vm553_vm8 = vcmp.eq.s32.totalorder %v2397_v11, 4  ;;  %vm559_vm9 = vcmp.eq.s32.totalorder %v2397_v11, 5  ;;  %vm565_vm10 = vcmp.eq.s32.totalorder %v2397_v11, 6 }
 0x153   : > { %vm571_vm11 = vcmp.eq.s32.totalorder %v2397_v11, 7 }
 0x154   : > { %v546_v21 = vadd.f32 %v545_v19, %v540_v18 }
 0x221   : > { %v836_v25 = vpop.f32.mrb[0].mxu1 }
 0x222   : > { %v2337_v26 = vadd.f32 %v1882_v24, %v836_v25  ;;  %v1956_v27 = vpop.f32.mrb[1].mxu1  ;;  %v552_v24 = vadd.f32 %v551_v22, %v546_v21  ;;  %v557_v25 = vsel %vm553_vm8, %v556_v23, 0.0 }
 0x224   : > { %845 = vrot.lane.b32.xlu0 %v2337_v26, %s2187_s26  ;;  %841 = vrot.lane.b32.xlu1 %v2337_v26, %s2188_s27  ;;  %s2079_s26 = spop %2078 }
 0x225   : > { %v562_v27 = vstv %s2079_s26  ;;  %s2081_s27 = spop %2080 }
 0x228   : > { %843 = vrot.lane.b32.xlu1 %v2337_v26, %s2189_s28  ;;  %590 = vrot.lane.b32.xlu0 %v542_v30, %s2191_s17  ;;  %s2083_s28 = spop %2082 }
 0x22c   : > { %847 = vrot.lane.b32.xlu1 %v2337_v26, %s2190_s29  ;;  %602 = vrot.lane.b32.xlu0 %v554_v32, %s2191_s17 }
 0x230   : > { %614 = vrot.lane.b32.xlu0 %v566_v34, %s2191_s17 }
 0x234   : > { %627 = vrot.lane.b32.xlu0 %v529_v28, %s2192_s18 }
 0x238   : > { %639 = vrot.lane.b32.xlu0 %v542_v30, %s2192_s18 }
 0x23c   : > { %651 = vrot.lane.b32.xlu0 %v554_v32, %s2192_s18 }
 0x240   : > { %663 = vrot.lane.b32.xlu0 %v566_v34, %s2192_s18 }
 0x244   : > { %676 = vrot.lane.b32.xlu0 %v529_v28, %s2193_s19 }
 0x248   : > { %688 = vrot.lane.b32.xlu0 %v542_v30, %s2193_s19  ;;  %v568_v30 = vstv %s2081_s27 }
 0x24c   : > { %700 = vrot.lane.b32.xlu0 %v554_v32, %s2193_s19  ;;  %v569_v32 = vsel %vm565_vm10, %v568_v30, 0.0 }
 0x250   : > { %712 = vrot.lane.b32.xlu0 %v566_v34, %s2193_s19 }
 0x296   : > { %v2349_v35 = vpop.permute.xlu1 %841  ;;  %v2358_v38 = vpop.permute.xlu0 %845 }
 0x297   : > { %924 = vrot.lane.b32.xlu1 %v2349_v35, %s2190_s29 }
 0x29a   : > { %v2354_v37 = vpop.permute.xlu1 %843  ;;  %v591_v40 = vpop.permute.xlu0 %590 }
 0x29b   : > { %1000 = vrot.lane.b32.xlu1 %v2354_v37, %s2190_s29 }
 0x29e   : > { %v848_v39 = vpop.permute.xlu1 %847  ;;  %v603_v42 = vpop.permute.xlu0 %602 }
 0x29f   : > { %1076 = vrot.lane.b32.xlu1 %v2358_v38, %s2190_s29  ;;  %1958 = vmatpush3.xpose.msk.msra.mxu1 %vm849_vm2, %v848_v39 }
 0x2a0   : > { %1962 = vmatprep.subr.mxu1 %v2186_v13 }
 0x2a2   : > { %1960 = vmatmul.mubr.msk.f32.vlgmr.msra.gmra.mrb[2].mxu1 %vm849_vm2, %v2337_v26  ;;  %v615_v45 = vpop.permute.xlu0 %614 }
 0x2a3   : > { %578 = vrot.lane.b32.xlu1 %v529_v28, %s2191_s17  ;;  %1964 = vmatprep.mubr.msk.f32.mxu1 %vm2185_vm1, %v2186_v13  ;;  %v558_v28 = vadd.f32 %v557_v25, %v552_v24 }
 0x2a6   : > { %v628_v47 = vpop.permute.xlu0 %627 }
 0x2a7   : > { %584 = vrot.lane.b32.xlu1 %v536_v29, %s2191_s17 }
 0x2aa   : > { %v640_v49 = vpop.permute.xlu0 %639 }
 0x2ab   : > { %596 = vrot.lane.b32.xlu1 %v548_v31, %s2191_s17 }
 0x2ae   : > { %v652_v52 = vpop.permute.xlu0 %651 }
 0x2af   : > { %608 = vrot.lane.b32.xlu1 %v560_v33, %s2191_s17 }
 0x2b2   : > { %v664_v54 = vpop.permute.xlu0 %663 }
 0x2b3   : > { %620 = vrot.lane.b32.xlu1 %v572_v36, %s2191_s17 }
 0x2b6   : > { %v677_v57 = vpop.permute.xlu0 %676 }
 0x2b7   : > { %633 = vrot.lane.b32.xlu1 %v536_v29, %s2192_s18 }
 0x2ba   : > { %v689_v59 = vpop.permute.xlu0 %688 }
 0x2bb   : > { %645 = vrot.lane.b32.xlu1 %v548_v31, %s2192_s18 }
 0x2be   : > { %v701_v63 = vpop.permute.xlu0 %700 }
 0x2bf   : > { %657 = vrot.lane.b32.xlu1 %v560_v33, %s2192_s18 }
 0x2c2   : > { %v713_v5 = vpop.permute.xlu0 %712 }
 0x2c3   : > { %669 = vrot.lane.b32.xlu1 %v572_v36, %s2192_s18 }
 0x2c7   : > { %682 = vrot.lane.b32.xlu1 %v536_v29, %s2193_s19  ;;  %v563_v29 = vsel %vm559_vm9, %v562_v27, 0.0 }
 0x2cb   : > { %694 = vrot.lane.b32.xlu1 %v548_v31, %s2193_s19  ;;  %v564_v31 = vadd.f32 %v563_v29, %v558_v28 }
 0x2cd   : > { %v570_v34 = vadd.f32 %v569_v32, %v564_v31 }
 0x2cf   : > { %706 = vrot.lane.b32.xlu1 %v560_v33, %s2193_s19  ;;  %v574_v33 = vstv %s2083_s28 }
 0x2d3   : > { %718 = vrot.lane.b32.xlu1 %v572_v36, %s2193_s19  ;;  %v575_v36 = vsel %vm571_vm11, %v574_v33, 0.0 }
 0x2d4   : > { %v576_v39 = vadd.f32 %v575_v36, %v570_v34 }
 0x309   : > { %v925_v41 = vpop.permute.xlu1 %924 }
 0x30a   : > { %1963 = vmatpush3.xpose.msk.msra.mxu1 %vm849_vm2, %v925_v41 }
 0x30b   : > { %1972 = vmatprep.subr.mxu1 %v2186_v13 }
 0x30d   : > { %1965 = vmatmul.mubr.msk.f32.vlgmr.msra.gmra.mrb[4].mxu1 %vm849_vm2, %v2349_v35  ;;  %v1001_v43 = vpop.permute.xlu1 %1000 }
 0x30e   : > { %1968 = vmatpush3.xpose.msk.msra.mxu0 %vm849_vm2, %v1001_v43  ;;  %1974 = vmatprep.mubr.msk.f32.mxu1 %vm2185_vm1, %v2186_v13 }
 0x30f   : > { %1977 = vmatprep.subr.mxu0 %v2186_v13 }
 0x311   : > { %1970 = vmatmul.mubr.msk.f32.vlgmr.msra.gmra.mrb[0].mxu0 %vm849_vm2, %v2354_v37  ;;  %v1077_v44 = vpop.permute.xlu1 %1076 }
 0x312   : > { %1973 = vmatpush3.xpose.msk.msra.mxu1 %vm849_vm2, %v1077_v44  ;;  %1979 = vmatprep.mubr.msk.f32.mxu0 %vm2185_vm1, %v2186_v13 }
 0x313   : > { %1982 = vmatprep.subr.mxu1 %v2186_v13 }
 0x315   : > { %1975 = vmatmul.mubr.msk.f32.vlgmr.msra.gmra.mrb[6].mxu1 %vm849_vm2, %v2358_v38  ;;  %v579_v46 = vpop.permute.xlu1 %578 }
 0x316   : > { %2084 = vpush %v579_v46  ;;  %1984 = vmatprep.mubr.msk.f32.mxu1 %vm2185_vm1, %v2186_v13 }
 0x319   : > { %v585_v48 = vpop.permute.xlu1 %584 }
 0x31a   : > { %2086 = vpush %v585_v48 }
 0x31b   : > { %2088 = vpush %v591_v40  ;;  %v577_v40 = vsel %vm528_vm12, -1e+30, %v576_v39 }
 0x31d   : > { %v597_v50 = vpop.permute.xlu1 %596 }
 0x31e   : > { %2090 = vpush %v597_v50 }
 0x31f   : > { %2092 = vpush %v603_v42 }
 0x321   : > { %v609_v51 = vpop.permute.xlu1 %608 }
 0x322   : > { %2094 = vpush %v609_v51 }
 0x323   : > { %2096 = vpush %v615_v45 }
 0x325   : > { %v621_v53 = vpop.permute.xlu1 %620 }
 0x326   : > { %2098 = vpush %v621_v53 }
 0x327   : > { %2100 = vpush %v628_v47 }
 0x329   : > { %v634_v55 = vpop.permute.xlu1 %633 }
 0x32a   : > { %2102 = vpush %v634_v55 }
 0x32b   : > { %2104 = vpush %v640_v49 }
 0x32d   : > { %v646_v56 = vpop.permute.xlu1 %645 }
 0x32e   : > { %2106 = vpush %v646_v56 }
 0x32f   : > { %2108 = vpush %v652_v52 }
 0x331   : > { %v658_v58 = vpop.permute.xlu1 %657 }
 0x332   : > { %2110 = vpush %v658_v58 }
 0x333   : > { %2112 = vpush %v664_v54 }
 0x335   : > { %v670_v60 = vpop.permute.xlu1 %669 }
 0x336   : > { %2114 = vpush %v670_v60 }
 0x337   : > { %2116 = vpush %v677_v57 }
 0x339   : > { %v683_v62 = vpop.permute.xlu1 %682 }
 0x33a   : > { %2118 = vpush %v683_v62 }
 0x33b   : > { %2120 = vpush %v689_v59 }
 0x33d   : > { %v695_v3 = vpop.permute.xlu1 %694 }
 0x33e   : > { %2122 = vpush %v695_v3 }
 0x33f   : > { %2124 = vpush %v701_v63 }
 0x341   : > { %v707_v6 = vpop.permute.xlu1 %706 }
 0x342   : > { %2126 = vpush %v707_v6 }
 0x343   : > { %2128 = vpush %v713_v5 }
 0x345   : > { %v719_v8 = vpop.permute.xlu1 %718 }
 0x346   : > { %2130 = vpush %v719_v8 }
 0x347   : > { %s2085_s29 = spop %2084 }
 0x348   : > { %v581_v46 = vstv %s2085_s29 }
 0x349   : > { %v582_v48 = vsel %vm530_vm4, %v581_v46, 0.0 }
 0x34b   : > { %s2087_s30 = spop %2086 }
 0x34c   : > { %s2089_s0 = spop %2088  ;;  %v587_v47 = vstv %s2087_s30 }
 0x34d   : > { %v588_v49 = vsel %vm535_vm5, %v587_v47, 0.0  ;;  %v593_v50 = vstv %s2089_s0 }
 0x34e   : > { %v589_v53 = vadd.f32 %v588_v49, %v582_v48  ;;  %v594_v54 = vsel %vm541_vm6, %v593_v50, 0.0 }
 0x34f   : > { %s2432_s17 = spop %2090 }
 0x350   : > { %s2434_s18 = spop %2092  ;;  %v599_v57 = vstv %s2432_s17  ;;  %v595_v61 = vadd.f32 %v594_v54, %v589_v53 }
 0x351   : > { %v600_v63 = vsel %vm547_vm7, %v599_v57, 0.0  ;;  %v605_v6 = vstv %s2434_s18 }
 0x352   : > { %v601_v9 = vadd.f32 %v600_v63, %v595_v61  ;;  %v606_v15 = vsel %vm553_vm8, %v605_v6, 0.0 }
 0x353   : > { %s2436_s19 = spop %2094 }
 0x354   : > { %s2438_s20 = spop %2096  ;;  %v611_v18 = vstv %s2436_s19  ;;  %v607_v21 = vadd.f32 %v606_v15, %v601_v9 }
 0x355   : > { %v612_v24 = vsel %vm559_vm9, %v611_v18, 0.0  ;;  %v617_v28 = vstv %s2438_s20 }
 0x356   : > { %v613_v31 = vadd.f32 %v612_v24, %v607_v21  ;;  %v618_v34 = vsel %vm565_vm10, %v617_v28, 0.0 }
 0x357   : > { %s2440_s15 = spop %2098 }
 0x358   : > { %s2101_s23 = spop %2100 }
 0x359   : > { %v630_v51 = vstv %s2101_s23 }
 0x35a   : > { %v631_v55 = vsel %vm530_vm4, %v630_v51, 0.0 }
 0x35b   : > { %s2103_s24 = spop %2102 }
 0x35c   : > { %s2105_s25 = spop %2104  ;;  %v636_v52 = vstv %s2103_s24 }
 0x35d   : > { %v637_v56 = vsel %vm535_vm5, %v636_v52, 0.0  ;;  %v642_v58 = vstv %s2105_s25 }
 0x35e   : > { %v638_v62 = vadd.f32 %v637_v56, %v631_v55  ;;  %v643_v3 = vsel %vm541_vm6, %v642_v58, 0.0 }
 0x35f   : > { %s2442_s26 = spop %2106 }
 0x360   : > { %s2444_s27 = spop %2108  ;;  %v648_v7 = vstv %s2442_s26  ;;  %v644_v12 = vadd.f32 %v643_v3, %v638_v62  ;;  %s2195_s26 = smov 8  }
 0x361   : > { %v649_v16 = vsel %vm547_vm7, %v648_v7, 0.0  ;;  %v654_v19 = vstv %s2444_s27  ;;  %s2196_s27 = smov 16  }
 0x362   : > { %v650_v22 = vadd.f32 %v649_v16, %v644_v12  ;;  %v655_v25 = vsel %vm553_vm8, %v654_v19, 0.0 }
 0x363   : > { %s2446_s28 = spop %2110 }
 0x364   : > { %s2448_s14 = spop %2112  ;;  %v660_v29 = vstv %s2446_s28  ;;  %v656_v32 = vadd.f32 %v655_v25, %v650_v22  ;;  %s2197_s28 = smov 24  }
 0x365   : > { %v661_v36 = vsel %vm559_vm9, %v660_v29, 0.0 }
 0x367   : > { %s2450_s1 = spop %2114 }
 0x368   : > { %s2117_s2 = spop %2116  ;;  %v672_v50 = vstv %s2450_s1  ;;  %s2194_s1 = smov 64  }
 0x369   : > { %v679_v59 = vstv %s2117_s2  ;;  %v673_v55 = vsel %vm571_vm11, %v672_v50, 0.0 }
 0x36a   : > { %v680_v4 = vsel %vm530_vm4, %v679_v59, 0.0 }
 0x36b   : > { %s2119_s3 = spop %2118 }
 0x36c   : > { %v685_v60 = vstv %s2119_s3  ;;  %s2121_s29 = spop %2120 }
 0x36d   : > { %v686_v5 = vsel %vm535_vm5, %v685_v60, 0.0  ;;  %v691_v8 = vstv %s2121_s29 }
 0x36e   : > { %v687_v14 = vadd.f32 %v686_v5, %v680_v4  ;;  %v692_v17 = vsel %vm541_vm6, %v691_v8, 0.0 }
 0x36f   : > { %s2123_s2 = spop %2122 }
 0x370   : > { %v697_v20 = vstv %s2123_s2  ;;  %s2125_s3 = spop %2124  ;;  %v693_v23 = vadd.f32 %v692_v17, %v687_v14 }
 0x371   : > { %v698_v27 = vsel %vm547_vm7, %v697_v20, 0.0  ;;  %v703_v30 = vstv %s2125_s3 }
 0x372   : > { %v699_v33 = vadd.f32 %v698_v27, %v693_v23  ;;  %v704_v39 = vsel %vm553_vm8, %v703_v30, 0.0 }
 0x373   : > { %s2127_s30 = spop %2126 }
 0x374   : > { %s2129_s0 = spop %2128  ;;  %v705_v46 = vadd.f32 %v704_v39, %v699_v33 }
 0x375   : > { %v920_v41 = vpop.f32.mrb[2].mxu1  ;;  %v715_v51 = vstv %s2129_s0 }
 0x376   : > { %v921_v42 = vadd.f32 %v920_v41, %v577_v40  ;;  %v1961_v43 = vpop.f32.mrb[3].mxu1  ;;  %v623_v40 = vstv %s2440_s15  ;;  %v666_v41 = vstv %s2448_s14  ;;  %v716_v56 = vsel %vm565_vm10, %v715_v51, 0.0 }
 0x377   : > { %v619_v43 = vadd.f32 %v618_v34, %v613_v31  ;;  %v624_v47 = vsel %vm571_vm11, %v623_v40, 0.0  ;;  %v667_v48 = vsel %vm565_vm10, %v666_v41, 0.0  ;;  %s2131_s17 = spop %2130 }
 0x378   : > { %v2428_v44 = vmul.f32 0.35355338, %v921_v42  ;;  %v709_v42 = vstv %s2127_s30  ;;  %v721_v57 = vstv %s2131_s17 }
 0x379   : > { %v710_v49 = vsel %vm559_vm9, %v709_v42, 0.0  ;;  %v625_v52 = vadd.f32 %v624_v47, %v619_v43  ;;  %v722_v3 = vsel %vm571_vm11, %v721_v57, 0.0  ;;  %v1521_v57 = vld [vmem:[%s2648_s6] sm:$0xff] }
 0x37a   : > { %v1156_v45 = vsel %vm849_vm2, %v2428_v44, -inf  ;;  %v711_v54 = vadd.f32 %v710_v49, %v705_v46 }
 0x37b   : > { %1157 = vmax.xlane.f32.xlu0 %v1156_v45  ;;  %v662_v45 = vadd.f32 %v661_v36, %v656_v32  ;;  %v626_v60 = vsel %vm528_vm12, -1e+30, %v625_v52 }
 0x37c   : > { %v717_v59 = vadd.f32 %v716_v56, %v711_v54 }
 0x37d   : > { %v668_v53 = vadd.f32 %v667_v48, %v662_v45 }
 0x37e   : > { %v723_v5 = vadd.f32 %v722_v3, %v717_v59 }
 0x37f   : > { %v674_v58 = vadd.f32 %v673_v55, %v668_v53 }
 0x380   : > { %v724_v15 = vsel %vm528_vm12, -1e+30, %v723_v5 }
 0x381   : > { %v675_v6 = vsel %vm528_vm12, -1e+30, %v674_v58  ;;  %v1522_v58 = vld [vmem:[%s2648_s6 + $0x8] sm:$0xff] }
 0x382   : > { %v2045_v59 = vpack.c.bf16 %v1522_v58, %v1521_v57 }
 0x3e0   : > { %v996_v61 = vpop.f32.mrb[4].mxu1 }
 0x3e1   : > { %v997_v62 = vadd.f32 %v996_v61, %v626_v60  ;;  %v1966_v63 = vpop.f32.mrb[5].mxu1  ;;  %v1523_v60 = vld [vmem:[%s2648_s6 + $0x10] sm:$0xff]  ;;  %v1524_v61 = vld [vmem:[%s2648_s6 + $0x18] sm:$0xff] }
 0x3e3   : > { %v1153_v4 = vmul.f32 0.35355338, %v997_v62  ;;  %v2048_v62 = vpack.c.bf16 %v1524_v61, %v1523_v60 }
 0x3e4   : > { %v1072_v7 = vpop.f32.mrb[0].mxu0 }
 0x3e5   : > { %v1073_v8 = vadd.f32 %v1072_v7, %v675_v6  ;;  %v1971_v9 = vpop.f32.mrb[1].mxu0  ;;  %v1159_v12 = vsel %vm849_vm2, %v1153_v4, -inf }
 0x3e6   : > { %1160 = vmax.xlane.f32.xlu1 %v1159_v12 }
 0x3e7   : > { %v1154_v14 = vmul.f32 0.35355338, %v1073_v8 }
 0x3e8   : > { %v1148_v16 = vpop.f32.mrb[6].mxu1 }
 0x3e9   : > { %v1149_v11 = vadd.f32 %v1148_v16, %v724_v15  ;;  %v1976_v17 = vpop.f32.mrb[7].mxu1  ;;  %v1162_v18 = vsel %vm849_vm2, %v1154_v14, -inf }
 0x3ea   : > { %1163 = vmax.xlane.f32.xlu0 %v1162_v18 }
 0x3eb   : > { %v1155_v19 = vmul.f32 0.35355338, %v1149_v11  ;;  %v1896_v11 = vld [vmem:[%s2649_s7] ss:$0 sm:$0xff] }
 0x3ed   : > { %v1165_v20 = vsel %vm849_vm2, %v1155_v19, -inf }
 0x3ee   : > { %1166 = vmax.xlane.f32.xlu0 %v1165_v20 }
 0x3f7   : > { %1200 = vrot.lane.b32.xlu1 %v2337_v26, %s2194_s1 }
 0x408   : > { %v1158_v21 = vpop.xlane.xlu0 %1157 }
 0x409   : > { %v1168_v22 = vsub.f32 %v2428_v44, %v1158_v21 }
 0x40b   : > { %v1172_v23 = vmul.f32 1.442695, %v1168_v22 }
 0x40d   : > { %2156 = vpow2.f32 %v1172_v23 }
 0x417   : > { %v2157_v1 = vpop.eup %2156 }
 0x418   : > { %v1180_v2 = vsel %vm849_vm2, %v2157_v1, 0.0 }
 0x41b   : > { %1181 = vadd.xlane.f32.xlu1 %v1180_v2 }
 0x473   : > { %v1161_v24 = vpop.xlane.xlu1 %1160 }
 0x474   : > { %v1169_v25 = vsub.f32 %v1153_v4, %v1161_v24  ;;  %v1635_v24 = vld [vmem:[%s2652_s10] sm:$0xff] }
 0x476   : > { %v1174_v27 = vmul.f32 1.442695, %v1169_v25 }
 0x477   : > { %v1164_v28 = vpop.xlane.xlu0 %1163  ;;  %v1201_v29 = vpop.permute.xlu1 %1200 }
 0x478   : > { %2158 = vpow2.f32 %v1174_v27  ;;  %v1170_v30 = vsub.f32 %v1154_v14, %v1164_v28  ;;  %1978 = vmatpush3.msra.mxu0 %v1201_v29  ;;  %v1637_v27 = vld [vmem:[%s2652_s10 + $0x10] sm:$0xff]  ;;  %v1638_v28 = vld [vmem:[%s2652_s10 + $0x18] sm:$0xff] }
 0x479   : > { %1987 = vmatprep.subr.mxu0 %v2186_v13  ;;  %v2054_v29 = vpack.c.bf16 %v1638_v28, %v1637_v27 }
 0x47a   : > { %v1176_v26 = vmul.f32 1.442695, %v1170_v30 }
 0x47b   : > { %v1167_v31 = vpop.xlane.xlu0 %1166 }
 0x47c   : > { %2160 = vpow2.f32 %v1176_v26  ;;  %v1171_v44 = vsub.f32 %v1155_v19, %v1167_v31 }
 0x47e   : > { %v1178_v32 = vmul.f32 1.442695, %v1171_v44 }
 0x480   : > { %2162 = vpow2.f32 %v1178_v32  ;;  %v1898_v32 = vld [vmem:[%s2650_s8] ss:$0 sm:$0xff] }
 0x482   : > { %v2159_v33 = vpop.eup %2158 }
 0x483   : > { %v1183_v34 = vsel %vm849_vm2, %v2159_v33, 0.0 }
 0x484   : > { %1184 = vadd.xlane.f32.xlu0 %v1183_v34  ;;  %v1899_v34 = vld [vmem:[%s2651_s9] ss:$0 sm:$0xff] }
 0x486   : > { %v2161_v36 = vpop.eup %2160 }
 0x487   : > { %v1186_v39 = vsel %vm849_vm2, %v2161_v36, 0.0 }
 0x488   : > { %1187 = vadd.xlane.f32.xlu1 %v1186_v39 }
 0x48a   : > { %v2163_v40 = vpop.eup %2162 }
 0x48b   : > { %v1189_v41 = vsel %vm849_vm2, %v2163_v40, 0.0 }
 0x48c   : > { %1190 = vadd.xlane.f32.xlu0 %v1189_v41  ;;  %v1729_v41 = vld [vmem:[%s2654_s12 + $0x8] sm:$0xff] }
 0x499   : > { %1352 = vrot.lane.b32.xlu1 %v2354_v37, %s2194_s1 }
 0x49d   : > { %1428 = vrot.lane.b32.xlu1 %v2358_v38, %s2194_s1 }
 0x4a2   : > { %1276 = vrot.lane.b32.xlu0 %v2349_v35, %s2194_s1 }
 0x4a8   : > { %v1182_v42 = vpop.xlane.xlu1 %1181 }
 0x4a9   : > { %2164 = vrcp.f32 %v1182_v42 }
 0x4b3   : > { %v2165_v43 = vpop.eup %2164 }
 0x4b4   : > { %v1196_v45 = vmul.f32 %v2165_v43, %v2157_v1  ;;  %v1730_v43 = vld [vmem:[%s2654_s12 + $0x10] sm:$0xff] }
 0x4b6   : > { %1980 = vmatmul.mubr.msk.f32.vlgmr.msra.gmra.mrb[2].mxu0 %vm849_vm2, %v1196_v45  ;;  %v1731_v45 = vld [vmem:[%s2654_s12 + $0x18] sm:$0xff] }
 0x4b7   : > { %1989 = vmatprep.mubr.msk.f32.mxu0 %vm2185_vm1, %v2186_v13 }
 0x511   : > { %v1185_v46 = vpop.xlane.xlu0 %1184 }
 0x512   : > { %2166 = vrcp.f32 %v1185_v46  ;;  %v2060_v46 = vpack.c.bf16 %v1731_v45, %v1730_v43 }
 0x515   : > { %v1188_v47 = vpop.xlane.xlu1 %1187 }
 0x516   : > { %2168 = vrcp.f32 %v1188_v47  ;;  %v1732_v47 = vld [vmem:[%s2654_s12 + $0x20] sm:$0xff] }
 0x519   : > { %v1353_v37 = vpop.permute.xlu1 %1352  ;;  %v1191_v48 = vpop.xlane.xlu0 %1190 }
 0x51a   : > { %2170 = vrcp.f32 %v1191_v48  ;;  %1988 = vmatpush3.msra.mxu0 %v1353_v37  ;;  %v1733_v37 = vld [vmem:[%s2654_s12 + $0x28] sm:$0xff] }
 0x51b   : > { %2044 = vmatprep.subr.bf16.mxu0 %v2184_v10  ;;  %v2063_v48 = vpack.c.bf16 %v1733_v37, %v1732_v47 }
 0x51c   : > { %v2167_v35 = vpop.eup %2166 }
 0x51d   : > { %v1197_v38 = vmul.f32 %v2167_v35, %v2159_v33  ;;  %v1277_v49 = vpop.permute.xlu0 %1276  ;;  %v1429_v50 = vpop.permute.xlu1 %1428  ;;  %v1734_v35 = vld [vmem:[%s2654_s12 + $0x30] sm:$0xff] }
 0x51e   : > { %1983 = vmatpush3.msra.mxu1 %v1277_v49 }
 0x51f   : > { %1985 = vmatmul.mubr.msk.f32.vlgmr.msra.gmra.mrb[8].mxu1 %vm849_vm2, %v1197_v38  ;;  %1992 = vmatprep.subr.mxu1 %v2186_v13  ;;  %v1735_v38 = vld [vmem:[%s2654_s12 + $0x38] sm:$0xff] }
 0x520   : > { %v2169_v51 = vpop.eup %2168  ;;  %1993 = vmatpush3.msra.mxu1 %v1429_v50  ;;  %1994 = vmatprep.mubr.msk.f32.mxu1 %vm2185_vm1, %v2186_v13  ;;  %v2066_v49 = vpack.c.bf16 %v1735_v38, %v1734_v35  ;;  %v1900_v50 = vld [vmem:[%s2653_s11] ss:$0 sm:$0xff] }
 0x521   : > { %v1198_v52 = vmul.f32 %v2169_v51, %v2161_v36  ;;  %2050 = vmatprep.subr.bf16.mxu1 %v2184_v10 }
 0x523   : > { %1990 = vmatmul.mubr.msk.f32.vlgmr.msra.gmra.mrb[4].mxu0 %vm849_vm2, %v1198_v52 }
 0x524   : > { %v2171_v53 = vpop.eup %2170  ;;  %2005 = vmatprep.mubr.msk.f32.mxu0 %vm2185_vm1, %v2186_v13  ;;  %2046 = vmatpush3.bf16.msra.mxu0 %v2045_v59 }
 0x525   : > { %v1199_v54 = vmul.f32 %v2171_v53, %v2163_v40  ;;  %2047 = vmatprep.subr.bf16.mxu0 %v2184_v10  ;;  %v1728_v40 = vld [vmem:[%s2654_s12] sm:$0xff] }
 0x526   : > { %v2057_v42 = vpack.c.bf16 %v1729_v41, %v1728_v40 }
 0x527   : > { %1995 = vmatmul.mubr.msk.f32.vlgmr.msra.gmra.mrb[10].mxu1 %vm849_vm2, %v1199_v54 }
 0x528   : > { %2016 = vmatprep.mubr.msk.f32.mxu1 %vm2185_vm1, %v2186_v13  ;;  %2049 = vmatpush3.bf16.msra.mxu0 %v2048_v62  ;;  %v1902_v62 = vld [vmem:[%s2655_s13] ss:$0 sm:$0xff] }
 0x529   : > { %2056 = vmatprep.subr.bf16.mxu0 %v2184_v10 }
 0x589   : > { %v1272_v55 = vpop.f32.mrb[2].mxu0 }
 0x58a   : > { %v1981_v56 = vpop.f32.mrb[3].mxu0 }
 0x5f2   : > { %v1348_v63 = vpop.f32.mrb[8].mxu1 }
 0x5f3   : > { %1505 = vrot.lane.b32.xlu0 %v1348_v63, %s2195_s26  ;;  %v1986_v3 = vpop.f32.mrb[9].mxu1 }
 0x5f6   : > { %v1424_v4 = vpop.f32.mrb[4].mxu0 }
 0x5f7   : > { %1509 = vrot.lane.b32.xlu1 %v1424_v4, %s2196_s27  ;;  %v1991_v5 = vpop.f32.mrb[5].mxu0  ;;  %s2668_s27 = sshll.u32 %s2670_s22, 3 }
 0x5f8   : > { %s516_s2 = scalar_lea.vmem %s2658_s16, %s2668_s27 }
 0x5fa   : > { %v1500_v6 = vpop.f32.mrb[10].mxu1 }
 0x5fb   : > { %1513 = vrot.lane.b32.xlu0 %v1500_v6, %s2197_s28  ;;  %v1996_v7 = vpop.f32.mrb[11].mxu1 }
 0x665   : > { %v1506_v8 = vpop.permute.xlu0 %1505 }
 0x666   : > { %v1516_v12 = vsel %vm849_vm2, %v1272_v55, %v1506_v8 }
 0x669   : > { %v1510_v9 = vpop.permute.xlu1 %1509 }
 0x66a   : > { %v1518_v14 = vsel %vm1517_vm13, %v1516_v12, %v1510_v9 }
 0x66d   : > { %v1514_v15 = vpop.permute.xlu0 %1513 }
 0x66e   : > { %v1520_v16 = vsel %vm1519_vm14, %v1518_v14, %v1514_v15 }
 0x66f   : > { %2006 = vmatmul.mubr.msk.f32.vlgmr.msra.gmra.mrb[6].mxu0 %vm727_vm0, %v1520_v16 }
 0x670   : > { %2035 = vmatprep.mubr.msk.f32.mxu0 %vm2185_vm1, %v2186_v13  ;;  %2058 = vmatpush3.bf16.msra.mxu0 %v2057_v42 }
 0x671   : > { %2059 = vmatprep.subr.bf16.mxu0 %v2184_v10 }
 0x674   : > { %2061 = vmatpush3.bf16.msra.mxu0 %v2060_v46 }
 0x675   : > { %2062 = vmatprep.subr.bf16.mxu0 %v2184_v10 }
 0x678   : > { %2064 = vmatpush3.bf16.msra.mxu0 %v2063_v48 }
 0x679   : > { %2065 = vmatprep.subr.bf16.mxu0 %v2184_v10 }
 0x67c   : > { %2067 = vmatpush3.bf16.msra.mxu0 %v2066_v49 }
 0x742   : > { %v1601_v17 = vpop.f32.mrb[6].mxu0 }
 0x743   : > { %v1602_v18 = vadd.f32 %v1896_v11, %v1601_v17  ;;  %v2007_v19 = vpop.f32.mrb[7].mxu0 }
 0x745   : > { %v2573_v20 = vadd.f32 %v1602_v18, %v2299_v0  ;;  %v1636_v0 = vld [vmem:[%s2652_s10 + $0x8] sm:$0xff] }
 0x746   : > { %v2051_v25 = vpack.c.bf16 %v1636_v0, %v1635_v24 }
 0x747   : > { %v1608_v21 = vsel %vm727_vm0, %v2573_v20, 0.0 }
 0x748   : > { %1609 = vadd.xlane.f32.xlu1 %v1608_v21  ;;  %2052 = vmatpush3.bf16.msra.mxu1 %v2051_v25 }
 0x749   : > { %2053 = vmatprep.subr.bf16.mxu1 %v2184_v10 }
 0x74c   : > { %2055 = vmatpush3.bf16.msra.mxu1 %v2054_v29 }
 0x7d5   : > { %v1610_v22 = vpop.xlane.xlu1 %1609 }
 0x7d6   : > { %v1611_v23 = vmul.f32 0.03125, %v1610_v22 }
 0x7d8   : > { %v1612_v1 = vsub.f32 %v2573_v20, %v1611_v23 }
 0x7da   : > { %v1613_v2 = vmul.f32 %v1612_v1, %v1612_v1 }
 0x7dc   : > { %v1614_v13 = vsel %vm727_vm0, %v1613_v2, 0.0 }
 0x7dd   : > { %1615 = vadd.xlane.f32.xlu0 %v1614_v13 }
 0x86a   : > { %v1616_v30 = vpop.xlane.xlu0 %1615 }
 0x86b   : > { %v1617_v26 = vmul.f32 0.03125, %v1616_v30 }
 0x86d   : > { %v1618_v31 = vadd.f32 1e-05, %v1617_v26 }
 0x86f   : > { %2172 = vrsqrt.f32 %v1618_v31 }
 0x879   : > { %v2173_v44 = vpop.eup %2172 }
 0x87a   : > { %v1620_v33 = vmul.f32 %v2173_v44, %v1612_v1 }
 0x87c   : > { %v1627_v36 = vmul.f32 %v1898_v32, %v1620_v33 }
 0x87e   : > { %v1634_v39 = vadd.f32 %v1899_v34, %v1627_v36 }
 0x880   : > { %2017 = vmatmul.mubr.msk.f32.vlgmr.msra.gmra.mrb[12].mxu1 %vm727_vm0, %v1634_v39 }
 0x953   : > { %v1715_v51 = vpop.f32.mrb[12].mxu1 }
 0x954   : > { %v1716_v52 = vadd.f32 %v1900_v50, %v1715_v51  ;;  %v2018_v53 = vpop.f32.mrb[13].mxu1 }
 0x956   : > { %v1720_v54 = vmul.f32 0.044715, %v1716_v52  ;;  %v1719_v60 = vmul.f32 0.5, %v1716_v52 }
 0x958   : > { %v1721_v55 = vmul.f32 %v1720_v54, %v1716_v52 }
 0x95a   : > { %v1722_v56 = vmul.f32 %v1721_v55, %v1716_v52 }
 0x95c   : > { %v1723_v57 = vadd.f32 %v1722_v56, %v1716_v52 }
 0x95e   : > { %v1724_v58 = vmul.f32 0.7978846, %v1723_v57 }
 0x960   : > { %2174 = vtanh.f32 %v1724_v58 }
 0x96a   : > { %v2175_v59 = vpop.eup %2174 }
 0x96b   : > { %v1726_v61 = vadd.f32 1.0, %v2175_v59 }
 0x96d   : > { %v1727_v10 = vmul.f32 %v1726_v61, %v1719_v60 }
 0x96f   : > { %2036 = vmatmul.mubr.msk.f32.vlgmr.msra.gmra.mrb[8].mxu0 %vm1743_vm15, %v1727_v10 }
 0xa42   : > { %v1813_v63 = vpop.f32.mrb[8].mxu0 }
 0xa43   : > { %v1814_v3 = vadd.f32 %v1902_v62, %v1813_v63  ;;  %v2037_v4 = vpop.f32.mrb[9].mxu0 }
 0xa45   : > { %v1817_v5 = vadd.f32 %v1814_v3, %v2573_v20 }
 0xa47   : > { %1818 = vst.msk [vmem:[%s516_s2] sm:$0xff] %vm727_vm0, %v1817_v5 }
 0xa48 PF: > { %s26_s21 = sadd.s32 1, %s2182_s21  }
 0xa49   : > { %p23_p4 = scmp.ge.s32.totalorder %s26_s21, 4  }
 0xa4b   :  { %25 = sbr.rel (!%p23_p4) target bundleno = 5 (0x5), region = 114 }

</bundles_post_ra>
